<compile_context>
chip_gen: v7x
topology: tpu7x:2x2x1
jax: 0.10.0
libtpu: 0.0.40
codegen_flags: <defaults>
</compile_context>

<pallas_src>
import jax
import jax.numpy as jnp
from jax import lax
from jax.experimental import pallas as pl
from jax.experimental.pallas import tpu as pltpu

# ---------------- model hyper-parameters ------------------------------------
D_MODEL = 32          # d_encoder
NUM_HEADS = 4         # num_heads_attention
HEAD_DIM = D_MODEL // NUM_HEADS
FFL_EXP = 4           # ffl_exp_factor
FF_DIM = D_MODEL * FFL_EXP          # 128 -> lane-dense FFN hidden
CONV_EXP = 2          # conv_exp_factor (GLU halves it back to D_MODEL)
KERNEL_SIZE = 31      # conv_kernel_size
PAD = 15              # padding hard-coded in the module
DW_OFF = 16           # 8-aligned halo size of the depthwise scratch (>= PAD)
EPS_LN = 1e-5
EPS_BN = 1e-5

# ---------------- packed (row, D) vector-parameter table --------------------
(V_F1_G, V_F1_B, V_F1_B2,                          # ffn1: LN g/b, linear-2 bias
 V_A_G, V_A_B, V_BQ, V_BK, V_BV, V_BO,             # mhsa: LN g/b, q(scaled)/k/v/out bias
 V_C_G, V_C_B, V_BA, V_BG, V_BDW, V_BNS, V_BNH, V_BPW2,   # conv block
 V_F2_G, V_F2_B, V_F2_B2,                          # ffn2: LN g/b, linear-2 bias
 V_FIN_G, V_FIN_B) = range(22)                     # final LayerNorm
NUM_VECD = 24                                      # padded to a multiple of 8


# ---------------- fused Conformer-block kernel -------------------------------
def make_kernel(BB, T):
    BBT = BB * T
    TP = 2 * DW_OFF + T
    f32, bf16 = jnp.float32, jnp.bfloat16

    def kernel(x_ref, vd_ref, vf_ref, fw1_ref, fw2_ref, wqkv_ref, wglu_ref,
               wout_ref, wdw_ref, o_ref, pad_ref):
        x = x_ref[...].reshape(BBT, D_MODEL).astype(f32)      # (BB*T, D) slab

        def row(i):                       # (1, D) packed vector parameter
            return vd_ref[i:i + 1, :]

        def layernorm(h, g, b):
            mu = jnp.mean(h, axis=-1, keepdims=True)
            var = jnp.mean((h - mu) ** 2, axis=-1, keepdims=True)
            return (h - mu) * lax.rsqrt(var + EPS_LN) * g + b

        def swish(h):
            return h * jax.nn.sigmoid(h)

        # ---------- half-weighted feed-forward (shared by ffn1 / ffn2) ------
        def ffn_half(h_in, idx, base):
            h = layernorm(h_in, row(base), row(base + 1))
            h = jnp.dot(h.astype(bf16), fw1_ref[idx],
                        preferred_element_type=f32) + vf_ref[idx:idx + 1, :]
            h = swish(h)                  # TODO(synk): dropout = identity (inference)
            h = jnp.dot(h.astype(bf16), fw2_ref[idx],
                        preferred_element_type=f32) + row(base + 2)
            return h_in + 0.5 * h

        x = ffn_half(x, 0, V_F1_G)

        # ---------- multi-head self-attention (residual, factor 1) ----------
        h = layernorm(x, row(V_A_G), row(V_A_B))
        qkv = jnp.dot(h.astype(bf16), wqkv_ref[...],
                      preferred_element_type=f32)              # (BBT, 3D) fused QKV
        q = qkv[:, 0:D_MODEL] + row(V_BQ)        # 1/sqrt(hd) folded into WQ/BQ
        k = qkv[:, D_MODEL:2 * D_MODEL] + row(V_BK)
        v = qkv[:, 2 * D_MODEL:3 * D_MODEL] + row(V_BV)

        def to_heads(a):                  # (BBT, D) -> (BB*H, T, hd) merged batch
            a3 = a.reshape(BB, T, D_MODEL)
            return jnp.stack(
                [a3[:, :, hh * HEAD_DIM:(hh + 1) * HEAD_DIM]
                 for hh in range(NUM_HEADS)], axis=1,
            ).reshape(BB * NUM_HEADS, T, HEAD_DIM)

        qs, ks, vs = to_heads(q), to_heads(k), to_heads(v)
        # single-batch-dim dot_generals; tiny K=hd=8 so operands stay f32
        s = jnp.einsum('bqd,bkd->bqk', qs, ks,
                       preferred_element_type=f32)             # (BB*H, T, T)
        s = s - jnp.max(s, axis=-1, keepdims=True)
        p = jnp.exp(s)
        p = p * pl.reciprocal(jnp.sum(p, axis=-1, keepdims=True), approx=True)
        o = jnp.einsum('bqk,bkd->bqd', p, vs,
                       preferred_element_type=f32)             # (BB*H, T, hd)
        o4 = o.reshape(BB, NUM_HEADS, T, HEAD_DIM)
        oc = jnp.concatenate([o4[:, hh] for hh in range(NUM_HEADS)],
                             axis=-1).reshape(BBT, D_MODEL)
        y = jnp.dot(oc.astype(bf16), wout_ref[0],
                    preferred_element_type=f32) + row(V_BO)
        x = x + y
        # TODO(synk): flash-style key tiling needed for long sequences (v7x VMEM).

        # ---------- convolution module (residual, factor 1) -----------------
        h = layernorm(x, row(V_C_G), row(V_C_B))
        ag = jnp.dot(h.astype(bf16), wglu_ref[...],
                     preferred_element_type=f32)               # (BBT, 2D) fused GLU
        a = ag[:, 0:D_MODEL] + row(V_BA)
        g = ag[:, D_MODEL:2 * D_MODEL] + row(V_BG)
        hg = a * jax.nn.sigmoid(g)                             # (BBT, D)

        # depthwise conv (K=31, pad=15, groups=D): GLU output goes into the
        # middle of an 8-aligned padded scratch; ONLY the halo rows are zeroed
        # (the interior is fully overwritten each step), then 31 shifted taps.
        # TODO(synk): channels-first (D, T) layout would turn the taps into
        #             lane rolls; kept time-on-sublanes here.
        pad_ref[:, 0:DW_OFF, :] = jnp.zeros((BB, DW_OFF, D_MODEL), f32)
        pad_ref[:, DW_OFF + T:TP, :] = jnp.zeros((BB, TP - DW_OFF - T, D_MODEL), f32)
        pad_ref[:, DW_OFF:DW_OFF + T, :] = hg.reshape(BB, T, D_MODEL)
        shift = DW_OFF - PAD
        acc3 = jnp.zeros((BB, T, D_MODEL), f32)
        for kk in range(KERNEL_SIZE):
            acc3 = acc3 + (pad_ref[:, kk + shift:kk + shift + T, :]
                           * wdw_ref[kk:kk + 1, :])
        acc = acc3.reshape(BBT, D_MODEL) + row(V_BDW)
        # BatchNorm1d folded host-side into scale/shift (inference running stats).
        # TODO(synk): training-mode BN (batch statistics over (B, T)) not modeled.
        acc = acc * row(V_BNS) + row(V_BNH)
        acc = swish(acc)
        y = jnp.dot(acc.astype(bf16), wout_ref[1],
                    preferred_element_type=f32) + row(V_BPW2)
        x = x + y

        # ---------- second FFN half + final LayerNorm -----------------------
        x = ffn_half(x, 1, V_F2_G)
        out = layernorm(x, row(V_FIN_G), row(V_FIN_B))
        o_ref[...] = out.reshape(BB, T, D_MODEL).astype(o_ref.dtype)

    return kernel


# ---------------- pallas_call wrapper -----------------------------------------
def conformer_block(x, params):
    B, T, D = x.shape
    assert D == D_MODEL and T % 8 == 0

    # batch-blocking: largest divisor of B (<= 8) that still leaves >= 2 grid
    # steps so both v7x TensorCores get work; single-step fallback otherwise.
    cands = [d for d in range(1, min(B, 8) + 1) if B % d == 0 and B // d >= 2]
    BB = max(cands) if cands else B
    grid = (B // BB,)
    TP = 2 * DW_OFF + T

    def full_spec(arr):
        nd = arr.ndim
        return pl.BlockSpec(arr.shape, lambda i, _nd=nd: (0,) * _nd)

    return pl.pallas_call(
        make_kernel(BB, T),
        out_shape=jax.ShapeDtypeStruct((B, T, D), x.dtype),
        grid_spec=pltpu.PrefetchScalarGridSpec(
            num_scalar_prefetch=0,
            grid=grid,
            in_specs=[pl.BlockSpec((BB, T, D), lambda i: (i, 0, 0)),
                      full_spec(params["vecd"]), full_spec(params["vecf"]),
                      full_spec(params["fw1"]), full_spec(params["fw2"]),
                      full_spec(params["wqkv"]), full_spec(params["wglu"]),
                      full_spec(params["wout"]), full_spec(params["wdw"])],
            out_specs=pl.BlockSpec((BB, T, D), lambda i: (i, 0, 0)),
            scratch_shapes=[pltpu.VMEM((BB, TP, D_MODEL), jnp.float32)],
        ),
        compiler_params=pltpu.CompilerParams(
            dimension_semantics=("parallel",)),   # batch blocks shard across TCs
    )(x, params["vecd"], params["vecf"], params["fw1"], params["fw2"],
      params["wqkv"], params["wglu"], params["wout"], params["wdw"])


# ---------------- pure-JAX reference (numerics matched to the kernel) ---------
def conformer_ref(x, p):
    f32, bf16 = jnp.float32, jnp.bfloat16
    B, T, D = x.shape
    vd = p["vecd"]

    def row(i):
        return vd[i]

    def ln(h, g, b):
        mu = jnp.mean(h, axis=-1, keepdims=True)
        var = jnp.mean((h - mu) ** 2, axis=-1, keepdims=True)
        return (h - mu) * lax.rsqrt(var + EPS_LN) * g + b

    def swish(h):
        return h * jax.nn.sigmoid(h)

    def ffn(h_in, idx, base):
        h = ln(h_in, row(base), row(base + 1))
        h = jnp.dot(h.astype(bf16), p["fw1"][idx],
                    preferred_element_type=f32) + p["vecf"][idx]
        h = swish(h)
        h = jnp.dot(h.astype(bf16), p["fw2"][idx],
                    preferred_element_type=f32) + row(base + 2)
        return h_in + 0.5 * h

    x = x.astype(f32)
    x = ffn(x, 0, V_F1_G)

    h = ln(x, row(V_A_G), row(V_A_B))
    qkv = jnp.dot(h.astype(bf16), p["wqkv"], preferred_element_type=f32)
    q = qkv[..., 0:D] + row(V_BQ)
    k = qkv[..., D:2 * D] + row(V_BK)
    v = qkv[..., 2 * D:3 * D] + row(V_BV)

    def heads(a):
        return a.reshape(B, T, NUM_HEADS, HEAD_DIM).transpose(0, 2, 1, 3)

    qs, ks, vs = heads(q), heads(k), heads(v)
    s = jnp.einsum('bhqd,bhkd->bhqk', qs, ks, preferred_element_type=f32)
    pr = jax.nn.softmax(s, axis=-1)
    o = jnp.einsum('bhqk,bhkd->bhqd', pr, vs, preferred_element_type=f32)
    oc = o.transpose(0, 2, 1, 3).reshape(B, T, D)
    x = x + jnp.dot(oc.astype(bf16), p["wout"][0],
                    preferred_element_type=f32) + row(V_BO)

    h = ln(x, row(V_C_G), row(V_C_B))
    ag = jnp.dot(h.astype(bf16), p["wglu"], preferred_element_type=f32)
    a = ag[..., 0:D] + row(V_BA)
    g = ag[..., D:2 * D] + row(V_BG)
    hg = a * jax.nn.sigmoid(g)
    hp = jnp.pad(hg, ((0, 0), (PAD, PAD), (0, 0)))
    acc = jnp.zeros_like(hg)
    for kk in range(KERNEL_SIZE):
        acc = acc + hp[:, kk:kk + T, :] * p["wdw"][kk]
    acc = acc + row(V_BDW)
    acc = acc * row(V_BNS) + row(V_BNH)
    acc = swish(acc)
    x = x + jnp.dot(acc.astype(bf16), p["wout"][1],
                    preferred_element_type=f32) + row(V_BPW2)

    x = ffn(x, 1, V_F2_G)
    return ln(x, row(V_FIN_G), row(V_FIN_B))


# ---------------- deterministic parameter init + host-side packing ------------
# NOTE: when loading a PyTorch checkpoint, the host-side conversion must
#   * transpose nn.Linear / pointwise-Conv1d weights to (in, out),
#   * reshape the depthwise weight (D, 1, K) -> (K, D),
#   * then apply the same folds as below (attention scale into WQ/BQ, BN into
#     scale/shift, concat QKV and GLU halves, cast matmul weights to bf16).
def init_params(key):
    keys = iter(jax.random.split(key, 32))

    def w(shape, scale=0.1):
        return (scale * jax.random.normal(next(keys), shape)).astype(jnp.float32)

    D, F = D_MODEL, FF_DIM
    bf16 = jnp.bfloat16

    # raw parameters
    wq, wk, wv, wo = w((D, D)), w((D, D)), w((D, D)), w((D, D))
    bq, bk, bv, bo = w((D,), .02), w((D,), .02), w((D,), .02), w((D,), .02)
    w_glu_a, w_glu_g = w((D, D)), w((D, D))
    b_glu_a, b_glu_g = w((D,), .02), w((D,), .02)
    w_dw, b_dw = w((KERNEL_SIZE, D)), w((D,), .02)
    bn_gamma = jnp.ones((D,), jnp.float32)
    bn_beta = jnp.zeros((D,), jnp.float32)
    bn_mean = jnp.zeros((D,), jnp.float32)
    bn_var = jnp.ones((D,), jnp.float32)
    w_pw2, b_pw2 = w((D, D)), w((D,), .02)
    ff_w1 = jnp.stack([w((D, F)), w((D, F))])          # (2, D, F)
    ff_b1 = jnp.stack([w((F,), .02), w((F,), .02)])    # (2, F)
    ff_w2 = jnp.stack([w((F, D)), w((F, D))])          # (2, F, D)
    ff_b2_0, ff_b2_1 = w((D,), .02), w((D,), .02)

    # host-side folding / packing
    scale = 1.0 / (HEAD_DIM ** 0.5)
    bn_scale = bn_gamma * lax.rsqrt(bn_var + EPS_BN)
    bn_shift = bn_beta - bn_mean * bn_scale

    ones = jnp.ones((D,), jnp.float32)
    zeros = jnp.zeros((D,), jnp.float32)
    rows = [
        ones, zeros, ff_b2_0,                      # ffn1: LN g/b, linear-2 bias
        ones, zeros, bq * scale, bk, bv, bo,       # mhsa: LN g/b, biases (q scaled)
        ones, zeros, b_glu_a, b_glu_g, b_dw,       # conv: LN g/b, GLU biases, dw bias
        bn_scale, bn_shift, b_pw2,                 # conv: folded BN, pw2 bias
        ones, zeros, ff_b2_1,                      # ffn2: LN g/b, linear-2 bias
        ones, zeros,                               # final LayerNorm g/b
    ]
    rows += [zeros] * (NUM_VECD - len(rows))       # pad table to 24 rows
    vecd = jnp.stack(rows)

    return {
        "vecd": vecd,                                                  # (24, D) f32
        "vecf": ff_b1,                                                 # (2, F)  f32
        "fw1": ff_w1.astype(bf16),                                     # (2, D, F)
        "fw2": ff_w2.astype(bf16),                                     # (2, F, D)
        "wqkv": jnp.concatenate([wq * scale, wk, wv], 1).astype(bf16), # (D, 3D)
        "wglu": jnp.concatenate([w_glu_a, w_glu_g], 1).astype(bf16),   # (D, 2D)
        "wout": jnp.stack([wo, w_pw2]).astype(bf16),                   # (2, D, D)
        "wdw": w_dw,                                                   # (K, D) f32
    }


# ---------------- main ---------------------------------------------------------
if __name__ == "__main__":
    key = jax.random.PRNGKey(0)
    k_x, k_p = jax.random.split(key)

    B, T = 8, 16
    x = jax.random.normal(k_x, (B, T, D_MODEL), dtype=jnp.float32)
    params = init_params(k_p)

    out = jax.block_until_ready(conformer_block(x, params))
    ref = jax.block_until_ready(conformer_ref(x, params))

    assert out.shape == (B, T, D_MODEL)
    assert bool(jnp.all(jnp.isfinite(out)))
    max_err = float(jnp.max(jnp.abs(out - ref)))
    assert max_err < 2e-2, f"kernel vs reference mismatch: max|err|={max_err}"
    print("KERNEL_OK")
</pallas_src>

<mosaic_0001>
module attributes {stable_mosaic.version = 11 : i64} {
  func.func @kernel(%arg0: i32, %arg1: memref<4x16x32xf32, #tpu.memory_space<vmem>>, %arg2: memref<24x32xf32, #tpu.memory_space<vmem>>, %arg3: memref<2x128xf32, #tpu.memory_space<vmem>>, %arg4: memref<2x32x128xbf16, #tpu.memory_space<vmem>>, %arg5: memref<2x128x32xbf16, #tpu.memory_space<vmem>>, %arg6: memref<32x96xbf16, #tpu.memory_space<vmem>>, %arg7: memref<32x64xbf16, #tpu.memory_space<vmem>>, %arg8: memref<2x32x32xbf16, #tpu.memory_space<vmem>>, %arg9: memref<31x32xf32, #tpu.memory_space<vmem>>, %arg10: memref<4x16x32xf32, #tpu.memory_space<vmem>>, %arg11: memref<4x48x32xf32, #tpu.memory_space<vmem>>) attributes {dimension_semantics = [#tpu.dimension_semantics<parallel>], iteration_bounds = array<i64: 2>, scalar_prefetch = 0 : i64, scratch_operands = 1 : i64, tpu.core_type = #tpu.core_type<tc>, window_params = [{transform_indices = @transform_0, window_bounds = array<i64: 4, 16, 32>}, {pipeline_mode = #tpu.pipeline_mode<synchronous>, transform_indices = @transform_1, window_bounds = array<i64: 24, 32>}, {pipeline_mode = #tpu.pipeline_mode<synchronous>, transform_indices = @transform_2, window_bounds = array<i64: 2, 128>}, {pipeline_mode = #tpu.pipeline_mode<synchronous>, transform_indices = @transform_3, window_bounds = array<i64: 2, 32, 128>}, {pipeline_mode = #tpu.pipeline_mode<synchronous>, transform_indices = @transform_4, window_bounds = array<i64: 2, 128, 32>}, {pipeline_mode = #tpu.pipeline_mode<synchronous>, transform_indices = @transform_5, window_bounds = array<i64: 32, 96>}, {pipeline_mode = #tpu.pipeline_mode<synchronous>, transform_indices = @transform_6, window_bounds = array<i64: 32, 64>}, {pipeline_mode = #tpu.pipeline_mode<synchronous>, transform_indices = @transform_7, window_bounds = array<i64: 2, 32, 32>}, {pipeline_mode = #tpu.pipeline_mode<synchronous>, transform_indices = @transform_8, window_bounds = array<i64: 31, 32>}, {transform_indices = @transform_9, window_bounds = array<i64: 4, 16, 32>}]} {
    %c0 = arith.constant 0 : index
    %c0_0 = arith.constant 0 : index
    %c0_1 = arith.constant 0 : index
    %0 = vector.load %arg1[%c0, %c0_0, %c0_1] : memref<4x16x32xf32, #tpu.memory_space<vmem>>, vector<4x16x32xf32>
    %1 = vector.shape_cast %0 : vector<4x16x32xf32> to vector<64x32xf32>
    %c0_2 = arith.constant 0 : index
    %c0_3 = arith.constant 0 : index
    %2 = vector.load %arg2[%c0_2, %c0_3] : memref<24x32xf32, #tpu.memory_space<vmem>>, vector<1x32xf32>
    %c1 = arith.constant 1 : index
    %c0_4 = arith.constant 0 : index
    %3 = vector.load %arg2[%c1, %c0_4] : memref<24x32xf32, #tpu.memory_space<vmem>>, vector<1x32xf32>
    %cst = arith.constant dense<0.000000e+00> : vector<64xf32>
    %4 = vector.multi_reduction <add>, %1, %cst [1] : vector<64x32xf32> to vector<64xf32>
    %5 = vector.shape_cast %4 : vector<64xf32> to vector<64x1xf32>
    %cst_5 = arith.constant 3.200000e+01 : f32
    %6 = vector.broadcast %cst_5 : f32 to vector<64x1xf32>
    %7 = arith.divf %5, %6 : vector<64x1xf32>
    %8 = vector.broadcast %7 : vector<64x1xf32> to vector<64x32xf32>
    %9 = arith.subf %1, %8 : vector<64x32xf32>
    %10 = arith.mulf %9, %9 : vector<64x32xf32>
    %cst_6 = arith.constant dense<0.000000e+00> : vector<64xf32>
    %11 = vector.multi_reduction <add>, %10, %cst_6 [1] : vector<64x32xf32> to vector<64xf32>
    %12 = vector.shape_cast %11 : vector<64xf32> to vector<64x1xf32>
    %cst_7 = arith.constant 3.200000e+01 : f32
    %13 = vector.broadcast %cst_7 : f32 to vector<64x1xf32>
    %14 = arith.divf %12, %13 : vector<64x1xf32>
    %15 = vector.broadcast %7 : vector<64x1xf32> to vector<64x32xf32>
    %16 = arith.subf %1, %15 : vector<64x32xf32>
    %cst_8 = arith.constant 9.99999974E-6 : f32
    %17 = vector.broadcast %cst_8 : f32 to vector<64x1xf32>
    %18 = arith.addf %14, %17 : vector<64x1xf32>
    %19 = math.rsqrt %18 : vector<64x1xf32>
    %20 = vector.broadcast %19 : vector<64x1xf32> to vector<64x32xf32>
    %21 = arith.mulf %16, %20 : vector<64x32xf32>
    %22 = vector.broadcast %2 : vector<1x32xf32> to vector<64x32xf32>
    %23 = arith.mulf %21, %22 : vector<64x32xf32>
    %24 = vector.broadcast %3 : vector<1x32xf32> to vector<64x32xf32>
    %25 = arith.addf %23, %24 : vector<64x32xf32>
    %26 = arith.truncf %25 : vector<64x32xf32> to vector<64x32xbf16>
    %c0_9 = arith.constant 0 : index
    %c0_10 = arith.constant 0 : index
    %c0_11 = arith.constant 0 : index
    %27 = vector.load %arg4[%c0_9, %c0_10, %c0_11] : memref<2x32x128xbf16, #tpu.memory_space<vmem>>, vector<1x32x128xbf16>
    %28 = vector.shape_cast %27 : vector<1x32x128xbf16> to vector<32x128xbf16>
    %cst_12 = arith.constant dense<0.000000e+00> : vector<64x128xf32>
    %29 = tpu.matmul %26, %28, %cst_12 {dimension_numbers = #tpu.dot_dimension_numbers<[1], [0], [0], [1], [0, 0, 1, 1], [], []>} : vector<64x32xbf16>, vector<32x128xbf16>, vector<64x128xf32> -> vector<64x128xf32>
    %c0_13 = arith.constant 0 : index
    %c0_14 = arith.constant 0 : index
    %30 = vector.load %arg3[%c0_13, %c0_14] : memref<2x128xf32, #tpu.memory_space<vmem>>, vector<1x128xf32>
    %31 = vector.broadcast %30 : vector<1x128xf32> to vector<64x128xf32>
    %32 = arith.addf %29, %31 : vector<64x128xf32>
    %33 = arith.negf %32 : vector<64x128xf32>
    %34 = math.exp %33 : vector<64x128xf32>
    %cst_15 = arith.constant 1.000000e+00 : f32
    %35 = vector.broadcast %cst_15 : f32 to vector<64x128xf32>
    %36 = arith.addf %35, %34 : vector<64x128xf32>
    %37 = arith.divf %35, %36 : vector<64x128xf32>
    %38 = arith.mulf %32, %37 : vector<64x128xf32>
    %39 = arith.truncf %38 : vector<64x128xf32> to vector<64x128xbf16>
    %c0_16 = arith.constant 0 : index
    %c0_17 = arith.constant 0 : index
    %c0_18 = arith.constant 0 : index
    %40 = vector.load %arg5[%c0_16, %c0_17, %c0_18] : memref<2x128x32xbf16, #tpu.memory_space<vmem>>, vector<1x128x32xbf16>
    %41 = vector.shape_cast %40 : vector<1x128x32xbf16> to vector<128x32xbf16>
    %cst_19 = arith.constant dense<0.000000e+00> : vector<64x32xf32>
    %42 = tpu.matmul %39, %41, %cst_19 {dimension_numbers = #tpu.dot_dimension_numbers<[1], [0], [0], [1], [0, 0, 1, 1], [], []>} : vector<64x128xbf16>, vector<128x32xbf16>, vector<64x32xf32> -> vector<64x32xf32>
    %c2 = arith.constant 2 : index
    %c0_20 = arith.constant 0 : index
    %43 = vector.load %arg2[%c2, %c0_20] : memref<24x32xf32, #tpu.memory_space<vmem>>, vector<1x32xf32>
    %44 = vector.broadcast %43 : vector<1x32xf32> to vector<64x32xf32>
    %45 = arith.addf %42, %44 : vector<64x32xf32>
    %cst_21 = arith.constant 5.000000e-01 : f32
    %46 = vector.broadcast %cst_21 : f32 to vector<64x32xf32>
    %47 = arith.mulf %46, %45 : vector<64x32xf32>
    %48 = arith.addf %1, %47 : vector<64x32xf32>
    %c3 = arith.constant 3 : index
    %c0_22 = arith.constant 0 : index
    %49 = vector.load %arg2[%c3, %c0_22] : memref<24x32xf32, #tpu.memory_space<vmem>>, vector<1x32xf32>
    %c4 = arith.constant 4 : index
    %c0_23 = arith.constant 0 : index
    %50 = vector.load %arg2[%c4, %c0_23] : memref<24x32xf32, #tpu.memory_space<vmem>>, vector<1x32xf32>
    %cst_24 = arith.constant dense<0.000000e+00> : vector<64xf32>
    %51 = vector.multi_reduction <add>, %48, %cst_24 [1] : vector<64x32xf32> to vector<64xf32>
    %52 = vector.shape_cast %51 : vector<64xf32> to vector<64x1xf32>
    %cst_25 = arith.constant 3.200000e+01 : f32
    %53 = vector.broadcast %cst_25 : f32 to vector<64x1xf32>
    %54 = arith.divf %52, %53 : vector<64x1xf32>
    %55 = vector.broadcast %54 : vector<64x1xf32> to vector<64x32xf32>
    %56 = arith.subf %48, %55 : vector<64x32xf32>
    %57 = arith.mulf %56, %56 : vector<64x32xf32>
    %cst_26 = arith.constant dense<0.000000e+00> : vector<64xf32>
    %58 = vector.multi_reduction <add>, %57, %cst_26 [1] : vector<64x32xf32> to vector<64xf32>
    %59 = vector.shape_cast %58 : vector<64xf32> to vector<64x1xf32>
    %cst_27 = arith.constant 3.200000e+01 : f32
    %60 = vector.broadcast %cst_27 : f32 to vector<64x1xf32>
    %61 = arith.divf %59, %60 : vector<64x1xf32>
    %62 = vector.broadcast %54 : vector<64x1xf32> to vector<64x32xf32>
    %63 = arith.subf %48, %62 : vector<64x32xf32>
    %cst_28 = arith.constant 9.99999974E-6 : f32
    %64 = vector.broadcast %cst_28 : f32 to vector<64x1xf32>
    %65 = arith.addf %61, %64 : vector<64x1xf32>
    %66 = math.rsqrt %65 : vector<64x1xf32>
    %67 = vector.broadcast %66 : vector<64x1xf32> to vector<64x32xf32>
    %68 = arith.mulf %63, %67 : vector<64x32xf32>
    %69 = vector.broadcast %49 : vector<1x32xf32> to vector<64x32xf32>
    %70 = arith.mulf %68, %69 : vector<64x32xf32>
    %71 = vector.broadcast %50 : vector<1x32xf32> to vector<64x32xf32>
    %72 = arith.addf %70, %71 : vector<64x32xf32>
    %73 = arith.truncf %72 : vector<64x32xf32> to vector<64x32xbf16>
    %c0_29 = arith.constant 0 : index
    %c0_30 = arith.constant 0 : index
    %74 = vector.load %arg6[%c0_29, %c0_30] : memref<32x96xbf16, #tpu.memory_space<vmem>>, vector<32x96xbf16>
    %cst_31 = arith.constant dense<0.000000e+00> : vector<64x96xf32>
    %75 = tpu.matmul %73, %74, %cst_31 {dimension_numbers = #tpu.dot_dimension_numbers<[1], [0], [0], [1], [0, 0, 1, 1], [], []>} : vector<64x32xbf16>, vector<32x96xbf16>, vector<64x96xf32> -> vector<64x96xf32>
    %76 = vector.extract_strided_slice %75 {offsets = [0, 0], sizes = [64, 32], strides = [1, 1]} : vector<64x96xf32> to vector<64x32xf32>
    %c5 = arith.constant 5 : index
    %c0_32 = arith.constant 0 : index
    %77 = vector.load %arg2[%c5, %c0_32] : memref<24x32xf32, #tpu.memory_space<vmem>>, vector<1x32xf32>
    %78 = vector.broadcast %77 : vector<1x32xf32> to vector<64x32xf32>
    %79 = arith.addf %76, %78 : vector<64x32xf32>
    %80 = vector.extract_strided_slice %75 {offsets = [0, 32], sizes = [64, 32], strides = [1, 1]} : vector<64x96xf32> to vector<64x32xf32>
    %c6 = arith.constant 6 : index
    %c0_33 = arith.constant 0 : index
    %81 = vector.load %arg2[%c6, %c0_33] : memref<24x32xf32, #tpu.memory_space<vmem>>, vector<1x32xf32>
    %82 = vector.broadcast %81 : vector<1x32xf32> to vector<64x32xf32>
    %83 = arith.addf %80, %82 : vector<64x32xf32>
    %84 = vector.extract_strided_slice %75 {offsets = [0, 64], sizes = [64, 32], strides = [1, 1]} : vector<64x96xf32> to vector<64x32xf32>
    %c7 = arith.constant 7 : index
    %c0_34 = arith.constant 0 : index
    %85 = vector.load %arg2[%c7, %c0_34] : memref<24x32xf32, #tpu.memory_space<vmem>>, vector<1x32xf32>
    %86 = vector.broadcast %85 : vector<1x32xf32> to vector<64x32xf32>
    %87 = arith.addf %84, %86 : vector<64x32xf32>
    %88 = vector.shape_cast %79 : vector<64x32xf32> to vector<4x16x32xf32>
    %89 = vector.extract_strided_slice %88 {offsets = [0, 0, 0], sizes = [4, 16, 8], strides = [1, 1, 1]} : vector<4x16x32xf32> to vector<4x16x8xf32>
    %90 = vector.extract_strided_slice %88 {offsets = [0, 0, 8], sizes = [4, 16, 8], strides = [1, 1, 1]} : vector<4x16x32xf32> to vector<4x16x8xf32>
    %91 = vector.extract_strided_slice %88 {offsets = [0, 0, 16], sizes = [4, 16, 8], strides = [1, 1, 1]} : vector<4x16x32xf32> to vector<4x16x8xf32>
    %92 = vector.extract_strided_slice %88 {offsets = [0, 0, 24], sizes = [4, 16, 8], strides = [1, 1, 1]} : vector<4x16x32xf32> to vector<4x16x8xf32>
    %93 = vector.shape_cast %89 : vector<4x16x8xf32> to vector<4x1x16x8xf32>
    %94 = vector.shape_cast %90 : vector<4x16x8xf32> to vector<4x1x16x8xf32>
    %95 = vector.shape_cast %91 : vector<4x16x8xf32> to vector<4x1x16x8xf32>
    %96 = vector.shape_cast %92 : vector<4x16x8xf32> to vector<4x1x16x8xf32>
    %97 = tpu.concatenate %93, %94, %95, %96 in 1 : vector<4x1x16x8xf32>, vector<4x1x16x8xf32>, vector<4x1x16x8xf32>, vector<4x1x16x8xf32> -> vector<4x4x16x8xf32>
    %98 = vector.shape_cast %97 : vector<4x4x16x8xf32> to vector<16x16x8xf32>
    %99 = vector.shape_cast %83 : vector<64x32xf32> to vector<4x16x32xf32>
    %100 = vector.extract_strided_slice %99 {offsets = [0, 0, 0], sizes = [4, 16, 8], strides = [1, 1, 1]} : vector<4x16x32xf32> to vector<4x16x8xf32>
    %101 = vector.extract_strided_slice %99 {offsets = [0, 0, 8], sizes = [4, 16, 8], strides = [1, 1, 1]} : vector<4x16x32xf32> to vector<4x16x8xf32>
    %102 = vector.extract_strided_slice %99 {offsets = [0, 0, 16], sizes = [4, 16, 8], strides = [1, 1, 1]} : vector<4x16x32xf32> to vector<4x16x8xf32>
    %103 = vector.extract_strided_slice %99 {offsets = [0, 0, 24], sizes = [4, 16, 8], strides = [1, 1, 1]} : vector<4x16x32xf32> to vector<4x16x8xf32>
    %104 = vector.shape_cast %100 : vector<4x16x8xf32> to vector<4x1x16x8xf32>
    %105 = vector.shape_cast %101 : vector<4x16x8xf32> to vector<4x1x16x8xf32>
    %106 = vector.shape_cast %102 : vector<4x16x8xf32> to vector<4x1x16x8xf32>
    %107 = vector.shape_cast %103 : vector<4x16x8xf32> to vector<4x1x16x8xf32>
    %108 = tpu.concatenate %104, %105, %106, %107 in 1 : vector<4x1x16x8xf32>, vector<4x1x16x8xf32>, vector<4x1x16x8xf32>, vector<4x1x16x8xf32> -> vector<4x4x16x8xf32>
    %109 = vector.shape_cast %108 : vector<4x4x16x8xf32> to vector<16x16x8xf32>
    %110 = vector.shape_cast %87 : vector<64x32xf32> to vector<4x16x32xf32>
    %111 = vector.extract_strided_slice %110 {offsets = [0, 0, 0], sizes = [4, 16, 8], strides = [1, 1, 1]} : vector<4x16x32xf32> to vector<4x16x8xf32>
    %112 = vector.extract_strided_slice %110 {offsets = [0, 0, 8], sizes = [4, 16, 8], strides = [1, 1, 1]} : vector<4x16x32xf32> to vector<4x16x8xf32>
    %113 = vector.extract_strided_slice %110 {offsets = [0, 0, 16], sizes = [4, 16, 8], strides = [1, 1, 1]} : vector<4x16x32xf32> to vector<4x16x8xf32>
    %114 = vector.extract_strided_slice %110 {offsets = [0, 0, 24], sizes = [4, 16, 8], strides = [1, 1, 1]} : vector<4x16x32xf32> to vector<4x16x8xf32>
    %115 = vector.shape_cast %111 : vector<4x16x8xf32> to vector<4x1x16x8xf32>
    %116 = vector.shape_cast %112 : vector<4x16x8xf32> to vector<4x1x16x8xf32>
    %117 = vector.shape_cast %113 : vector<4x16x8xf32> to vector<4x1x16x8xf32>
    %118 = vector.shape_cast %114 : vector<4x16x8xf32> to vector<4x1x16x8xf32>
    %119 = tpu.concatenate %115, %116, %117, %118 in 1 : vector<4x1x16x8xf32>, vector<4x1x16x8xf32>, vector<4x1x16x8xf32>, vector<4x1x16x8xf32> -> vector<4x4x16x8xf32>
    %120 = vector.shape_cast %119 : vector<4x4x16x8xf32> to vector<16x16x8xf32>
    "tpu.trace_start"() <{level = 10 : i32, message = "bqd,bkd->bqk"}> : () -> ()
    %cst_35 = arith.constant dense<0.000000e+00> : vector<16x16x16xf32>
    %121 = tpu.matmul %98, %109, %cst_35 {dimension_numbers = #tpu.dot_dimension_numbers<[2], [2], [1], [1], [0, 0, 0, 1, 1, 1], [0], [0]>} : vector<16x16x8xf32>, vector<16x16x8xf32>, vector<16x16x16xf32> -> vector<16x16x16xf32>
    "tpu.trace_stop"() : () -> ()
    %cst_36 = arith.constant dense<0xFF800000> : vector<16x16xf32>
    %122 = vector.multi_reduction <maximumf>, %121, %cst_36 [2] : vector<16x16x16xf32> to vector<16x16xf32>
    %123 = vector.shape_cast %122 : vector<16x16xf32> to vector<16x16x1xf32>
    %124 = vector.broadcast %123 : vector<16x16x1xf32> to vector<16x16x16xf32>
    %125 = arith.subf %121, %124 : vector<16x16x16xf32>
    %126 = math.exp %125 : vector<16x16x16xf32>
    %cst_37 = arith.constant dense<0.000000e+00> : vector<16x16xf32>
    %127 = vector.multi_reduction <add>, %126, %cst_37 [2] : vector<16x16x16xf32> to vector<16x16xf32>
    %128 = vector.shape_cast %127 : vector<16x16xf32> to vector<16x16x1xf32>
    %129 = tpu.reciprocal %128 {approx = true} : vector<16x16x1xf32> -> vector<16x16x1xf32>
    %130 = vector.broadcast %129 : vector<16x16x1xf32> to vector<16x16x16xf32>
    %131 = arith.mulf %126, %130 : vector<16x16x16xf32>
    "tpu.trace_start"() <{level = 10 : i32, message = "bqk,bkd->bqd"}> : () -> ()
    %cst_38 = arith.constant dense<0.000000e+00> : vector<16x16x8xf32>
    %132 = tpu.matmul %131, %120, %cst_38 {dimension_numbers = #tpu.dot_dimension_numbers<[2], [1], [1], [2], [0, 0, 0, 1, 1, 2], [0], [0]>} : vector<16x16x16xf32>, vector<16x16x8xf32>, vector<16x16x8xf32> -> vector<16x16x8xf32>
    "tpu.trace_stop"() : () -> ()
    %133 = vector.shape_cast %132 : vector<16x16x8xf32> to vector<4x4x16x8xf32>
    %134 = vector.extract_strided_slice %133 {offsets = [0, 0, 0, 0], sizes = [4, 1, 16, 8], strides = [1, 1, 1, 1]} : vector<4x4x16x8xf32> to vector<4x1x16x8xf32>
    %135 = vector.shape_cast %134 : vector<4x1x16x8xf32> to vector<4x16x8xf32>
    %136 = vector.extract_strided_slice %133 {offsets = [0, 1, 0, 0], sizes = [4, 1, 16, 8], strides = [1, 1, 1, 1]} : vector<4x4x16x8xf32> to vector<4x1x16x8xf32>
    %137 = vector.shape_cast %136 : vector<4x1x16x8xf32> to vector<4x16x8xf32>
    %138 = vector.extract_strided_slice %133 {offsets = [0, 2, 0, 0], sizes = [4, 1, 16, 8], strides = [1, 1, 1, 1]} : vector<4x4x16x8xf32> to vector<4x1x16x8xf32>
    %139 = vector.shape_cast %138 : vector<4x1x16x8xf32> to vector<4x16x8xf32>
    %140 = vector.extract_strided_slice %133 {offsets = [0, 3, 0, 0], sizes = [4, 1, 16, 8], strides = [1, 1, 1, 1]} : vector<4x4x16x8xf32> to vector<4x1x16x8xf32>
    %141 = vector.shape_cast %140 : vector<4x1x16x8xf32> to vector<4x16x8xf32>
    %142 = tpu.concatenate %135, %137, %139, %141 in 2 : vector<4x16x8xf32>, vector<4x16x8xf32>, vector<4x16x8xf32>, vector<4x16x8xf32> -> vector<4x16x32xf32>
    %143 = vector.shape_cast %142 : vector<4x16x32xf32> to vector<64x32xf32>
    %144 = arith.truncf %143 : vector<64x32xf32> to vector<64x32xbf16>
    %c0_39 = arith.constant 0 : index
    %c0_40 = arith.constant 0 : index
    %c0_41 = arith.constant 0 : index
    %145 = vector.load %arg8[%c0_39, %c0_40, %c0_41] : memref<2x32x32xbf16, #tpu.memory_space<vmem>>, vector<1x32x32xbf16>
    %146 = vector.shape_cast %145 : vector<1x32x32xbf16> to vector<32x32xbf16>
    %cst_42 = arith.constant dense<0.000000e+00> : vector<64x32xf32>
    %147 = tpu.matmul %144, %146, %cst_42 {dimension_numbers = #tpu.dot_dimension_numbers<[1], [0], [0], [1], [0, 0, 1, 1], [], []>} : vector<64x32xbf16>, vector<32x32xbf16>, vector<64x32xf32> -> vector<64x32xf32>
    %c8 = arith.constant 8 : index
    %c0_43 = arith.constant 0 : index
    %148 = vector.load %arg2[%c8, %c0_43] : memref<24x32xf32, #tpu.memory_space<vmem>>, vector<1x32xf32>
    %149 = vector.broadcast %148 : vector<1x32xf32> to vector<64x32xf32>
    %150 = arith.addf %147, %149 : vector<64x32xf32>
    %151 = arith.addf %48, %150 : vector<64x32xf32>
    %c9 = arith.constant 9 : index
    %c0_44 = arith.constant 0 : index
    %152 = vector.load %arg2[%c9, %c0_44] : memref<24x32xf32, #tpu.memory_space<vmem>>, vector<1x32xf32>
    %c10 = arith.constant 10 : index
    %c0_45 = arith.constant 0 : index
    %153 = vector.load %arg2[%c10, %c0_45] : memref<24x32xf32, #tpu.memory_space<vmem>>, vector<1x32xf32>
    %cst_46 = arith.constant dense<0.000000e+00> : vector<64xf32>
    %154 = vector.multi_reduction <add>, %151, %cst_46 [1] : vector<64x32xf32> to vector<64xf32>
    %155 = vector.shape_cast %154 : vector<64xf32> to vector<64x1xf32>
    %cst_47 = arith.constant 3.200000e+01 : f32
    %156 = vector.broadcast %cst_47 : f32 to vector<64x1xf32>
    %157 = arith.divf %155, %156 : vector<64x1xf32>
    %158 = vector.broadcast %157 : vector<64x1xf32> to vector<64x32xf32>
    %159 = arith.subf %151, %158 : vector<64x32xf32>
    %160 = arith.mulf %159, %159 : vector<64x32xf32>
    %cst_48 = arith.constant dense<0.000000e+00> : vector<64xf32>
    %161 = vector.multi_reduction <add>, %160, %cst_48 [1] : vector<64x32xf32> to vector<64xf32>
    %162 = vector.shape_cast %161 : vector<64xf32> to vector<64x1xf32>
    %cst_49 = arith.constant 3.200000e+01 : f32
    %163 = vector.broadcast %cst_49 : f32 to vector<64x1xf32>
    %164 = arith.divf %162, %163 : vector<64x1xf32>
    %165 = vector.broadcast %157 : vector<64x1xf32> to vector<64x32xf32>
    %166 = arith.subf %151, %165 : vector<64x32xf32>
    %cst_50 = arith.constant 9.99999974E-6 : f32
    %167 = vector.broadcast %cst_50 : f32 to vector<64x1xf32>
    %168 = arith.addf %164, %167 : vector<64x1xf32>
    %169 = math.rsqrt %168 : vector<64x1xf32>
    %170 = vector.broadcast %169 : vector<64x1xf32> to vector<64x32xf32>
    %171 = arith.mulf %166, %170 : vector<64x32xf32>
    %172 = vector.broadcast %152 : vector<1x32xf32> to vector<64x32xf32>
    %173 = arith.mulf %171, %172 : vector<64x32xf32>
    %174 = vector.broadcast %153 : vector<1x32xf32> to vector<64x32xf32>
    %175 = arith.addf %173, %174 : vector<64x32xf32>
    %176 = arith.truncf %175 : vector<64x32xf32> to vector<64x32xbf16>
    %c0_51 = arith.constant 0 : index
    %c0_52 = arith.constant 0 : index
    %177 = vector.load %arg7[%c0_51, %c0_52] : memref<32x64xbf16, #tpu.memory_space<vmem>>, vector<32x64xbf16>
    %cst_53 = arith.constant dense<0.000000e+00> : vector<64x64xf32>
    %178 = tpu.matmul %176, %177, %cst_53 {dimension_numbers = #tpu.dot_dimension_numbers<[1], [0], [0], [1], [0, 0, 1, 1], [], []>} : vector<64x32xbf16>, vector<32x64xbf16>, vector<64x64xf32> -> vector<64x64xf32>
    %179 = vector.extract_strided_slice %178 {offsets = [0, 0], sizes = [64, 32], strides = [1, 1]} : vector<64x64xf32> to vector<64x32xf32>
    %c11 = arith.constant 11 : index
    %c0_54 = arith.constant 0 : index
    %180 = vector.load %arg2[%c11, %c0_54] : memref<24x32xf32, #tpu.memory_space<vmem>>, vector<1x32xf32>
    %181 = vector.broadcast %180 : vector<1x32xf32> to vector<64x32xf32>
    %182 = arith.addf %179, %181 : vector<64x32xf32>
    %183 = vector.extract_strided_slice %178 {offsets = [0, 32], sizes = [64, 32], strides = [1, 1]} : vector<64x64xf32> to vector<64x32xf32>
    %c12 = arith.constant 12 : index
    %c0_55 = arith.constant 0 : index
    %184 = vector.load %arg2[%c12, %c0_55] : memref<24x32xf32, #tpu.memory_space<vmem>>, vector<1x32xf32>
    %185 = vector.broadcast %184 : vector<1x32xf32> to vector<64x32xf32>
    %186 = arith.addf %183, %185 : vector<64x32xf32>
    %187 = arith.negf %186 : vector<64x32xf32>
    %188 = math.exp %187 : vector<64x32xf32>
    %cst_56 = arith.constant 1.000000e+00 : f32
    %189 = vector.broadcast %cst_56 : f32 to vector<64x32xf32>
    %190 = arith.addf %189, %188 : vector<64x32xf32>
    %191 = arith.divf %189, %190 : vector<64x32xf32>
    %192 = arith.mulf %182, %191 : vector<64x32xf32>
    %cst_57 = arith.constant 0.000000e+00 : f32
    %193 = vector.broadcast %cst_57 : f32 to vector<4x16x32xf32>
    %c0_58 = arith.constant 0 : index
    %c0_59 = arith.constant 0 : index
    %c0_60 = arith.constant 0 : index
    %194 = vector.load %arg11[%c0_58, %c0_59, %c0_60] : memref<4x48x32xf32, #tpu.memory_space<vmem>>, vector<4x16x32xf32>
    tpu.vector_store %arg11[%c0_58, %c0_59, %c0_60], %193 {strides = array<i32>} : memref<4x48x32xf32, #tpu.memory_space<vmem>>, vector<4x16x32xf32>,
    %cst_61 = arith.constant 0.000000e+00 : f32
    %195 = vector.broadcast %cst_61 : f32 to vector<4x16x32xf32>
    %c0_62 = arith.constant 0 : index
    %c32 = arith.constant 32 : index
    %c0_63 = arith.constant 0 : index
    %196 = vector.load %arg11[%c0_62, %c32, %c0_63] : memref<4x48x32xf32, #tpu.memory_space<vmem>>, vector<4x16x32xf32>
    tpu.vector_store %arg11[%c0_62, %c32, %c0_63], %195 {strides = array<i32>} : memref<4x48x32xf32, #tpu.memory_space<vmem>>, vector<4x16x32xf32>,
    %197 = vector.shape_cast %192 : vector<64x32xf32> to vector<4x16x32xf32>
    %c0_64 = arith.constant 0 : index
    %c16 = arith.constant 16 : index
    %c0_65 = arith.constant 0 : index
    %198 = vector.load %arg11[%c0_64, %c16, %c0_65] : memref<4x48x32xf32, #tpu.memory_space<vmem>>, vector<4x16x32xf32>
    tpu.vector_store %arg11[%c0_64, %c16, %c0_65], %197 {strides = array<i32>} : memref<4x48x32xf32, #tpu.memory_space<vmem>>, vector<4x16x32xf32>,
    %cst_66 = arith.constant 0.000000e+00 : f32
    %199 = vector.broadcast %cst_66 : f32 to vector<4x16x32xf32>
    %c0_67 = arith.constant 0 : index
    %c1_68 = arith.constant 1 : index
    %c0_69 = arith.constant 0 : index
    %200 = vector.load %arg11[%c0_67, %c1_68, %c0_69] : memref<4x48x32xf32, #tpu.memory_space<vmem>>, vector<4x16x32xf32>
    %c0_70 = arith.constant 0 : index
    %c0_71 = arith.constant 0 : index
    %201 = vector.load %arg9[%c0_70, %c0_71] : memref<31x32xf32, #tpu.memory_space<vmem>>, vector<1x32xf32>
    %202 = vector.shape_cast %201 : vector<1x32xf32> to vector<1x1x32xf32>
    %203 = vector.broadcast %202 : vector<1x1x32xf32> to vector<4x16x32xf32>
    %204 = arith.mulf %200, %203 : vector<4x16x32xf32>
    %205 = arith.addf %199, %204 : vector<4x16x32xf32>
    %c0_72 = arith.constant 0 : index
    %c2_73 = arith.constant 2 : index
    %c0_74 = arith.constant 0 : index
    %206 = vector.load %arg11[%c0_72, %c2_73, %c0_74] : memref<4x48x32xf32, #tpu.memory_space<vmem>>, vector<4x16x32xf32>
    %c1_75 = arith.constant 1 : index
    %c0_76 = arith.constant 0 : index
    %207 = vector.load %arg9[%c1_75, %c0_76] : memref<31x32xf32, #tpu.memory_space<vmem>>, vector<1x32xf32>
    %208 = vector.shape_cast %207 : vector<1x32xf32> to vector<1x1x32xf32>
    %209 = vector.broadcast %208 : vector<1x1x32xf32> to vector<4x16x32xf32>
    %210 = arith.mulf %206, %209 : vector<4x16x32xf32>
    %211 = arith.addf %205, %210 : vector<4x16x32xf32>
    %c0_77 = arith.constant 0 : index
    %c3_78 = arith.constant 3 : index
    %c0_79 = arith.constant 0 : index
    %212 = vector.load %arg11[%c0_77, %c3_78, %c0_79] : memref<4x48x32xf32, #tpu.memory_space<vmem>>, vector<4x16x32xf32>
    %c2_80 = arith.constant 2 : index
    %c0_81 = arith.constant 0 : index
    %213 = vector.load %arg9[%c2_80, %c0_81] : memref<31x32xf32, #tpu.memory_space<vmem>>, vector<1x32xf32>
    %214 = vector.shape_cast %213 : vector<1x32xf32> to vector<1x1x32xf32>
    %215 = vector.broadcast %214 : vector<1x1x32xf32> to vector<4x16x32xf32>
    %216 = arith.mulf %212, %215 : vector<4x16x32xf32>
    %217 = arith.addf %211, %216 : vector<4x16x32xf32>
    %c0_82 = arith.constant 0 : index
    %c4_83 = arith.constant 4 : index
    %c0_84 = arith.constant 0 : index
    %218 = vector.load %arg11[%c0_82, %c4_83, %c0_84] : memref<4x48x32xf32, #tpu.memory_space<vmem>>, vector<4x16x32xf32>
    %c3_85 = arith.constant 3 : index
    %c0_86 = arith.constant 0 : index
    %219 = vector.load %arg9[%c3_85, %c0_86] : memref<31x32xf32, #tpu.memory_space<vmem>>, vector<1x32xf32>
    %220 = vector.shape_cast %219 : vector<1x32xf32> to vector<1x1x32xf32>
    %221 = vector.broadcast %220 : vector<1x1x32xf32> to vector<4x16x32xf32>
    %222 = arith.mulf %218, %221 : vector<4x16x32xf32>
    %223 = arith.addf %217, %222 : vector<4x16x32xf32>
    %c0_87 = arith.constant 0 : index
    %c5_88 = arith.constant 5 : index
    %c0_89 = arith.constant 0 : index
    %224 = vector.load %arg11[%c0_87, %c5_88, %c0_89] : memref<4x48x32xf32, #tpu.memory_space<vmem>>, vector<4x16x32xf32>
    %c4_90 = arith.constant 4 : index
    %c0_91 = arith.constant 0 : index
    %225 = vector.load %arg9[%c4_90, %c0_91] : memref<31x32xf32, #tpu.memory_space<vmem>>, vector<1x32xf32>
    %226 = vector.shape_cast %225 : vector<1x32xf32> to vector<1x1x32xf32>
    %227 = vector.broadcast %226 : vector<1x1x32xf32> to vector<4x16x32xf32>
    %228 = arith.mulf %224, %227 : vector<4x16x32xf32>
    %229 = arith.addf %223, %228 : vector<4x16x32xf32>
    %c0_92 = arith.constant 0 : index
    %c6_93 = arith.constant 6 : index
    %c0_94 = arith.constant 0 : index
    %230 = vector.load %arg11[%c0_92, %c6_93, %c0_94] : memref<4x48x32xf32, #tpu.memory_space<vmem>>, vector<4x16x32xf32>
    %c5_95 = arith.constant 5 : index
    %c0_96 = arith.constant 0 : index
    %231 = vector.load %arg9[%c5_95, %c0_96] : memref<31x32xf32, #tpu.memory_space<vmem>>, vector<1x32xf32>
    %232 = vector.shape_cast %231 : vector<1x32xf32> to vector<1x1x32xf32>
    %233 = vector.broadcast %232 : vector<1x1x32xf32> to vector<4x16x32xf32>
    %234 = arith.mulf %230, %233 : vector<4x16x32xf32>
    %235 = arith.addf %229, %234 : vector<4x16x32xf32>
    %c0_97 = arith.constant 0 : index
    %c7_98 = arith.constant 7 : index
    %c0_99 = arith.constant 0 : index
    %236 = vector.load %arg11[%c0_97, %c7_98, %c0_99] : memref<4x48x32xf32, #tpu.memory_space<vmem>>, vector<4x16x32xf32>
    %c6_100 = arith.constant 6 : index
    %c0_101 = arith.constant 0 : index
    %237 = vector.load %arg9[%c6_100, %c0_101] : memref<31x32xf32, #tpu.memory_space<vmem>>, vector<1x32xf32>
    %238 = vector.shape_cast %237 : vector<1x32xf32> to vector<1x1x32xf32>
    %239 = vector.broadcast %238 : vector<1x1x32xf32> to vector<4x16x32xf32>
    %240 = arith.mulf %236, %239 : vector<4x16x32xf32>
    %241 = arith.addf %235, %240 : vector<4x16x32xf32>
    %c0_102 = arith.constant 0 : index
    %c8_103 = arith.constant 8 : index
    %c0_104 = arith.constant 0 : index
    %242 = vector.load %arg11[%c0_102, %c8_103, %c0_104] : memref<4x48x32xf32, #tpu.memory_space<vmem>>, vector<4x16x32xf32>
    %c7_105 = arith.constant 7 : index
    %c0_106 = arith.constant 0 : index
    %243 = vector.load %arg9[%c7_105, %c0_106] : memref<31x32xf32, #tpu.memory_space<vmem>>, vector<1x32xf32>
    %244 = vector.shape_cast %243 : vector<1x32xf32> to vector<1x1x32xf32>
    %245 = vector.broadcast %244 : vector<1x1x32xf32> to vector<4x16x32xf32>
    %246 = arith.mulf %242, %245 : vector<4x16x32xf32>
    %247 = arith.addf %241, %246 : vector<4x16x32xf32>
    %c0_107 = arith.constant 0 : index
    %c9_108 = arith.constant 9 : index
    %c0_109 = arith.constant 0 : index
    %248 = vector.load %arg11[%c0_107, %c9_108, %c0_109] : memref<4x48x32xf32, #tpu.memory_space<vmem>>, vector<4x16x32xf32>
    %c8_110 = arith.constant 8 : index
    %c0_111 = arith.constant 0 : index
    %249 = vector.load %arg9[%c8_110, %c0_111] : memref<31x32xf32, #tpu.memory_space<vmem>>, vector<1x32xf32>
    %250 = vector.shape_cast %249 : vector<1x32xf32> to vector<1x1x32xf32>
    %251 = vector.broadcast %250 : vector<1x1x32xf32> to vector<4x16x32xf32>
    %252 = arith.mulf %248, %251 : vector<4x16x32xf32>
    %253 = arith.addf %247, %252 : vector<4x16x32xf32>
    %c0_112 = arith.constant 0 : index
    %c10_113 = arith.constant 10 : index
    %c0_114 = arith.constant 0 : index
    %254 = vector.load %arg11[%c0_112, %c10_113, %c0_114] : memref<4x48x32xf32, #tpu.memory_space<vmem>>, vector<4x16x32xf32>
    %c9_115 = arith.constant 9 : index
    %c0_116 = arith.constant 0 : index
    %255 = vector.load %arg9[%c9_115, %c0_116] : memref<31x32xf32, #tpu.memory_space<vmem>>, vector<1x32xf32>
    %256 = vector.shape_cast %255 : vector<1x32xf32> to vector<1x1x32xf32>
    %257 = vector.broadcast %256 : vector<1x1x32xf32> to vector<4x16x32xf32>
    %258 = arith.mulf %254, %257 : vector<4x16x32xf32>
    %259 = arith.addf %253, %258 : vector<4x16x32xf32>
    %c0_117 = arith.constant 0 : index
    %c11_118 = arith.constant 11 : index
    %c0_119 = arith.constant 0 : index
    %260 = vector.load %arg11[%c0_117, %c11_118, %c0_119] : memref<4x48x32xf32, #tpu.memory_space<vmem>>, vector<4x16x32xf32>
    %c10_120 = arith.constant 10 : index
    %c0_121 = arith.constant 0 : index
    %261 = vector.load %arg9[%c10_120, %c0_121] : memref<31x32xf32, #tpu.memory_space<vmem>>, vector<1x32xf32>
    %262 = vector.shape_cast %261 : vector<1x32xf32> to vector<1x1x32xf32>
    %263 = vector.broadcast %262 : vector<1x1x32xf32> to vector<4x16x32xf32>
    %264 = arith.mulf %260, %263 : vector<4x16x32xf32>
    %265 = arith.addf %259, %264 : vector<4x16x32xf32>
    %c0_122 = arith.constant 0 : index
    %c12_123 = arith.constant 12 : index
    %c0_124 = arith.constant 0 : index
    %266 = vector.load %arg11[%c0_122, %c12_123, %c0_124] : memref<4x48x32xf32, #tpu.memory_space<vmem>>, vector<4x16x32xf32>
    %c11_125 = arith.constant 11 : index
    %c0_126 = arith.constant 0 : index
    %267 = vector.load %arg9[%c11_125, %c0_126] : memref<31x32xf32, #tpu.memory_space<vmem>>, vector<1x32xf32>
    %268 = vector.shape_cast %267 : vector<1x32xf32> to vector<1x1x32xf32>
    %269 = vector.broadcast %268 : vector<1x1x32xf32> to vector<4x16x32xf32>
    %270 = arith.mulf %266, %269 : vector<4x16x32xf32>
    %271 = arith.addf %265, %270 : vector<4x16x32xf32>
    %c0_127 = arith.constant 0 : index
    %c13 = arith.constant 13 : index
    %c0_128 = arith.constant 0 : index
    %272 = vector.load %arg11[%c0_127, %c13, %c0_128] : memref<4x48x32xf32, #tpu.memory_space<vmem>>, vector<4x16x32xf32>
    %c12_129 = arith.constant 12 : index
    %c0_130 = arith.constant 0 : index
    %273 = vector.load %arg9[%c12_129, %c0_130] : memref<31x32xf32, #tpu.memory_space<vmem>>, vector<1x32xf32>
    %274 = vector.shape_cast %273 : vector<1x32xf32> to vector<1x1x32xf32>
    %275 = vector.broadcast %274 : vector<1x1x32xf32> to vector<4x16x32xf32>
    %276 = arith.mulf %272, %275 : vector<4x16x32xf32>
    %277 = arith.addf %271, %276 : vector<4x16x32xf32>
    %c0_131 = arith.constant 0 : index
    %c14 = arith.constant 14 : index
    %c0_132 = arith.constant 0 : index
    %278 = vector.load %arg11[%c0_131, %c14, %c0_132] : memref<4x48x32xf32, #tpu.memory_space<vmem>>, vector<4x16x32xf32>
    %c13_133 = arith.constant 13 : index
    %c0_134 = arith.constant 0 : index
    %279 = vector.load %arg9[%c13_133, %c0_134] : memref<31x32xf32, #tpu.memory_space<vmem>>, vector<1x32xf32>
    %280 = vector.shape_cast %279 : vector<1x32xf32> to vector<1x1x32xf32>
    %281 = vector.broadcast %280 : vector<1x1x32xf32> to vector<4x16x32xf32>
    %282 = arith.mulf %278, %281 : vector<4x16x32xf32>
    %283 = arith.addf %277, %282 : vector<4x16x32xf32>
    %c0_135 = arith.constant 0 : index
    %c15 = arith.constant 15 : index
    %c0_136 = arith.constant 0 : index
    %284 = vector.load %arg11[%c0_135, %c15, %c0_136] : memref<4x48x32xf32, #tpu.memory_space<vmem>>, vector<4x16x32xf32>
    %c14_137 = arith.constant 14 : index
    %c0_138 = arith.constant 0 : index
    %285 = vector.load %arg9[%c14_137, %c0_138] : memref<31x32xf32, #tpu.memory_space<vmem>>, vector<1x32xf32>
    %286 = vector.shape_cast %285 : vector<1x32xf32> to vector<1x1x32xf32>
    %287 = vector.broadcast %286 : vector<1x1x32xf32> to vector<4x16x32xf32>
    %288 = arith.mulf %284, %287 : vector<4x16x32xf32>
    %289 = arith.addf %283, %288 : vector<4x16x32xf32>
    %c0_139 = arith.constant 0 : index
    %c16_140 = arith.constant 16 : index
    %c0_141 = arith.constant 0 : index
    %290 = vector.load %arg11[%c0_139, %c16_140, %c0_141] : memref<4x48x32xf32, #tpu.memory_space<vmem>>, vector<4x16x32xf32>
    %c15_142 = arith.constant 15 : index
    %c0_143 = arith.constant 0 : index
    %291 = vector.load %arg9[%c15_142, %c0_143] : memref<31x32xf32, #tpu.memory_space<vmem>>, vector<1x32xf32>
    %292 = vector.shape_cast %291 : vector<1x32xf32> to vector<1x1x32xf32>
    %293 = vector.broadcast %292 : vector<1x1x32xf32> to vector<4x16x32xf32>
    %294 = arith.mulf %290, %293 : vector<4x16x32xf32>
    %295 = arith.addf %289, %294 : vector<4x16x32xf32>
    %c0_144 = arith.constant 0 : index
    %c17 = arith.constant 17 : index
    %c0_145 = arith.constant 0 : index
    %296 = vector.load %arg11[%c0_144, %c17, %c0_145] : memref<4x48x32xf32, #tpu.memory_space<vmem>>, vector<4x16x32xf32>
    %c16_146 = arith.constant 16 : index
    %c0_147 = arith.constant 0 : index
    %297 = vector.load %arg9[%c16_146, %c0_147] : memref<31x32xf32, #tpu.memory_space<vmem>>, vector<1x32xf32>
    %298 = vector.shape_cast %297 : vector<1x32xf32> to vector<1x1x32xf32>
    %299 = vector.broadcast %298 : vector<1x1x32xf32> to vector<4x16x32xf32>
    %300 = arith.mulf %296, %299 : vector<4x16x32xf32>
    %301 = arith.addf %295, %300 : vector<4x16x32xf32>
    %c0_148 = arith.constant 0 : index
    %c18 = arith.constant 18 : index
    %c0_149 = arith.constant 0 : index
    %302 = vector.load %arg11[%c0_148, %c18, %c0_149] : memref<4x48x32xf32, #tpu.memory_space<vmem>>, vector<4x16x32xf32>
    %c17_150 = arith.constant 17 : index
    %c0_151 = arith.constant 0 : index
    %303 = vector.load %arg9[%c17_150, %c0_151] : memref<31x32xf32, #tpu.memory_space<vmem>>, vector<1x32xf32>
    %304 = vector.shape_cast %303 : vector<1x32xf32> to vector<1x1x32xf32>
    %305 = vector.broadcast %304 : vector<1x1x32xf32> to vector<4x16x32xf32>
    %306 = arith.mulf %302, %305 : vector<4x16x32xf32>
    %307 = arith.addf %301, %306 : vector<4x16x32xf32>
    %c0_152 = arith.constant 0 : index
    %c19 = arith.constant 19 : index
    %c0_153 = arith.constant 0 : index
    %308 = vector.load %arg11[%c0_152, %c19, %c0_153] : memref<4x48x32xf32, #tpu.memory_space<vmem>>, vector<4x16x32xf32>
    %c18_154 = arith.constant 18 : index
    %c0_155 = arith.constant 0 : index
    %309 = vector.load %arg9[%c18_154, %c0_155] : memref<31x32xf32, #tpu.memory_space<vmem>>, vector<1x32xf32>
    %310 = vector.shape_cast %309 : vector<1x32xf32> to vector<1x1x32xf32>
    %311 = vector.broadcast %310 : vector<1x1x32xf32> to vector<4x16x32xf32>
    %312 = arith.mulf %308, %311 : vector<4x16x32xf32>
    %313 = arith.addf %307, %312 : vector<4x16x32xf32>
    %c0_156 = arith.constant 0 : index
    %c20 = arith.constant 20 : index
    %c0_157 = arith.constant 0 : index
    %314 = vector.load %arg11[%c0_156, %c20, %c0_157] : memref<4x48x32xf32, #tpu.memory_space<vmem>>, vector<4x16x32xf32>
    %c19_158 = arith.constant 19 : index
    %c0_159 = arith.constant 0 : index
    %315 = vector.load %arg9[%c19_158, %c0_159] : memref<31x32xf32, #tpu.memory_space<vmem>>, vector<1x32xf32>
    %316 = vector.shape_cast %315 : vector<1x32xf32> to vector<1x1x32xf32>
    %317 = vector.broadcast %316 : vector<1x1x32xf32> to vector<4x16x32xf32>
    %318 = arith.mulf %314, %317 : vector<4x16x32xf32>
    %319 = arith.addf %313, %318 : vector<4x16x32xf32>
    %c0_160 = arith.constant 0 : index
    %c21 = arith.constant 21 : index
    %c0_161 = arith.constant 0 : index
    %320 = vector.load %arg11[%c0_160, %c21, %c0_161] : memref<4x48x32xf32, #tpu.memory_space<vmem>>, vector<4x16x32xf32>
    %c20_162 = arith.constant 20 : index
    %c0_163 = arith.constant 0 : index
    %321 = vector.load %arg9[%c20_162, %c0_163] : memref<31x32xf32, #tpu.memory_space<vmem>>, vector<1x32xf32>
    %322 = vector.shape_cast %321 : vector<1x32xf32> to vector<1x1x32xf32>
    %323 = vector.broadcast %322 : vector<1x1x32xf32> to vector<4x16x32xf32>
    %324 = arith.mulf %320, %323 : vector<4x16x32xf32>
    %325 = arith.addf %319, %324 : vector<4x16x32xf32>
    %c0_164 = arith.constant 0 : index
    %c22 = arith.constant 22 : index
    %c0_165 = arith.constant 0 : index
    %326 = vector.load %arg11[%c0_164, %c22, %c0_165] : memref<4x48x32xf32, #tpu.memory_space<vmem>>, vector<4x16x32xf32>
    %c21_166 = arith.constant 21 : index
    %c0_167 = arith.constant 0 : index
    %327 = vector.load %arg9[%c21_166, %c0_167] : memref<31x32xf32, #tpu.memory_space<vmem>>, vector<1x32xf32>
    %328 = vector.shape_cast %327 : vector<1x32xf32> to vector<1x1x32xf32>
    %329 = vector.broadcast %328 : vector<1x1x32xf32> to vector<4x16x32xf32>
    %330 = arith.mulf %326, %329 : vector<4x16x32xf32>
    %331 = arith.addf %325, %330 : vector<4x16x32xf32>
    %c0_168 = arith.constant 0 : index
    %c23 = arith.constant 23 : index
    %c0_169 = arith.constant 0 : index
    %332 = vector.load %arg11[%c0_168, %c23, %c0_169] : memref<4x48x32xf32, #tpu.memory_space<vmem>>, vector<4x16x32xf32>
    %c22_170 = arith.constant 22 : index
    %c0_171 = arith.constant 0 : index
    %333 = vector.load %arg9[%c22_170, %c0_171] : memref<31x32xf32, #tpu.memory_space<vmem>>, vector<1x32xf32>
    %334 = vector.shape_cast %333 : vector<1x32xf32> to vector<1x1x32xf32>
    %335 = vector.broadcast %334 : vector<1x1x32xf32> to vector<4x16x32xf32>
    %336 = arith.mulf %332, %335 : vector<4x16x32xf32>
    %337 = arith.addf %331, %336 : vector<4x16x32xf32>
    %c0_172 = arith.constant 0 : index
    %c24 = arith.constant 24 : index
    %c0_173 = arith.constant 0 : index
    %338 = vector.load %arg11[%c0_172, %c24, %c0_173] : memref<4x48x32xf32, #tpu.memory_space<vmem>>, vector<4x16x32xf32>
    %c23_174 = arith.constant 23 : index
    %c0_175 = arith.constant 0 : index
    %339 = vector.load %arg9[%c23_174, %c0_175] : memref<31x32xf32, #tpu.memory_space<vmem>>, vector<1x32xf32>
    %340 = vector.shape_cast %339 : vector<1x32xf32> to vector<1x1x32xf32>
    %341 = vector.broadcast %340 : vector<1x1x32xf32> to vector<4x16x32xf32>
    %342 = arith.mulf %338, %341 : vector<4x16x32xf32>
    %343 = arith.addf %337, %342 : vector<4x16x32xf32>
    %c0_176 = arith.constant 0 : index
    %c25 = arith.constant 25 : index
    %c0_177 = arith.constant 0 : index
    %344 = vector.load %arg11[%c0_176, %c25, %c0_177] : memref<4x48x32xf32, #tpu.memory_space<vmem>>, vector<4x16x32xf32>
    %c24_178 = arith.constant 24 : index
    %c0_179 = arith.constant 0 : index
    %345 = vector.load %arg9[%c24_178, %c0_179] : memref<31x32xf32, #tpu.memory_space<vmem>>, vector<1x32xf32>
    %346 = vector.shape_cast %345 : vector<1x32xf32> to vector<1x1x32xf32>
    %347 = vector.broadcast %346 : vector<1x1x32xf32> to vector<4x16x32xf32>
    %348 = arith.mulf %344, %347 : vector<4x16x32xf32>
    %349 = arith.addf %343, %348 : vector<4x16x32xf32>
    %c0_180 = arith.constant 0 : index
    %c26 = arith.constant 26 : index
    %c0_181 = arith.constant 0 : index
    %350 = vector.load %arg11[%c0_180, %c26, %c0_181] : memref<4x48x32xf32, #tpu.memory_space<vmem>>, vector<4x16x32xf32>
    %c25_182 = arith.constant 25 : index
    %c0_183 = arith.constant 0 : index
    %351 = vector.load %arg9[%c25_182, %c0_183] : memref<31x32xf32, #tpu.memory_space<vmem>>, vector<1x32xf32>
    %352 = vector.shape_cast %351 : vector<1x32xf32> to vector<1x1x32xf32>
    %353 = vector.broadcast %352 : vector<1x1x32xf32> to vector<4x16x32xf32>
    %354 = arith.mulf %350, %353 : vector<4x16x32xf32>
    %355 = arith.addf %349, %354 : vector<4x16x32xf32>
    %c0_184 = arith.constant 0 : index
    %c27 = arith.constant 27 : index
    %c0_185 = arith.constant 0 : index
    %356 = vector.load %arg11[%c0_184, %c27, %c0_185] : memref<4x48x32xf32, #tpu.memory_space<vmem>>, vector<4x16x32xf32>
    %c26_186 = arith.constant 26 : index
    %c0_187 = arith.constant 0 : index
    %357 = vector.load %arg9[%c26_186, %c0_187] : memref<31x32xf32, #tpu.memory_space<vmem>>, vector<1x32xf32>
    %358 = vector.shape_cast %357 : vector<1x32xf32> to vector<1x1x32xf32>
    %359 = vector.broadcast %358 : vector<1x1x32xf32> to vector<4x16x32xf32>
    %360 = arith.mulf %356, %359 : vector<4x16x32xf32>
    %361 = arith.addf %355, %360 : vector<4x16x32xf32>
    %c0_188 = arith.constant 0 : index
    %c28 = arith.constant 28 : index
    %c0_189 = arith.constant 0 : index
    %362 = vector.load %arg11[%c0_188, %c28, %c0_189] : memref<4x48x32xf32, #tpu.memory_space<vmem>>, vector<4x16x32xf32>
    %c27_190 = arith.constant 27 : index
    %c0_191 = arith.constant 0 : index
    %363 = vector.load %arg9[%c27_190, %c0_191] : memref<31x32xf32, #tpu.memory_space<vmem>>, vector<1x32xf32>
    %364 = vector.shape_cast %363 : vector<1x32xf32> to vector<1x1x32xf32>
    %365 = vector.broadcast %364 : vector<1x1x32xf32> to vector<4x16x32xf32>
    %366 = arith.mulf %362, %365 : vector<4x16x32xf32>
    %367 = arith.addf %361, %366 : vector<4x16x32xf32>
    %c0_192 = arith.constant 0 : index
    %c29 = arith.constant 29 : index
    %c0_193 = arith.constant 0 : index
    %368 = vector.load %arg11[%c0_192, %c29, %c0_193] : memref<4x48x32xf32, #tpu.memory_space<vmem>>, vector<4x16x32xf32>
    %c28_194 = arith.constant 28 : index
    %c0_195 = arith.constant 0 : index
    %369 = vector.load %arg9[%c28_194, %c0_195] : memref<31x32xf32, #tpu.memory_space<vmem>>, vector<1x32xf32>
    %370 = vector.shape_cast %369 : vector<1x32xf32> to vector<1x1x32xf32>
    %371 = vector.broadcast %370 : vector<1x1x32xf32> to vector<4x16x32xf32>
    %372 = arith.mulf %368, %371 : vector<4x16x32xf32>
    %373 = arith.addf %367, %372 : vector<4x16x32xf32>
    %c0_196 = arith.constant 0 : index
    %c30 = arith.constant 30 : index
    %c0_197 = arith.constant 0 : index
    %374 = vector.load %arg11[%c0_196, %c30, %c0_197] : memref<4x48x32xf32, #tpu.memory_space<vmem>>, vector<4x16x32xf32>
    %c29_198 = arith.constant 29 : index
    %c0_199 = arith.constant 0 : index
    %375 = vector.load %arg9[%c29_198, %c0_199] : memref<31x32xf32, #tpu.memory_space<vmem>>, vector<1x32xf32>
    %376 = vector.shape_cast %375 : vector<1x32xf32> to vector<1x1x32xf32>
    %377 = vector.broadcast %376 : vector<1x1x32xf32> to vector<4x16x32xf32>
    %378 = arith.mulf %374, %377 : vector<4x16x32xf32>
    %379 = arith.addf %373, %378 : vector<4x16x32xf32>
    %c0_200 = arith.constant 0 : index
    %c31 = arith.constant 31 : index
    %c0_201 = arith.constant 0 : index
    %380 = vector.load %arg11[%c0_200, %c31, %c0_201] : memref<4x48x32xf32, #tpu.memory_space<vmem>>, vector<4x16x32xf32>
    %c30_202 = arith.constant 30 : index
    %c0_203 = arith.constant 0 : index
    %381 = vector.load %arg9[%c30_202, %c0_203] : memref<31x32xf32, #tpu.memory_space<vmem>>, vector<1x32xf32>
    %382 = vector.shape_cast %381 : vector<1x32xf32> to vector<1x1x32xf32>
    %383 = vector.broadcast %382 : vector<1x1x32xf32> to vector<4x16x32xf32>
    %384 = arith.mulf %380, %383 : vector<4x16x32xf32>
    %385 = arith.addf %379, %384 : vector<4x16x32xf32>
    %386 = vector.shape_cast %385 : vector<4x16x32xf32> to vector<64x32xf32>
    %c13_204 = arith.constant 13 : index
    %c0_205 = arith.constant 0 : index
    %387 = vector.load %arg2[%c13_204, %c0_205] : memref<24x32xf32, #tpu.memory_space<vmem>>, vector<1x32xf32>
    %388 = vector.broadcast %387 : vector<1x32xf32> to vector<64x32xf32>
    %389 = arith.addf %386, %388 : vector<64x32xf32>
    %c14_206 = arith.constant 14 : index
    %c0_207 = arith.constant 0 : index
    %390 = vector.load %arg2[%c14_206, %c0_207] : memref<24x32xf32, #tpu.memory_space<vmem>>, vector<1x32xf32>
    %391 = vector.broadcast %390 : vector<1x32xf32> to vector<64x32xf32>
    %392 = arith.mulf %389, %391 : vector<64x32xf32>
    %c15_208 = arith.constant 15 : index
    %c0_209 = arith.constant 0 : index
    %393 = vector.load %arg2[%c15_208, %c0_209] : memref<24x32xf32, #tpu.memory_space<vmem>>, vector<1x32xf32>
    %394 = vector.broadcast %393 : vector<1x32xf32> to vector<64x32xf32>
    %395 = arith.addf %392, %394 : vector<64x32xf32>
    %396 = arith.negf %395 : vector<64x32xf32>
    %397 = math.exp %396 : vector<64x32xf32>
    %cst_210 = arith.constant 1.000000e+00 : f32
    %398 = vector.broadcast %cst_210 : f32 to vector<64x32xf32>
    %399 = arith.addf %398, %397 : vector<64x32xf32>
    %400 = arith.divf %398, %399 : vector<64x32xf32>
    %401 = arith.mulf %395, %400 : vector<64x32xf32>
    %402 = arith.truncf %401 : vector<64x32xf32> to vector<64x32xbf16>
    %c1_211 = arith.constant 1 : index
    %c0_212 = arith.constant 0 : index
    %c0_213 = arith.constant 0 : index
    %403 = vector.load %arg8[%c1_211, %c0_212, %c0_213] : memref<2x32x32xbf16, #tpu.memory_space<vmem>>, vector<1x32x32xbf16>
    %404 = vector.shape_cast %403 : vector<1x32x32xbf16> to vector<32x32xbf16>
    %cst_214 = arith.constant dense<0.000000e+00> : vector<64x32xf32>
    %405 = tpu.matmul %402, %404, %cst_214 {dimension_numbers = #tpu.dot_dimension_numbers<[1], [0], [0], [1], [0, 0, 1, 1], [], []>} : vector<64x32xbf16>, vector<32x32xbf16>, vector<64x32xf32> -> vector<64x32xf32>
    %c16_215 = arith.constant 16 : index
    %c0_216 = arith.constant 0 : index
    %406 = vector.load %arg2[%c16_215, %c0_216] : memref<24x32xf32, #tpu.memory_space<vmem>>, vector<1x32xf32>
    %407 = vector.broadcast %406 : vector<1x32xf32> to vector<64x32xf32>
    %408 = arith.addf %405, %407 : vector<64x32xf32>
    %409 = arith.addf %151, %408 : vector<64x32xf32>
    %c17_217 = arith.constant 17 : index
    %c0_218 = arith.constant 0 : index
    %410 = vector.load %arg2[%c17_217, %c0_218] : memref<24x32xf32, #tpu.memory_space<vmem>>, vector<1x32xf32>
    %c18_219 = arith.constant 18 : index
    %c0_220 = arith.constant 0 : index
    %411 = vector.load %arg2[%c18_219, %c0_220] : memref<24x32xf32, #tpu.memory_space<vmem>>, vector<1x32xf32>
    %cst_221 = arith.constant dense<0.000000e+00> : vector<64xf32>
    %412 = vector.multi_reduction <add>, %409, %cst_221 [1] : vector<64x32xf32> to vector<64xf32>
    %413 = vector.shape_cast %412 : vector<64xf32> to vector<64x1xf32>
    %cst_222 = arith.constant 3.200000e+01 : f32
    %414 = vector.broadcast %cst_222 : f32 to vector<64x1xf32>
    %415 = arith.divf %413, %414 : vector<64x1xf32>
    %416 = vector.broadcast %415 : vector<64x1xf32> to vector<64x32xf32>
    %417 = arith.subf %409, %416 : vector<64x32xf32>
    %418 = arith.mulf %417, %417 : vector<64x32xf32>
    %cst_223 = arith.constant dense<0.000000e+00> : vector<64xf32>
    %419 = vector.multi_reduction <add>, %418, %cst_223 [1] : vector<64x32xf32> to vector<64xf32>
    %420 = vector.shape_cast %419 : vector<64xf32> to vector<64x1xf32>
    %cst_224 = arith.constant 3.200000e+01 : f32
    %421 = vector.broadcast %cst_224 : f32 to vector<64x1xf32>
    %422 = arith.divf %420, %421 : vector<64x1xf32>
    %423 = vector.broadcast %415 : vector<64x1xf32> to vector<64x32xf32>
    %424 = arith.subf %409, %423 : vector<64x32xf32>
    %cst_225 = arith.constant 9.99999974E-6 : f32
    %425 = vector.broadcast %cst_225 : f32 to vector<64x1xf32>
    %426 = arith.addf %422, %425 : vector<64x1xf32>
    %427 = math.rsqrt %426 : vector<64x1xf32>
    %428 = vector.broadcast %427 : vector<64x1xf32> to vector<64x32xf32>
    %429 = arith.mulf %424, %428 : vector<64x32xf32>
    %430 = vector.broadcast %410 : vector<1x32xf32> to vector<64x32xf32>
    %431 = arith.mulf %429, %430 : vector<64x32xf32>
    %432 = vector.broadcast %411 : vector<1x32xf32> to vector<64x32xf32>
    %433 = arith.addf %431, %432 : vector<64x32xf32>
    %434 = arith.truncf %433 : vector<64x32xf32> to vector<64x32xbf16>
    %c1_226 = arith.constant 1 : index
    %c0_227 = arith.constant 0 : index
    %c0_228 = arith.constant 0 : index
    %435 = vector.load %arg4[%c1_226, %c0_227, %c0_228] : memref<2x32x128xbf16, #tpu.memory_space<vmem>>, vector<1x32x128xbf16>
    %436 = vector.shape_cast %435 : vector<1x32x128xbf16> to vector<32x128xbf16>
    %cst_229 = arith.constant dense<0.000000e+00> : vector<64x128xf32>
    %437 = tpu.matmul %434, %436, %cst_229 {dimension_numbers = #tpu.dot_dimension_numbers<[1], [0], [0], [1], [0, 0, 1, 1], [], []>} : vector<64x32xbf16>, vector<32x128xbf16>, vector<64x128xf32> -> vector<64x128xf32>
    %c1_230 = arith.constant 1 : index
    %c0_231 = arith.constant 0 : index
    %438 = vector.load %arg3[%c1_230, %c0_231] : memref<2x128xf32, #tpu.memory_space<vmem>>, vector<1x128xf32>
    %439 = vector.broadcast %438 : vector<1x128xf32> to vector<64x128xf32>
    %440 = arith.addf %437, %439 : vector<64x128xf32>
    %441 = arith.negf %440 : vector<64x128xf32>
    %442 = math.exp %441 : vector<64x128xf32>
    %cst_232 = arith.constant 1.000000e+00 : f32
    %443 = vector.broadcast %cst_232 : f32 to vector<64x128xf32>
    %444 = arith.addf %443, %442 : vector<64x128xf32>
    %445 = arith.divf %443, %444 : vector<64x128xf32>
    %446 = arith.mulf %440, %445 : vector<64x128xf32>
    %447 = arith.truncf %446 : vector<64x128xf32> to vector<64x128xbf16>
    %c1_233 = arith.constant 1 : index
    %c0_234 = arith.constant 0 : index
    %c0_235 = arith.constant 0 : index
    %448 = vector.load %arg5[%c1_233, %c0_234, %c0_235] : memref<2x128x32xbf16, #tpu.memory_space<vmem>>, vector<1x128x32xbf16>
    %449 = vector.shape_cast %448 : vector<1x128x32xbf16> to vector<128x32xbf16>
    %cst_236 = arith.constant dense<0.000000e+00> : vector<64x32xf32>
    %450 = tpu.matmul %447, %449, %cst_236 {dimension_numbers = #tpu.dot_dimension_numbers<[1], [0], [0], [1], [0, 0, 1, 1], [], []>} : vector<64x128xbf16>, vector<128x32xbf16>, vector<64x32xf32> -> vector<64x32xf32>
    %c19_237 = arith.constant 19 : index
    %c0_238 = arith.constant 0 : index
    %451 = vector.load %arg2[%c19_237, %c0_238] : memref<24x32xf32, #tpu.memory_space<vmem>>, vector<1x32xf32>
    %452 = vector.broadcast %451 : vector<1x32xf32> to vector<64x32xf32>
    %453 = arith.addf %450, %452 : vector<64x32xf32>
    %cst_239 = arith.constant 5.000000e-01 : f32
    %454 = vector.broadcast %cst_239 : f32 to vector<64x32xf32>
    %455 = arith.mulf %454, %453 : vector<64x32xf32>
    %456 = arith.addf %409, %455 : vector<64x32xf32>
    %c20_240 = arith.constant 20 : index
    %c0_241 = arith.constant 0 : index
    %457 = vector.load %arg2[%c20_240, %c0_241] : memref<24x32xf32, #tpu.memory_space<vmem>>, vector<1x32xf32>
    %c21_242 = arith.constant 21 : index
    %c0_243 = arith.constant 0 : index
    %458 = vector.load %arg2[%c21_242, %c0_243] : memref<24x32xf32, #tpu.memory_space<vmem>>, vector<1x32xf32>
    %cst_244 = arith.constant dense<0.000000e+00> : vector<64xf32>
    %459 = vector.multi_reduction <add>, %456, %cst_244 [1] : vector<64x32xf32> to vector<64xf32>
    %460 = vector.shape_cast %459 : vector<64xf32> to vector<64x1xf32>
    %cst_245 = arith.constant 3.200000e+01 : f32
    %461 = vector.broadcast %cst_245 : f32 to vector<64x1xf32>
    %462 = arith.divf %460, %461 : vector<64x1xf32>
    %463 = vector.broadcast %462 : vector<64x1xf32> to vector<64x32xf32>
    %464 = arith.subf %456, %463 : vector<64x32xf32>
    %465 = arith.mulf %464, %464 : vector<64x32xf32>
    %cst_246 = arith.constant dense<0.000000e+00> : vector<64xf32>
    %466 = vector.multi_reduction <add>, %465, %cst_246 [1] : vector<64x32xf32> to vector<64xf32>
    %467 = vector.shape_cast %466 : vector<64xf32> to vector<64x1xf32>
    %cst_247 = arith.constant 3.200000e+01 : f32
    %468 = vector.broadcast %cst_247 : f32 to vector<64x1xf32>
    %469 = arith.divf %467, %468 : vector<64x1xf32>
    %470 = vector.broadcast %462 : vector<64x1xf32> to vector<64x32xf32>
    %471 = arith.subf %456, %470 : vector<64x32xf32>
    %cst_248 = arith.constant 9.99999974E-6 : f32
    %472 = vector.broadcast %cst_248 : f32 to vector<64x1xf32>
    %473 = arith.addf %469, %472 : vector<64x1xf32>
    %474 = math.rsqrt %473 : vector<64x1xf32>
    %475 = vector.broadcast %474 : vector<64x1xf32> to vector<64x32xf32>
    %476 = arith.mulf %471, %475 : vector<64x32xf32>
    %477 = vector.broadcast %457 : vector<1x32xf32> to vector<64x32xf32>
    %478 = arith.mulf %476, %477 : vector<64x32xf32>
    %479 = vector.broadcast %458 : vector<1x32xf32> to vector<64x32xf32>
    %480 = arith.addf %478, %479 : vector<64x32xf32>
    %481 = vector.shape_cast %480 : vector<64x32xf32> to vector<4x16x32xf32>
    %c0_249 = arith.constant 0 : index
    %c0_250 = arith.constant 0 : index
    %c0_251 = arith.constant 0 : index
    %482 = vector.load %arg10[%c0_249, %c0_250, %c0_251] : memref<4x16x32xf32, #tpu.memory_space<vmem>>, vector<4x16x32xf32>
    tpu.vector_store %arg10[%c0_249, %c0_250, %c0_251], %481 {strides = array<i32>} : memref<4x16x32xf32, #tpu.memory_space<vmem>>, vector<4x16x32xf32>,
    return
  }
  func.func @transform_0(%arg0: i32) -> (i32, i32, i32) {
    %c0_i32 = arith.constant 0 : i32
    %c0_i32_0 = arith.constant 0 : i32
    %c0_i32_1 = arith.constant 0 : i32
    return %arg0, %c0_i32, %c0_i32_0 : i32, i32, i32
  }
  func.func @transform_1(%arg0: i32) -> (i32, i32) {
    %c0_i32 = arith.constant 0 : i32
    %c0_i32_0 = arith.constant 0 : i32
    %c0_i32_1 = arith.constant 0 : i32
    return %c0_i32, %c0_i32_0 : i32, i32
  }
  func.func @transform_2(%arg0: i32) -> (i32, i32) {
    %c0_i32 = arith.constant 0 : i32
    %c0_i32_0 = arith.constant 0 : i32
    %c0_i32_1 = arith.constant 0 : i32
    return %c0_i32, %c0_i32_0 : i32, i32
  }
  func.func @transform_3(%arg0: i32) -> (i32, i32, i32) {
    %c0_i32 = arith.constant 0 : i32
    %c0_i32_0 = arith.constant 0 : i32
    %c0_i32_1 = arith.constant 0 : i32
    %c0_i32_2 = arith.constant 0 : i32
    return %c0_i32, %c0_i32_0, %c0_i32_1 : i32, i32, i32
  }
  func.func @transform_4(%arg0: i32) -> (i32, i32, i32) {
    %c0_i32 = arith.constant 0 : i32
    %c0_i32_0 = arith.constant 0 : i32
    %c0_i32_1 = arith.constant 0 : i32
    %c0_i32_2 = arith.constant 0 : i32
    return %c0_i32, %c0_i32_0, %c0_i32_1 : i32, i32, i32
  }
  func.func @transform_5(%arg0: i32) -> (i32, i32) {
    %c0_i32 = arith.constant 0 : i32
    %c0_i32_0 = arith.constant 0 : i32
    %c0_i32_1 = arith.constant 0 : i32
    return %c0_i32, %c0_i32_0 : i32, i32
  }
  func.func @transform_6(%arg0: i32) -> (i32, i32) {
    %c0_i32 = arith.constant 0 : i32
    %c0_i32_0 = arith.constant 0 : i32
    %c0_i32_1 = arith.constant 0 : i32
    return %c0_i32, %c0_i32_0 : i32, i32
  }
  func.func @transform_7(%arg0: i32) -> (i32, i32, i32) {
    %c0_i32 = arith.constant 0 : i32
    %c0_i32_0 = arith.constant 0 : i32
    %c0_i32_1 = arith.constant 0 : i32
    %c0_i32_2 = arith.constant 0 : i32
    return %c0_i32, %c0_i32_0, %c0_i32_1 : i32, i32, i32
  }
  func.func @transform_8(%arg0: i32) -> (i32, i32) {
    %c0_i32 = arith.constant 0 : i32
    %c0_i32_0 = arith.constant 0 : i32
    %c0_i32_1 = arith.constant 0 : i32
    return %c0_i32, %c0_i32_0 : i32, i32
  }
  func.func @transform_9(%arg0: i32) -> (i32, i32, i32) {
    %c0_i32 = arith.constant 0 : i32
    %c0_i32_0 = arith.constant 0 : i32
    %c0_i32_1 = arith.constant 0 : i32
    return %arg0, %c0_i32, %c0_i32_0 : i32, i32, i32
  }
}

</mosaic_0001>

<bundles_post_ra>
// kernel: tpu_custom_call.1
= control target key start
LH: loop header
LB: loop body
LE: loop exit
PB: predicated region body
PF: predicated region fallthrough
CT: control target
= control target key end

     0   :  { %s10978_s0 = inlined_call_operand.vmem [shape: f32[8,16,32], index: 0, kind: input, shape index: {}]   ;;  %s10979_s1 = inlined_call_operand.hbm [shape: f32[24,32], index: 1, kind: input, shape index: {}]   ;;  %s10980_s2 = inlined_call_operand.vmem [shape: f32[2,128], index: 2, kind: input, shape index: {}]   ;;  %s10981_s3 = inlined_call_operand.vmem [shape: bf16[2,32,128], index: 3, kind: input, shape index: {}]   ;;  %s10982_s4 = inlined_call_operand.vmem [shape: bf16[2,128,32], index: 4, kind: input, shape index: {}]   ;;  %s10983_s5 = inlined_call_operand.vmem [shape: bf16[32,96], index: 5, kind: input, shape index: {}]   ;;  %s10984_s6 = inlined_call_operand.hbm [shape: bf16[32,64], index: 6, kind: input, shape index: {}]   ;;  %s10985_s7 = inlined_call_operand.hbm [shape: bf16[2,32,32], index: 7, kind: input, shape index: {}]   ;;  %s10986_s8 = inlined_call_operand.hbm [shape: f32[31,32], index: 8, kind: input, shape index: {}]   ;;  %s10987_s9 = inlined_call_operand.hbm [shape: f32[8,16,32], index: 9, kind: output, shape index: {}]  }
   0x1   :  { %11018 = sst [smem:[#allocation64_spill]] %s10984_s6 }
   0x2   :  { %14 = vsyncpa [#allocation4], 0 }
   0x3   :  { %15 = vsyncpa [#allocation7], 0 }
   0x4   :  { %16 = vsyncpa [#allocation10], 0 }
   0x5   :  { %17 = vsyncpa [#allocation5], 0 }
   0x6   :  { %19 = vsyncpa [#allocation5 + $0x1], 0  ;;  %s8775_s30 = smov 0   ;;  %s8777_s10 = smov 0  }
   0x7   :  { %s8779_s11 = smov 0   ;;  %s8781_s12 = smov 0  }
   0x8 LB: > { %11019 = sst [smem:[#allocation16_spill]] %s8699_s11  ;;  %s8796_s13 = sadd.s32 4294967295, %s8703_s12   ;;  %s8703_s12 = sphi %s8781_s12, %s11146_s12   ;;  %s8699_s11 = sphi %s8779_s11, %s11148_s11   ;;  %s8695_s10 = sphi %s8777_s10, %s11150_s10   ;;  %s8691_s30 = sphi %s8775_s30, %s11149_s30  }
   0x9   : > { %s6742_s14 = sadd.s32 4294967294, %s8703_s12   ;;  %s8800_s15 = sadd.s32 1, %s8703_s12  }
   0xa   : > { %11020 = sst [smem:[#allocation17_spill]] %s8800_s15  ;;  %s226_s16 = sadd.s32 1, %s8699_s11 }
   0xb   : > { %s223_s17 = ssub.s32 %s8703_s12, %s8800_s15  ;;  %p236_p0 = scmp.ne.s32.totalorder %s8699_s11, %s8695_s10 }
   0xc   : > { %p224_p1 = scmp.eq.s32.totalorder %s223_s17, 0  ;;  %p237_p2 = scmp.eq.s32.totalorder %s8796_s13, 1 }
   0xd   : > { %p242_p3 = scmp.ne.s32.totalorder %s8695_s10, %s8691_s30  ;;  %p243_p4 = scmp.eq.s32.totalorder %s6742_s14, 1 }
   0xe   : > { %s8811_s18 = scalar_select %p224_p1, %s8699_s11, %s226_s16  }
   0xf   : > { %p8813_p5 = por %p237_p2, %p236_p0  ;;  %p8817_p6 = por %p243_p4, %p242_p3 }
  0x10   : > { %11021 = sst [smem:[#allocation18_spill]] %s8811_s18  ;;  %p6743_p7 = scmp.ge.s32.totalorder %s8703_s12, 1 }
  0x11   : > { %s11022_s19 = scalar_select %p8813_p5, 1, 0 }
  0x12   : > { %s11023_s20 = scalar_select %p8817_p6, 1, 0 }
  0x13   : > { %p250_p8 = scmp.lt.s32.totalorder %s8703_s12, 3  ;;  %p10988_p9 = scmp.eq.s32.totalorder %s8796_s13, 0 }
  0x14   : > { %11024 = sst [smem:[#allocation19_spill]] %s11023_s20  ;;  %s8705_s22 = smov [#allocation6]  }
  0x15   : > { %p8824_p10 = pnand %p6743_p7, %p250_p8  ;;  %s287_s23 = sshll.u32 %s8705_s22, 4  ;;  %s288_s23 = int_to_ptr.vmem [resolvable:$true] %s287_s23 }
  0x16   : > { %s8706_s25 = smov [#allocation3]   ;;  %s11027_s6 = sld [smem:[#allocation64_spill]] }
  0x17   : > { %s11025_s21 = scalar_select %p8824_p10, 1, 0 }
  0x18   : > { %p7732_p11 = pneg %p8824_p10  ;;  %s262_s26 = sshll.u32 %s8706_s25, 4  ;;  %s8836_s26 = int_to_ptr.vmem [resolvable:$true] %s262_s26 }
  0x1a   : > { %p8832_p12 = pnand %p10988_p9, %p7732_p11 }
  0x1c   : > { %s8517_s29 = scalar_lea.hbm %s11027_s6, 256  ;;  %p8846_p0 = pneg %p8832_p12 }
  0x1d   : > { %p8518_p13 = scmp.ne.s32.totalorder %s11027_s6, %s8517_s29  ;;  %p8524_p3 = scmp.lt.u32.totalorder %s8517_s29, %s11027_s6 }
  0x1f   : > { %p8520_p1 = pnand %p8846_p0, %p8518_p13 }
  0x21   : > { %p8521_p2 = pneg %p8520_p1 }
  0x23   : > { %p8526_p4 = pnand %p8524_p3, %p8521_p2 }
  0x25   : > { %8529 = shalt.err (!%p8526_p4)
}
  0x26   : > { %s8530_s27 = scalar_lea.vmem %s288_s23, 256  ;;  %p8538_p9 = scmp.lt.s32.totalorder %s288_s23, %s288_s23 }
  0x27   : > { %p8531_p7 = scmp.ne.s32.totalorder %s288_s23, %s8530_s27  ;;  %p8539_p6 = scmp.lt.s32.totalorder %s8530_s27, %s8530_s27 }
  0x29   : > { %p8533_p8 = pnand %p8531_p7, %p8846_p0  ;;  %p8540_p5 = por %p8539_p6, %p8538_p9 }
  0x2b   : > { %p8534_p11 = pneg %p8533_p8 }
  0x2d   : > { %p8541_p10 = pnand %p8540_p5, %p8534_p11 }
  0x2f   : > { %8544 = shalt.err (!%p8541_p10)
}
  0x30   : > { %s10995_s28 = smov 64   ;;  %s10996_s14 = smov 4  }
  0x31   : > { %7738 = dma.hbm_to_vmem [thread:$0]  (!%p8832_p12), %s11027_s6, 256, %s288_s23, [#allocation7], %s10995_s28, %s10995_s28, %s10996_s14  }
  0x32   : > { %s8545_s18 = scalar_lea.hbm %s10979_s1, 384 }
  0x33   : > { %p8546_p5 = scmp.ne.s32.totalorder %s10979_s1, %s8545_s18  ;;  %p8552_p10 = scmp.lt.u32.totalorder %s8545_s18, %s10979_s1 }
  0x35   : > { %p8548_p6 = pnand %p8546_p5, %p8846_p0 }
  0x37   : > { %p8549_p9 = pneg %p8548_p6 }
  0x39   : > { %p8554_p13 = pnand %p8552_p10, %p8549_p9 }
  0x3b   : > { %8557 = shalt.err (!%p8554_p13)
}
  0x3c   : > { %s8558_s23 = scalar_lea.vmem %s8836_s26, 384  ;;  %p8566_p4 = scmp.lt.s32.totalorder %s8836_s26, %s8836_s26 }
  0x3d   : > { %p8559_p1 = scmp.ne.s32.totalorder %s8836_s26, %s8558_s23  ;;  %p8567_p7 = scmp.lt.s32.totalorder %s8558_s23, %s8558_s23 }
  0x3f   : > { %p8561_p2 = pnand %p8559_p1, %p8846_p0  ;;  %p8568_p8 = por %p8567_p7, %p8566_p4 }
  0x41   : > { %p8562_p3 = pneg %p8561_p2 }
  0x43   : > { %p8569_p11 = pnand %p8568_p8, %p8562_p3 }
  0x45   : > { %8572 = shalt.err (!%p8569_p11)
}
  0x46   : > { %s10997_s11 = smov 128   ;;  %s8710_s15 = smov 8  }
  0x47   : > { %7735 = dma.hbm_to_vmem [thread:$0]  (!%p8832_p12), %s10979_s1, 384, %s8836_s26, [#allocation4], %s10997_s11, %s10997_s11, %s8710_s15  }
  0x48   : > { %s8711_s29 = smov [#allocation8]   ;;  %s8712_s22 = smov [#allocation9]  }
  0x49   : > { %s300_s16 = sshll.u32 %s8711_s29, 4  ;;  %s313_s25 = sshll.u32 %s8712_s22, 4  ;;  %s301_s16 = int_to_ptr.vmem [resolvable:$true] %s300_s16  ;;  %s8891_s25 = int_to_ptr.vmem [resolvable:$true] %s313_s25 }
  0x4a   : > { %s8573_s28 = scalar_lea.hbm %s10985_s7, 512 }
  0x4b   : > { %p8574_p5 = scmp.ne.s32.totalorder %s10985_s7, %s8573_s28  ;;  %p8580_p10 = scmp.lt.u32.totalorder %s8573_s28, %s10985_s7 }
  0x4d   : > { %p8576_p6 = pnand %p8574_p5, %p8846_p0 }
  0x4f   : > { %p8577_p9 = pneg %p8576_p6 }
  0x51   : > { %p8582_p13 = pnand %p8580_p10, %p8577_p9 }
  0x53   : > { %8585 = shalt.err (!%p8582_p13)
}
  0x54   : > { %s8586_s20 = scalar_lea.vmem %s301_s16, 512  ;;  %p8594_p4 = scmp.lt.s32.totalorder %s301_s16, %s301_s16 }
  0x55   : > { %p8587_p1 = scmp.ne.s32.totalorder %s301_s16, %s8586_s20  ;;  %p8595_p7 = scmp.lt.s32.totalorder %s8586_s20, %s8586_s20 }
  0x57   : > { %p8589_p2 = pnand %p8587_p1, %p8846_p0  ;;  %p8596_p8 = por %p8595_p7, %p8594_p4 }
  0x59   : > { %p8590_p3 = pneg %p8589_p2 }
  0x5b   : > { %p8597_p11 = pnand %p8596_p8, %p8590_p3 }
  0x5d   : > { %8600 = shalt.err (!%p8597_p11)
}
  0x5e   : > { %s11029_s6 = smov 4   ;;  %s11030_s14 = smov 64  }
  0x5f   : > { %7741 = dma.hbm_to_vmem [thread:$0]  (!%p8832_p12), %s10985_s7, 512, %s301_s16, [#allocation7], %s11030_s14, %s11030_s14, %s11029_s6  }
  0x60   : > { %s8601_s23 = scalar_lea.hbm %s10986_s8, 512 }
  0x61   : > { %p8602_p5 = scmp.ne.s32.totalorder %s10986_s8, %s8601_s23  ;;  %p8608_p10 = scmp.lt.u32.totalorder %s8601_s23, %s10986_s8 }
  0x63   : > { %p8604_p6 = pnand %p8602_p5, %p8846_p0 }
  0x65   : > { %p8605_p9 = pneg %p8604_p6 }
  0x67   : > { %p8610_p13 = pnand %p8608_p10, %p8605_p9 }
  0x69   : > { %8613 = shalt.err (!%p8610_p13)
}
  0x6a   : > { %s8614_s16 = scalar_lea.vmem %s8891_s25, 512  ;;  %p8622_p4 = scmp.lt.s32.totalorder %s8891_s25, %s8891_s25 }
  0x6b   : > { %p8615_p1 = scmp.ne.s32.totalorder %s8891_s25, %s8614_s16  ;;  %p8623_p7 = scmp.lt.s32.totalorder %s8614_s16, %s8614_s16 }
  0x6d   : > { %p8617_p2 = pnand %p8615_p1, %p8846_p0  ;;  %p8624_p8 = por %p8623_p7, %p8622_p4 }
  0x6f   : > { %p8618_p3 = pneg %p8617_p2 }
  0x71   : > { %p8625_p11 = pnand %p8624_p8, %p8618_p3 }
  0x73   : > { %8628 = shalt.err (!%p8625_p11)
}
  0x74   : > { %s11031_s11 = smov 128   ;;  %p11032_p5 = scmp.ne.s32.totalorder %s11025_s21, 0 }
  0x75   : > { %7744 = dma.hbm_to_vmem [thread:$0]  (!%p8832_p12), %s10986_s8, 512, %s8891_s25, [#allocation10], %s11031_s11, %s11031_s11, %s8710_s15  }
  0x76   : > { %339 = sbr.rel (%p11032_p5) target bundleno = 5167 (0x142f), region = 56 }
  0x7d   : > { %p11033_p0 = scmp.eq.s32.totalorder %s8796_s13, 0 }
  0x7f   : > { %8674 = dma.done.wait (%p11033_p0), [#allocation4], 384   ;;  %p11034_p6 = pmov %p11033_p0 }
  0x80   : > { %p11035_p9 = pmov %p11033_p0 }
  0x81   : > { %8676 = vsyncadd (%p11034_p6), [#allocation4], 4294966912 }
  0x82   : > { %8678 = dma.done.wait (%p11035_p9), [#allocation7], 768   ;;  %p11036_p10 = pmov %p11033_p0 }
  0x83   : > { %p11037_p13 = pmov %p11033_p0 }
  0x84   : > { %8680 = vsyncadd (%p11036_p10), [#allocation7], 4294966528 }
  0x85   : > { %8682 = dma.done.wait (%p11037_p13), [#allocation10], 512   ;;  %p11038_p12 = pmov %p11033_p0 }
  0x86   : > { %s6755_s21 = sshll.u32 %s8796_s13, 2  ;;  %vm407_vm0 = vcmask 261120   ;;  %v8149_v56 = vld [vmem:[%s10981_s3] sm:$0xff]   ;;  %v8150_v57 = vld [vmem:[%s10981_s3 + $0x8] sm:$0xff]   ;;  %s8713_s11 = smov 32   ;;  %vm1295_vm1 = vcmask 64512  }
  0x87   : > { %8684 = vsyncadd (%p11038_p12), [#allocation10], 4294966784  ;;  %p389_p1 = scmp.lt.s32.totalorder %s6755_s21, 7  ;;  %7210 = vmatprep.subr.bf16.mxu1 %v8149_v56  ;;  %s8714_s6 = smov 120   ;;  %vm2684_vm3 = vcmask 130048   ;;  %vm4541_vm4 = vcmask 195584  }
  0x88   : > { %7211 = vmatpush3.bf16.msra.mxu1 %v8149_v56  ;;  %s8715_s14 = smov 104   ;;  %vm9266_vm2 = vmpackc.low %vm1295_vm1, %vm1295_vm1  ;;  %s8718_s17 = smov 64  }
  0x89   : > { %s11152_s21 = smov (!%p389_p1, %s6755_s21), 7  ;;  %7212 = vmatprep.subr.bf16.mxu1 %v8150_v57  ;;  %s8719_s15 = smov 8  }
  0x8a   : > { %s7019_s24 = sshll.u32 %s11152_s21, 4  ;;  %s8716_s21 = smov 112  }
  0x8b   : > { %s393_s25 = scalar_lea.vmem %s10978_s0, %s7019_s24  ;;  %s8717_s24 = smov 96  }
  0x8c   : > { %v8958_v0 = vld [vmem:[%s393_s25] sm:$0xff]  ;;  %v8960_v1 = vld [vmem:[%s393_s25 + $0x10] sm:$0xff]  ;;  %v8962_v2 = vld [vmem:[%s393_s25 + $0x8] sm:$0xff]  ;;  %7213 = vmatpush3.bf16.msra.mxu1 %v8150_v57  ;;  %s8721_s29 = smov 24   ;;  %s385_s20 = sand.u32 1, %s8695_s10  }
  0x8d   : > { %v408_v3 = vsel %vm407_vm0, %v8958_v0, 0.0  ;;  %v414_v4 = vsel %vm407_vm0, %v8960_v1, 0.0  ;;  %v8968_v5 = vld [vmem:[%s393_s25 + $0x18] sm:$0xff]  ;;  %v8970_v6 = vld [vmem:[%s393_s25 + $0x20] sm:$0xff]  ;;  %v8972_v7 = vld [vmem:[%s393_s25 + $0x28] sm:$0xff]  ;;  %v411_v8 = vsel %vm407_vm0, %v8962_v2, 0.0 }
  0x8e   : > { %409 = vadd.xlane.f32.xlu0 %v408_v3  ;;  %415 = vadd.xlane.f32.xlu1 %v414_v4  ;;  %v417_v9 = vsel %vm407_vm0, %v8968_v5, 0.0  ;;  %v420_v10 = vsel %vm407_vm0, %v8970_v6, 0.0  ;;  %v423_v11 = vsel %vm407_vm0, %v8972_v7, 0.0  ;;  %v8982_v12 = vld [vmem:[%s393_s25 + $0x30] sm:$0xff]  ;;  %v8984_v13 = vld [vmem:[%s393_s25 + $0x38] sm:$0xff]  ;;  %s8720_s25 = smov 16  }
  0x8f   : > { %v426_v14 = vsel %vm407_vm0, %v8982_v12, 0.0  ;;  %v429_v15 = vsel %vm407_vm0, %v8984_v13, 0.0  ;;  %s6754_s16 = sshll.u32 %s385_s20, 6  ;;  %p11143_p3 = scmp.ne.s32.totalorder %s11022_s19, 0 }
  0x92   : > { %412 = vadd.xlane.f32.xlu0 %v411_v8  ;;  %418 = vadd.xlane.f32.xlu1 %v417_v9 }
  0x96   : > { %421 = vadd.xlane.f32.xlu0 %v420_v10  ;;  %424 = vadd.xlane.f32.xlu1 %v423_v11 }
  0x9a   : > { %427 = vadd.xlane.f32.xlu0 %v426_v14  ;;  %430 = vadd.xlane.f32.xlu1 %v429_v15 }
 0x11b   : > { %v410_v16 = vpop.xlane.xlu0 %409  ;;  %v416_v17 = vpop.xlane.xlu1 %415 }
 0x11c   : > { %v433_v18 = vmul.f32 0.03125, %v410_v16  ;;  %v435_v19 = vmul.f32 0.03125, %v416_v17 }
 0x11e   : > { %v8991_v20 = vsub.f32 %v8958_v0, %v433_v18  ;;  %v8994_v21 = vsub.f32 %v8960_v1, %v435_v19 }
 0x11f   : > { %v413_v22 = vpop.xlane.xlu0 %412  ;;  %v419_v23 = vpop.xlane.xlu1 %418 }
 0x120   : > { %v434_v24 = vmul.f32 0.03125, %v413_v22  ;;  %v436_v25 = vmul.f32 0.03125, %v419_v23  ;;  %v449_v26 = vmul.f32 %v8991_v20, %v8991_v20  ;;  %v451_v27 = vmul.f32 %v8994_v21, %v8994_v21 }
 0x122   : > { %v9001_v28 = vsub.f32 %v8962_v2, %v434_v24  ;;  %v9004_v29 = vsub.f32 %v8968_v5, %v436_v25  ;;  %v457_v30 = vsel %vm407_vm0, %v449_v26, 0.0  ;;  %v463_v33 = vsel %vm407_vm0, %v451_v27, 0.0 }
 0x123   : > { %458 = vadd.xlane.f32.xlu0 %v457_v30  ;;  %v422_v31 = vpop.xlane.xlu0 %421  ;;  %v425_v32 = vpop.xlane.xlu1 %424 }
 0x124   : > { %v437_v34 = vmul.f32 0.03125, %v422_v31  ;;  %v438_v35 = vmul.f32 0.03125, %v425_v32  ;;  %v450_v36 = vmul.f32 %v9001_v28, %v9001_v28  ;;  %v452_v37 = vmul.f32 %v9004_v29, %v9004_v29  ;;  %v6758_v31 = vld [vmem:[#allocation3] ss:$0 sm:$0xff] }
 0x126   : > { %v9013_v38 = vsub.f32 %v8970_v6, %v437_v34  ;;  %v9016_v39 = vsub.f32 %v8972_v7, %v438_v35  ;;  %v460_v40 = vsel %vm407_vm0, %v450_v36, 0.0  ;;  %v466_v43 = vsel %vm407_vm0, %v452_v37, 0.0  ;;  %v6759_v37 = vld [vmem:[#allocation3 + $0x1] ss:$0 sm:$0xff] }
 0x127   : > { %464 = vadd.xlane.f32.xlu0 %v463_v33  ;;  %461 = vadd.xlane.f32.xlu1 %v460_v40  ;;  %v428_v41 = vpop.xlane.xlu0 %427  ;;  %v431_v42 = vpop.xlane.xlu1 %430 }
 0x128   : > { %v439_v44 = vmul.f32 0.03125, %v428_v41  ;;  %v440_v45 = vmul.f32 0.03125, %v431_v42  ;;  %v453_v46 = vmul.f32 %v9013_v38, %v9013_v38  ;;  %v454_v47 = vmul.f32 %v9016_v39, %v9016_v39 }
 0x12a   : > { %v9025_v48 = vsub.f32 %v8982_v12, %v439_v44  ;;  %v9028_v49 = vsub.f32 %v8984_v13, %v440_v45  ;;  %v469_v50 = vsel %vm407_vm0, %v453_v46, 0.0  ;;  %v472_v51 = vsel %vm407_vm0, %v454_v47, 0.0 }
 0x12b   : > { %467 = vadd.xlane.f32.xlu1 %v466_v43  ;;  %470 = vadd.xlane.f32.xlu0 %v469_v50 }
 0x12c   : > { %v455_v52 = vmul.f32 %v9025_v48, %v9025_v48  ;;  %v456_v53 = vmul.f32 %v9028_v49, %v9028_v49 }
 0x12e   : > { %v475_v54 = vsel %vm407_vm0, %v455_v52, 0.0  ;;  %v478_v55 = vsel %vm407_vm0, %v456_v53, 0.0 }
 0x12f   : > { %473 = vadd.xlane.f32.xlu1 %v472_v51  ;;  %476 = vadd.xlane.f32.xlu0 %v475_v54 }
 0x133   : > { %479 = vadd.xlane.f32.xlu1 %v478_v55 }
 0x1b0   : > { %v459_v58 = vpop.xlane.xlu0 %458 }
 0x1b1   : > { %v481_v59 = vmul.f32 0.03125, %v459_v58 }
 0x1b3   : > { %v489_v60 = vadd.f32 1e-05, %v481_v59 }
 0x1b4   : > { %v462_v61 = vpop.xlane.xlu1 %461  ;;  %v465_v62 = vpop.xlane.xlu0 %464 }
 0x1b5   : > { %8177 = vrsqrt.f32 %v489_v60  ;;  %v482_v63 = vmul.f32 0.03125, %v462_v61  ;;  %v483_v3 = vmul.f32 0.03125, %v465_v62 }
 0x1b7   : > { %v490_v4 = vadd.f32 1e-05, %v482_v63  ;;  %v491_v8 = vadd.f32 1e-05, %v483_v3 }
 0x1b8   : > { %v468_v9 = vpop.xlane.xlu1 %467  ;;  %v471_v10 = vpop.xlane.xlu0 %470 }
 0x1b9   : > { %8179 = vrsqrt.f32 %v490_v4  ;;  %v484_v11 = vmul.f32 0.03125, %v468_v9  ;;  %v485_v14 = vmul.f32 0.03125, %v471_v10  ;;  %v8154_v9 = vld [vmem:[%s10982_s4 + $0x18] sm:$0xff]   ;;  %v8155_v10 = vld [vmem:[%s10982_s4 + $0x20] sm:$0xff]  }
 0x1ba   : > { %8181 = vrsqrt.f32 %v491_v8  ;;  %v8153_v8 = vld [vmem:[%s10982_s4 + $0x10] sm:$0xff]  }
 0x1bb   : > { %v492_v15 = vadd.f32 1e-05, %v484_v11  ;;  %v493_v16 = vadd.f32 1e-05, %v485_v14  ;;  %v8156_v11 = vld [vmem:[%s10982_s4 + $0x28] sm:$0xff]   ;;  %v8157_v14 = vld [vmem:[%s10982_s4 + $0x30] sm:$0xff]  }
 0x1bc   : > { %v474_v17 = vpop.xlane.xlu1 %473  ;;  %v477_v18 = vpop.xlane.xlu0 %476 }
 0x1bd   : > { %8183 = vrsqrt.f32 %v492_v15  ;;  %v486_v19 = vmul.f32 0.03125, %v474_v17  ;;  %v487_v22 = vmul.f32 0.03125, %v477_v18  ;;  %v8158_v15 = vld [vmem:[%s10982_s4 + $0x38] sm:$0xff]  }
 0x1be   : > { %8185 = vrsqrt.f32 %v493_v16  ;;  %v6760_v16 = vld [vmem:[%s10980_s2] ss:$0 sm:$0xff] }
 0x1bf   : > { %v8178_v23 = vpop.eup %8177  ;;  %v494_v24 = vadd.f32 1e-05, %v486_v19  ;;  %v495_v25 = vadd.f32 1e-05, %v487_v22 }
 0x1c0   : > { %v480_v26 = vpop.xlane.xlu1 %479  ;;  %v505_v27 = vmul.f32 %v8178_v23, %v8991_v20 }
 0x1c1   : > { %8187 = vrsqrt.f32 %v494_v24  ;;  %v488_v30 = vmul.f32 0.03125, %v480_v26 }
 0x1c2   : > { %8189 = vrsqrt.f32 %v495_v25  ;;  %v517_v36 = vmul.f32 %v6758_v31, %v505_v27 }
 0x1c3   : > { %v8180_v32 = vpop.eup %8179  ;;  %v496_v33 = vadd.f32 1e-05, %v488_v30 }
 0x1c4   : > { %v8182_v34 = vpop.eup %8181  ;;  %v506_v35 = vmul.f32 %v8180_v32, %v9001_v28  ;;  %v529_v44 = vadd.f32 %v6759_v37, %v517_v36 }
 0x1c5   : > { %8191 = vrsqrt.f32 %v496_v33  ;;  %v507_v40 = vmul.f32 %v8182_v34, %v8994_v21 }
 0x1c6   : > { %v518_v41 = vmul.f32 %v6758_v31, %v506_v35 }
 0x1c7   : > { %v8184_v42 = vpop.eup %8183  ;;  %v519_v46 = vmul.f32 %v6758_v31, %v507_v40 }
 0x1c8   : > { %v8186_v43 = vpop.eup %8185  ;;  %v530_v45 = vadd.f32 %v6759_v37, %v518_v41  ;;  %v508_v20 = vmul.f32 %v8184_v42, %v9004_v29 }
 0x1c9   : > { %v509_v47 = vmul.f32 %v8186_v43, %v9013_v38  ;;  %v531_v28 = vadd.f32 %v6759_v37, %v519_v46 }
 0x1ca   : > { %v537_v50 = vpack.c.bf16 %v530_v45, %v529_v44  ;;  %v520_v51 = vmul.f32 %v6758_v31, %v508_v20 }
 0x1cb   : > { %v8188_v52 = vpop.eup %8187  ;;  %v521_v55 = vmul.f32 %v6758_v31, %v509_v47 }
 0x1cc   : > { %v8190_v53 = vpop.eup %8189  ;;  %7214 = vmatprep.mubr.msk.bf16.mxu1 %vm407_vm0, %v537_v50  ;;  %v532_v54 = vadd.f32 %v6759_v37, %v520_v51  ;;  %v510_v21 = vmul.f32 %v8188_v52, %v9016_v39 }
 0x1cd   : > { %v511_v56 = vmul.f32 %v8190_v53, %v9025_v48  ;;  %v533_v29 = vadd.f32 %v6759_v37, %v521_v55  ;;  %v8151_v48 = vld [vmem:[%s10982_s4] sm:$0xff]  }
 0x1ce   : > { %v538_v57 = vpack.c.bf16 %v532_v54, %v531_v28  ;;  %v522_v58 = vmul.f32 %v6758_v31, %v510_v21  ;;  %7222 = vmatprep.subr.bf16.mxu1 %v8151_v48 }
 0x1cf   : > { %v8192_v59 = vpop.eup %8191  ;;  %v523_v61 = vmul.f32 %v6758_v31, %v511_v56 }
 0x1d0   : > { %7215 = vmatmul.mubr.msk.bf16.vlgmr.msra.gmra.mrb[0].mxu1 %vm407_vm0, %v538_v57  ;;  %v534_v38 = vadd.f32 %v6759_v37, %v522_v58  ;;  %v512_v60 = vmul.f32 %v8192_v59, %v9028_v49  ;;  %v8152_v49 = vld [vmem:[%s10982_s4 + $0x8] sm:$0xff]  }
 0x1d1   : > { %v535_v3 = vadd.f32 %v6759_v37, %v523_v61  ;;  %7223 = vmatpush3.bf16.msra.mxu1 %v8151_v48 }
 0x1d2   : > { %v539_v62 = vpack.c.bf16 %v534_v38, %v533_v29  ;;  %v524_v63 = vmul.f32 %v6758_v31, %v512_v60  ;;  %7224 = vmatprep.subr.bf16.mxu1 %v8152_v49 }
 0x1d4   : > { %7218 = vmatprep.mubr.msk.bf16.mxu1 %vm407_vm0, %v539_v62  ;;  %v536_v4 = vadd.f32 %v6759_v37, %v524_v63 }
 0x1d5   : > { %7225 = vmatpush3.bf16.msra.mxu1 %v8152_v49 }
 0x1d6   : > { %v540_v39 = vpack.c.bf16 %v536_v4, %v535_v3  ;;  %7226 = vmatprep.subr.bf16.mxu1 %v8153_v8 }
 0x1d8   : > { %7219 = vmatmul.mubr.msk.bf16.gmra.mrb[4].mxu1 %vm407_vm0, %v540_v39 }
 0x1d9   : > { %7227 = vmatpush3.bf16.msra.mxu1 %v8153_v8 }
 0x1da   : > { %7228 = vmatprep.subr.bf16.mxu1 %v8154_v9 }
 0x1dd   : > { %7229 = vmatpush3.bf16.msra.mxu1 %v8154_v9 }
 0x1de   : > { %7230 = vmatprep.subr.bf16.mxu1 %v8155_v10 }
 0x1e1   : > { %7231 = vmatpush3.bf16.msra.mxu1 %v8155_v10 }
 0x1e2   : > { %7232 = vmatprep.subr.bf16.mxu1 %v8156_v11 }
 0x1e5   : > { %7233 = vmatpush3.bf16.msra.mxu1 %v8156_v11 }
 0x1e6   : > { %7234 = vmatprep.subr.bf16.mxu1 %v8157_v14 }
 0x1e9   : > { %7235 = vmatpush3.bf16.msra.mxu1 %v8157_v14 }
 0x1ea   : > { %7236 = vmatprep.subr.bf16.mxu1 %v8158_v15 }
 0x1ed   : > { %7237 = vmatpush3.bf16.msra.mxu1 %v8158_v15 }
 0x2a3   : > { %v7216_v17 = vpop.f32.mrb[0].mxu1 }
 0x2a4   : > { %v617_v18 = vadd.f32 %v7216_v17, %v6760_v16  ;;  %v608_v19 = vpop.f32.mrb[1].mxu1 }
 0x2a5   : > { %v609_v22 = vadd.f32 %v6760_v16, %v608_v19  ;;  %v7217_v23 = vpop.f32.mrb[2].mxu1 }
 0x2a6   : > { %v6769_v24 = vmul.f32 -1.442695, %v617_v18  ;;  %v620_v25 = vadd.f32 %v7217_v23, %v6760_v16  ;;  %v611_v26 = vpop.f32.mrb[3].mxu1 }
 0x2a7   : > { %v6767_v27 = vmul.f32 -1.442695, %v609_v22  ;;  %v612_v30 = vadd.f32 %v6760_v16, %v611_v26 }
 0x2a8   : > { %8193 = vpow2.f32 %v6769_v24  ;;  %v6770_v31 = vmul.f32 -1.442695, %v620_v25 }
 0x2a9   : > { %8195 = vpow2.f32 %v6767_v27  ;;  %v6768_v32 = vmul.f32 -1.442695, %v612_v30 }
 0x2aa   : > { %8197 = vpow2.f32 %v6770_v31 }
 0x2ab   : > { %8199 = vpow2.f32 %v6768_v32  ;;  %v7220_v33 = vpop.f32.mrb[4].mxu1 }
 0x2ac   : > { %v633_v34 = vadd.f32 %v7220_v33, %v6760_v16  ;;  %v624_v35 = vpop.f32.mrb[5].mxu1 }
 0x2ad   : > { %v625_v36 = vadd.f32 %v6760_v16, %v624_v35  ;;  %v7221_v37 = vpop.f32.mrb[6].mxu1 }
 0x2ae   : > { %v6773_v40 = vmul.f32 -1.442695, %v633_v34  ;;  %v636_v41 = vadd.f32 %v7221_v37, %v6760_v16  ;;  %v627_v42 = vpop.f32.mrb[7].mxu1 }
 0x2af   : > { %v6771_v43 = vmul.f32 -1.442695, %v625_v36  ;;  %v628_v44 = vadd.f32 %v6760_v16, %v627_v42 }
 0x2b0   : > { %8201 = vpow2.f32 %v6773_v40  ;;  %v6774_v45 = vmul.f32 -1.442695, %v636_v41 }
 0x2b1   : > { %8203 = vpow2.f32 %v6771_v43  ;;  %v6772_v20 = vmul.f32 -1.442695, %v628_v44 }
 0x2b2   : > { %v8194_v46 = vpop.eup %8193  ;;  %8205 = vpow2.f32 %v6774_v45 }
 0x2b3   : > { %v8196_v47 = vpop.eup %8195  ;;  %v665_v50 = vadd.f32 1.0, %v8194_v46  ;;  %8207 = vpow2.f32 %v6772_v20 }
 0x2b4   : > { %v8198_v51 = vpop.eup %8197  ;;  %v663_v52 = vadd.f32 1.0, %v8196_v47 }
 0x2b5   : > { %v8200_v53 = vpop.eup %8199  ;;  %8209 = vrcp.f32 %v665_v50  ;;  %v666_v28 = vadd.f32 1.0, %v8198_v51 }
 0x2b6   : > { %8211 = vrcp.f32 %v663_v52  ;;  %v664_v54 = vadd.f32 1.0, %v8200_v53 }
 0x2b7   : > { %8213 = vrcp.f32 %v666_v28 }
 0x2b8   : > { %8215 = vrcp.f32 %v664_v54 }
 0x2ba   : > { %v8202_v21 = vpop.eup %8201 }
 0x2bb   : > { %v8204_v55 = vpop.eup %8203  ;;  %v669_v56 = vadd.f32 1.0, %v8202_v21 }
 0x2bc   : > { %v8206_v57 = vpop.eup %8205  ;;  %v667_v58 = vadd.f32 1.0, %v8204_v55 }
 0x2bd   : > { %v8208_v59 = vpop.eup %8207  ;;  %8217 = vrcp.f32 %v669_v56  ;;  %v670_v29 = vadd.f32 1.0, %v8206_v57 }
 0x2be   : > { %8219 = vrcp.f32 %v667_v58  ;;  %v668_v38 = vadd.f32 1.0, %v8208_v59 }
 0x2bf   : > { %v8210_v60 = vpop.eup %8209  ;;  %8221 = vrcp.f32 %v670_v29 }
 0x2c0   : > { %v8212_v61 = vpop.eup %8211  ;;  %8223 = vrcp.f32 %v668_v38  ;;  %v689_v3 = vmul.f32 %v8210_v60, %v617_v18  ;;  %v6775_v18 = vld [vmem:[#allocation3 + $0x2] ss:$0 sm:$0xff] }
 0x2c1   : > { %v8214_v62 = vpop.eup %8213  ;;  %v687_v39 = vmul.f32 %v8212_v61, %v609_v22 }
 0x2c2   : > { %v8216_v63 = vpop.eup %8215  ;;  %v690_v4 = vmul.f32 %v8214_v62, %v620_v25 }
 0x2c3   : > { %v688_v48 = vmul.f32 %v8216_v63, %v612_v30 }
 0x2c4   : > { %v696_v49 = vpack.c.bf16 %v690_v4, %v689_v3 }
 0x2c5   : > { %v695_v8 = vpack.c.bf16 %v688_v48, %v687_v39 }
 0x2c7   : > { %v8218_v9 = vpop.eup %8217  ;;  %7238 = vmatprep.mubr.bf16.mxu1 %v695_v8 }
 0x2c8   : > { %v8220_v10 = vpop.eup %8219  ;;  %7239 = vmatmul.mubr.bf16.vlgmr.msra.gmra.mrb[8].mxu1 %v696_v49  ;;  %v693_v15 = vmul.f32 %v8218_v9, %v633_v34 }
 0x2c9   : > { %v8222_v11 = vpop.eup %8221  ;;  %v691_v17 = vmul.f32 %v8220_v10, %v625_v36 }
 0x2ca   : > { %v8224_v14 = vpop.eup %8223  ;;  %v694_v16 = vmul.f32 %v8222_v11, %v636_v41 }
 0x2cb   : > { %v692_v19 = vmul.f32 %v8224_v14, %v628_v44 }
 0x2cc   : > { %v698_v23 = vpack.c.bf16 %v694_v16, %v693_v15 }
 0x2cd   : > { %v697_v24 = vpack.c.bf16 %v692_v19, %v691_v17 }
 0x2cf   : > { %7242 = vmatprep.mubr.bf16.mxu1 %v697_v24 }
 0x2d0   : > { %7243 = vmatmul.mubr.bf16.gmra.mrb[12].mxu1 %v698_v23 }
 0x39b   : > { %v7240_v25 = vpop.f32.mrb[8].mxu1 }
 0x39c   : > { %v811_v22 = vadd.f32 %v7240_v25, %v6775_v18  ;;  %v802_v26 = vpop.f32.mrb[9].mxu1 }
 0x39d   : > { %v803_v27 = vadd.f32 %v6775_v18, %v802_v26  ;;  %v7241_v30 = vpop.f32.mrb[10].mxu1 }
 0x39e   : > { %v814_v31 = vadd.f32 %v7241_v30, %v6775_v18  ;;  %v805_v32 = vpop.f32.mrb[11].mxu1  ;;  %v835_v33 = vmul.f32 0.5, %v811_v22 }
 0x39f   : > { %v833_v35 = vmul.f32 0.5, %v803_v27  ;;  %v806_v37 = vadd.f32 %v6775_v18, %v805_v32 }
 0x3a0   : > { %v836_v36 = vmul.f32 0.5, %v814_v31  ;;  %v9087_v41 = vadd.f32 %v835_v33, %v8960_v1 }
 0x3a1   : > { %v9084_v34 = vadd.f32 %v833_v35, %v8958_v0  ;;  %v834_v40 = vmul.f32 0.5, %v806_v37 }
 0x3a2   : > { %11039 = vst [vmem:[#allocation20_spill] sm:$0xff] %v9087_v41  ;;  %v9095_v46 = vadd.f32 %v836_v36, %v8968_v5  ;;  %v857_v28 = vsel %vm407_vm0, %v9087_v41, 0.0 }
 0x3a3   : > { %v9090_v42 = vadd.f32 %v834_v40, %v8962_v2  ;;  %v7244_v43 = vpop.f32.mrb[12].mxu1  ;;  %v851_v44 = vsel %vm407_vm0, %v9084_v34, 0.0 }
 0x3a4   : > { %v827_v45 = vadd.f32 %v7244_v43, %v6775_v18  ;;  %852 = vadd.xlane.f32.xlu0 %v851_v44  ;;  %v818_v20 = vpop.f32.mrb[13].mxu1  ;;  %11041 = vst [vmem:[#allocation22_spill] sm:$0xff] %v9095_v46  ;;  %v860_v55 = vsel %vm407_vm0, %v9095_v46, 0.0 }
 0x3a5   : > { %11040 = vst [vmem:[#allocation21_spill] sm:$0xff] %v9090_v42  ;;  %v819_v0 = vadd.f32 %v6775_v18, %v818_v20  ;;  %v7245_v47 = vpop.f32.mrb[14].mxu1  ;;  %v854_v50 = vsel %vm407_vm0, %v9090_v42, 0.0 }
 0x3a6   : > { %v830_v1 = vadd.f32 %v7245_v47, %v6775_v18  ;;  %855 = vadd.xlane.f32.xlu1 %v854_v50  ;;  %v821_v51 = vpop.f32.mrb[15].mxu1  ;;  %v839_v2 = vmul.f32 0.5, %v827_v45  ;;  %v8160_v47 = vld [vmem:[%s10983_s5 + $0x8] sm:$0xff]   ;;  %v6793_v50 = vld [vmem:[#allocation3 + $0x6] ss:$0 sm:$0xff] }
 0x3a7   : > { %v837_v52 = vmul.f32 0.5, %v819_v0  ;;  %v822_v53 = vadd.f32 %v6775_v18, %v821_v51  ;;  %v8159_v0 = vld [vmem:[%s10983_s5] sm:$0xff]  }
 0x3a8   : > { %858 = vadd.xlane.f32.xlu0 %v857_v28  ;;  %v840_v5 = vmul.f32 0.5, %v830_v1  ;;  %v9107_v56 = vadd.f32 %v839_v2, %v8982_v12  ;;  %7246 = vmatprep.subr.bf16.mxu0 %v8159_v0 }
 0x3a9   : > { %v9102_v54 = vadd.f32 %v837_v52, %v8970_v6  ;;  %v838_v21 = vmul.f32 0.5, %v822_v53  ;;  %7247 = vmatpush3.bf16.msra.mxu0 %v8159_v0 }
 0x3aa   : > { %861 = vadd.xlane.f32.xlu1 %v860_v55  ;;  %11043 = vst [vmem:[#allocation24_spill] sm:$0xff] %v9107_v56  ;;  %v9115_v59 = vadd.f32 %v840_v5, %v8984_v13  ;;  %v869_v29 = vsel %vm407_vm0, %v9107_v56, 0.0  ;;  %7248 = vmatprep.subr.bf16.mxu0 %v8160_v47 }
 0x3ab   : > { %11042 = vst [vmem:[#allocation23_spill] sm:$0xff] %v9102_v54  ;;  %v9110_v57 = vadd.f32 %v838_v21, %v8972_v7  ;;  %v863_v58 = vsel %vm407_vm0, %v9102_v54, 0.0 }
 0x3ac   : > { %864 = vadd.xlane.f32.xlu0 %v863_v58  ;;  %11045 = vst [vmem:[#allocation26_spill] sm:$0xff] %v9115_v59  ;;  %v872_v12 = vsel %vm407_vm0, %v9115_v59, 0.0 }
 0x3ad   : > { %11044 = vst [vmem:[#allocation25_spill] sm:$0xff] %v9110_v57  ;;  %v866_v6 = vsel %vm407_vm0, %v9110_v57, 0.0  ;;  %7249 = vmatpush3.bf16.msra.mxu0 %v8160_v47 }
 0x3ae   : > { %867 = vadd.xlane.f32.xlu1 %v866_v6 }
 0x3b0   : > { %870 = vadd.xlane.f32.xlu0 %v869_v29 }
 0x3b2   : > { %873 = vadd.xlane.f32.xlu1 %v872_v12 }
 0x431   : > { %v853_v7 = vpop.xlane.xlu0 %852 }
 0x432   : > { %v875_v38 = vmul.f32 0.03125, %v853_v7 }
 0x433   : > { %v856_v60 = vpop.xlane.xlu1 %855 }
 0x434   : > { %v9124_v61 = vsub.f32 %v9084_v34, %v875_v38  ;;  %v876_v13 = vmul.f32 0.03125, %v856_v60 }
 0x435   : > { %v859_v62 = vpop.xlane.xlu0 %858 }
 0x436   : > { %v9127_v63 = vsub.f32 %v9090_v42, %v876_v13  ;;  %v877_v3 = vmul.f32 0.03125, %v859_v62  ;;  %v891_v4 = vmul.f32 %v9124_v61, %v9124_v61 }
 0x437   : > { %v862_v39 = vpop.xlane.xlu1 %861 }
 0x438   : > { %v9132_v48 = vsub.f32 %v9087_v41, %v877_v3  ;;  %v878_v49 = vmul.f32 0.03125, %v862_v39  ;;  %v899_v8 = vsel %vm407_vm0, %v891_v4, 0.0  ;;  %v892_v9 = vmul.f32 %v9127_v63, %v9127_v63 }
 0x439   : > { %900 = vadd.xlane.f32.xlu0 %v899_v8  ;;  %v865_v10 = vpop.xlane.xlu0 %864 }
 0x43a   : > { %v9138_v11 = vsub.f32 %v9095_v46, %v878_v49  ;;  %v879_v14 = vmul.f32 0.03125, %v865_v10  ;;  %v902_v15 = vsel %vm407_vm0, %v892_v9, 0.0  ;;  %v893_v16 = vmul.f32 %v9132_v48, %v9132_v48  ;;  %v6784_v10 = vld [vmem:[#allocation3 + $0x3] ss:$0 sm:$0xff] }
 0x43b   : > { %903 = vadd.xlane.f32.xlu1 %v902_v15  ;;  %v868_v17 = vpop.xlane.xlu1 %867 }
 0x43c   : > { %v9144_v19 = vsub.f32 %v9102_v54, %v879_v14  ;;  %v880_v23 = vmul.f32 0.03125, %v868_v17  ;;  %v905_v24 = vsel %vm407_vm0, %v893_v16, 0.0  ;;  %v894_v18 = vmul.f32 %v9138_v11, %v9138_v11 }
 0x43d   : > { %906 = vadd.xlane.f32.xlu0 %v905_v24  ;;  %v871_v25 = vpop.xlane.xlu0 %870 }
 0x43e   : > { %v9150_v22 = vsub.f32 %v9110_v57, %v880_v23  ;;  %v881_v26 = vmul.f32 0.03125, %v871_v25  ;;  %v908_v27 = vsel %vm407_vm0, %v894_v18, 0.0  ;;  %v895_v30 = vmul.f32 %v9144_v19, %v9144_v19  ;;  %v6785_v18 = vld [vmem:[#allocation3 + $0x4] ss:$0 sm:$0xff] }
 0x43f   : > { %909 = vadd.xlane.f32.xlu1 %v908_v27  ;;  %v874_v31 = vpop.xlane.xlu1 %873 }
 0x440   : > { %v9156_v32 = vsub.f32 %v9107_v56, %v881_v26  ;;  %v882_v33 = vmul.f32 0.03125, %v874_v31  ;;  %v911_v35 = vsel %vm407_vm0, %v895_v30, 0.0  ;;  %v896_v37 = vmul.f32 %v9150_v22, %v9150_v22 }
 0x441   : > { %912 = vadd.xlane.f32.xlu0 %v911_v35 }
 0x442   : > { %v9162_v36 = vsub.f32 %v9115_v59, %v882_v33  ;;  %v914_v40 = vsel %vm407_vm0, %v896_v37, 0.0  ;;  %v897_v43 = vmul.f32 %v9156_v32, %v9156_v32 }
 0x443   : > { %915 = vadd.xlane.f32.xlu1 %v914_v40 }
 0x444   : > { %v917_v44 = vsel %vm407_vm0, %v897_v43, 0.0  ;;  %v898_v45 = vmul.f32 %v9162_v36, %v9162_v36 }
 0x445   : > { %918 = vadd.xlane.f32.xlu0 %v917_v44 }
 0x446   : > { %v920_v20 = vsel %vm407_vm0, %v898_v45, 0.0 }
 0x447   : > { %921 = vadd.xlane.f32.xlu1 %v920_v20 }
 0x45b   : > { %1095 = vrot.lane.b32.xlu0 %v6793_v50, %s8713_s11 }
 0x4c6   : > { %v901_v1 = vpop.xlane.xlu0 %900 }
 0x4c7   : > { %v923_v51 = vmul.f32 0.03125, %v901_v1 }
 0x4c8   : > { %v904_v2 = vpop.xlane.xlu1 %903 }
 0x4c9   : > { %v931_v52 = vadd.f32 1e-05, %v923_v51  ;;  %v924_v53 = vmul.f32 0.03125, %v904_v2 }
 0x4ca   : > { %v907_v28 = vpop.xlane.xlu0 %906 }
 0x4cb   : > { %8225 = vrsqrt.f32 %v931_v52  ;;  %v932_v5 = vadd.f32 1e-05, %v924_v53  ;;  %v925_v21 = vmul.f32 0.03125, %v907_v28 }
 0x4cc   : > { %v910_v55 = vpop.xlane.xlu1 %909 }
 0x4cd   : > { %8227 = vrsqrt.f32 %v932_v5  ;;  %v933_v58 = vadd.f32 1e-05, %v925_v21  ;;  %v926_v6 = vmul.f32 0.03125, %v910_v55  ;;  %v6792_v55 = vld [vmem:[#allocation3 + $0x5] ss:$0 sm:$0xff] }
 0x4ce   : > { %v913_v29 = vpop.xlane.xlu0 %912 }
 0x4cf   : > { %8229 = vrsqrt.f32 %v933_v58  ;;  %v934_v12 = vadd.f32 1e-05, %v926_v6  ;;  %v927_v7 = vmul.f32 0.03125, %v913_v29 }
 0x4d0   : > { %v916_v38 = vpop.xlane.xlu1 %915 }
 0x4d1   : > { %8231 = vrsqrt.f32 %v934_v12  ;;  %v935_v60 = vadd.f32 1e-05, %v927_v7  ;;  %v928_v13 = vmul.f32 0.03125, %v916_v38 }
 0x4d2   : > { %v919_v62 = vpop.xlane.xlu0 %918 }
 0x4d3   : > { %8233 = vrsqrt.f32 %v935_v60  ;;  %v936_v3 = vadd.f32 1e-05, %v928_v13  ;;  %v929_v4 = vmul.f32 0.03125, %v919_v62 }
 0x4d4   : > { %v922_v39 = vpop.xlane.xlu1 %921 }
 0x4d5   : > { %v8226_v49 = vpop.eup %8225  ;;  %8235 = vrsqrt.f32 %v936_v3  ;;  %v937_v8 = vadd.f32 1e-05, %v929_v4  ;;  %v930_v9 = vmul.f32 0.03125, %v922_v39 }
 0x4d6   : > { %v947_v14 = vmul.f32 %v8226_v49, %v9124_v61 }
 0x4d7   : > { %v8228_v15 = vpop.eup %8227  ;;  %8237 = vrsqrt.f32 %v937_v8  ;;  %v938_v16 = vadd.f32 1e-05, %v930_v9 }
 0x4d8   : > { %v948_v17 = vmul.f32 %v8228_v15, %v9127_v63  ;;  %v959_v23 = vmul.f32 %v6784_v10, %v947_v14 }
 0x4d9   : > { %v8230_v24 = vpop.eup %8229  ;;  %8239 = vrsqrt.f32 %v938_v16 }
 0x4da   : > { %v960_v25 = vmul.f32 %v6784_v10, %v948_v17  ;;  %v949_v26 = vmul.f32 %v8230_v24, %v9132_v48  ;;  %v971_v30 = vadd.f32 %v6785_v18, %v959_v23 }
 0x4db   : > { %v8232_v27 = vpop.eup %8231 }
 0x4dc   : > { %v972_v31 = vadd.f32 %v6785_v18, %v960_v25  ;;  %v950_v33 = vmul.f32 %v8232_v27, %v9138_v11  ;;  %v961_v35 = vmul.f32 %v6784_v10, %v949_v26 }
 0x4dd   : > { %v8234_v37 = vpop.eup %8233 }
 0x4de   : > { %v979_v61 = vpack.c.bf16 %v972_v31, %v971_v30  ;;  %v962_v40 = vmul.f32 %v6784_v10, %v950_v33  ;;  %v951_v43 = vmul.f32 %v8234_v37, %v9144_v19  ;;  %v973_v63 = vadd.f32 %v6785_v18, %v961_v35 }
 0x4df   : > { %v8236_v44 = vpop.eup %8235 }
 0x4e0   : > { %7250 = vmatprep.mubr.msk.bf16.mxu0 %vm407_vm0, %v979_v61  ;;  %v974_v45 = vadd.f32 %v6785_v18, %v962_v40  ;;  %v952_v20 = vmul.f32 %v8236_v44, %v9150_v22  ;;  %v963_v0 = vmul.f32 %v6784_v10, %v951_v43 }
 0x4e1   : > { %v8238_v48 = vpop.eup %8237 }
 0x4e2   : > { %v980_v47 = vpack.c.bf16 %v974_v45, %v973_v63  ;;  %v964_v50 = vmul.f32 %v6784_v10, %v952_v20  ;;  %v953_v1 = vmul.f32 %v8238_v48, %v9156_v32  ;;  %v975_v51 = vadd.f32 %v6785_v18, %v963_v0  ;;  %v1096_v32 = vpop.permute.xlu0 %1095 }
 0x4e3   : > { %v8240_v11 = vpop.eup %8239 }
 0x4e4   : > { %7251 = vmatmul.mubr.msk.bf16.vlgmr.msra.gmra.mrb[0].mxu0 %vm407_vm0, %v980_v47  ;;  %v976_v2 = vadd.f32 %v6785_v18, %v964_v50  ;;  %v954_v19 = vmul.f32 %v8240_v11, %v9162_v36  ;;  %v965_v52 = vmul.f32 %v6784_v10, %v953_v1 }
 0x4e6   : > { %v981_v53 = vpack.c.bf16 %v976_v2, %v975_v51  ;;  %v966_v28 = vmul.f32 %v6784_v10, %v954_v19  ;;  %v977_v5 = vadd.f32 %v6785_v18, %v965_v52  ;;  %v6794_v52 = vld [vmem:[#allocation3 + $0x7] ss:$0 sm:$0xff] }
 0x4e8   : > { %7254 = vmatprep.mubr.msk.bf16.mxu0 %vm407_vm0, %v981_v53  ;;  %v978_v22 = vadd.f32 %v6785_v18, %v966_v28 }
 0x4ea   : > { %v982_v21 = vpack.c.bf16 %v978_v22, %v977_v5 }
 0x4ec   : > { %7255 = vmatmul.mubr.msk.bf16.gmra.mrb[4].mxu0 %vm407_vm0, %v982_v21 }
 0x5b7   : > { %v9190_v58 = vpop.f32.mrb[0].mxu0 }
 0x5b8   : > { %v9193_v6 = vadd.f32 %v9190_v58, %v6792_v55  ;;  %v9195_v29 = vpop.f32.mrb[1].mxu0  ;;  %v1100_v13 = vadd.f32 %v9190_v58, %v1096_v32 }
 0x5b9   : > { %v1081_v36 = vadd.f32 %v6792_v55, %v9195_v29  ;;  %v9198_v12 = vpop.f32.mrb[2].mxu0  ;;  %v1098_v62 = vadd.f32 %v1096_v32, %v9195_v29 }
 0x5ba   : > { %v9201_v7 = vadd.f32 %v9198_v12, %v6792_v55  ;;  %v1101_v38 = vadd.f32 %v9198_v12, %v1096_v32  ;;  %v9204_v60 = vpop.f32.mrb[3].mxu0 }
 0x5bb   : > { %v1099_v3 = vadd.f32 %v1096_v32, %v9204_v60  ;;  %7262 = vmatprep.mubr.msk.f32.mxu0 %vm1295_vm1, %v1081_v36  ;;  %v1082_v30 = vadd.f32 %v6792_v55, %v9204_v60 }
 0x5bc   : > { %v7824_v4 = vpack.i.bf16 %v1101_v38, %v1100_v13 }
 0x5bd   : > { %v7809_v39 = vpack.i.bf16 %v1099_v3, %v1098_v62 }
 0x5be   : > { %7825 = vrot.lane.b32.xlu0 %v7824_v4, %s8714_s6 }
 0x5bf   : > { %v9211_v49 = vpop.f32.mrb[4].mxu0  ;;  %7810 = vrot.lane.b32.xlu1 %v7809_v39, %s8714_s6 }
 0x5c0   : > { %v9215_v8 = vadd.f32 %v9211_v49, %v6792_v55  ;;  %v9217_v9 = vpop.f32.mrb[5].mxu0  ;;  %v1104_v15 = vadd.f32 %v9211_v49, %v1096_v32 }
 0x5c1   : > { %v9220_v10 = vadd.f32 %v6792_v55, %v9217_v9  ;;  %v9222_v14 = vpop.f32.mrb[6].mxu0  ;;  %v1102_v24 = vadd.f32 %v1096_v32, %v9217_v9 }
 0x5c2   : > { %v9226_v16 = vadd.f32 %v9222_v14, %v6792_v55  ;;  %v1105_v17 = vadd.f32 %v9222_v14, %v1096_v32  ;;  %v9229_v23 = vpop.f32.mrb[7].mxu0  ;;  %7835 = vrot.lane.b32.xlu0 %v7824_v4, %s8715_s14 }
 0x5c3   : > { %v9234_v18 = vadd.f32 %v6792_v55, %v9229_v23  ;;  %v1103_v25 = vadd.f32 %v1096_v32, %v9229_v23  ;;  %7815 = vrot.lane.b32.xlu1 %v7809_v39, %s8716_s21 }
 0x5c4   : > { %v7849_v26 = vpack.i.bf16 %v1105_v17, %v1104_v15 }
 0x5c5   : > { %v7844_v27 = vpack.i.bf16 %v1103_v25, %v1102_v24 }
 0x5c7   : > { %7845 = vrot.lane.b32.xlu0 %v7844_v27, %s8716_s21  ;;  %7820 = vrot.lane.b32.xlu1 %v7809_v39, %s8715_s14 }
 0x5cb   : > { %7850 = vrot.lane.b32.xlu0 %v7849_v26, %s8714_s6  ;;  %7830 = vrot.lane.b32.xlu1 %v7824_v4, %s8716_s21 }
 0x5cf   : > { %7865 = vrot.lane.b32.xlu0 %v7849_v26, %s8716_s21  ;;  %7840 = vrot.lane.b32.xlu1 %v7844_v27, %s8714_s6 }
 0x5d3   : > { %1133 = vrot.lane.b32.xlu0 %v1082_v30, %s8714_s6  ;;  %7855 = vrot.lane.b32.xlu1 %v7844_v27, %s8715_s14 }
 0x5d7   : > { %7860 = vrot.lane.b32.xlu1 %v7809_v39, %s8717_s24 }
 0x5db   : > { %7870 = vrot.lane.b32.xlu1 %v7849_v26, %s8715_s14 }
 0x5df   : > { %1131 = vrot.lane.b32.xlu1 %v1081_v36, %s8714_s6 }
 0x5e3   : > { %7875 = vrot.lane.b32.xlu1 %v7824_v4, %s8717_s24 }
 0x5e7   : > { %1147 = vrot.lane.b32.xlu1 %v1081_v36, %s8716_s21 }
 0x630   : > { %v7826_v31 = vpop.permute.xlu0 %7825 }
 0x631   : > { %v7811_v33 = vpop.permute.xlu1 %7810  ;;  %7880 = vrot.lane.b32.xlu0 %v7826_v31, %s8717_s24 }
 0x634   : > { %v7836_v40 = vpop.permute.xlu0 %7835 }
 0x635   : > { %v7816_v35 = vpop.permute.xlu1 %7815  ;;  %7885 = vrot.lane.b32.xlu0 %v7811_v33, %s8717_s24 }
 0x636   : > { %7890 = vrot.lane.b32.xlu1 %v7816_v35, %s8717_s24 }
 0x639   : > { %v7821_v37 = vpop.permute.xlu1 %7820  ;;  %1149 = vrot.lane.b32.xlu0 %v1082_v30, %s8716_s21  ;;  %v7846_v50 = vpop.permute.xlu0 %7845 }
 0x63a   : > { %1163 = vrot.lane.b32.xlu1 %v1081_v36, %s8715_s14 }
 0x63d   : > { %v7831_v61 = vpop.permute.xlu1 %7830  ;;  %7895 = vrot.lane.b32.xlu0 %v7821_v37, %s8717_s24  ;;  %v7851_v2 = vpop.permute.xlu0 %7850 }
 0x63e   : > { %7900 = vrot.lane.b32.xlu1 %v7831_v61, %s8717_s24 }
 0x641   : > { %v7841_v43 = vpop.permute.xlu1 %7840  ;;  %1165 = vrot.lane.b32.xlu0 %v1082_v30, %s8715_s14  ;;  %v7866_v19 = vpop.permute.xlu0 %7865 }
 0x642   : > { %1135 = vrot.lane.b32.xlu1 %v9193_v6, %s8714_s6 }
 0x645   : > { %v7856_v44 = vpop.permute.xlu1 %7855  ;;  %7905 = vrot.lane.b32.xlu0 %v7836_v40, %s8717_s24  ;;  %v1134_v53 = vpop.permute.xlu0 %1133 }
 0x646   : > { %7910 = vrot.lane.b32.xlu1 %v7844_v27, %s8717_s24 }
 0x649   : > { %v7861_v63 = vpop.permute.xlu1 %7860  ;;  %1137 = vrot.lane.b32.xlu0 %v9201_v7, %s8714_s6 }
 0x64a   : > { %v7863_v45 = vunpack.i.h.bf16 %v7861_v63  ;;  %v7862_v20 = vunpack.i.l.bf16 %v7861_v63  ;;  %1151 = vrot.lane.b32.xlu1 %v9193_v6, %s8716_s21 }
 0x64c   : > { %v7554_v48 = vpack.c.bf16 %v7863_v45, %v7862_v20 }
 0x64d   : > { %v7871_v47 = vpop.permute.xlu1 %7870  ;;  %1153 = vrot.lane.b32.xlu0 %v9201_v7, %s8716_s21 }
 0x64e   : > { %7556 = vmatprep.subr.msk.bf16.mxu0 %vm9266_vm2, %v7554_v48  ;;  %1167 = vrot.lane.b32.xlu1 %v9193_v6, %s8715_s14 }
 0x64f   : > { %7559 = vmatpush3.bf16.xpose.msk.msra.mxu0 %vm9266_vm2, %v7554_v48 }
 0x651   : > { %v1132_v1 = vpop.permute.xlu1 %1131  ;;  %1169 = vrot.lane.b32.xlu0 %v9201_v7, %s8715_s14 }
 0x652   : > { %1139 = vrot.lane.b32.xlu1 %v9220_v10, %s8714_s6 }
 0x655   : > { %v7876_v11 = vpop.permute.xlu1 %7875  ;;  %7915 = vrot.lane.b32.xlu0 %v7841_v43, %s8717_s24 }
 0x656   : > { %7263 = vmatmul.mubr.msk.f32.vlgmr.msra.gmra.mrb[8].mxu0 %vm1295_vm1, %v1082_v30  ;;  %7920 = vrot.lane.b32.xlu1 %v7846_v50, %s8717_s24  ;;  %v7878_v32 = vunpack.i.h.bf16 %v7876_v11  ;;  %v7877_v36 = vunpack.i.l.bf16 %v7876_v11 }
 0x657   : > { %7269 = vmatprep.mubr.msk.f32.mxu0 %vm1295_vm1, %v1132_v1 }
 0x658   : > { %v7578_v15 = vpack.c.bf16 %v7878_v32, %v7877_v36 }
 0x659   : > { %v1148_v51 = vpop.permute.xlu1 %1147  ;;  %1141 = vrot.lane.b32.xlu0 %v9234_v18, %s8714_s6 }
 0x65a   : > { %7276 = vmatprep.mubr.msk.f32.mxu1 %vm1295_vm1, %v1148_v51  ;;  %7925 = vrot.lane.b32.xlu1 %v7849_v26, %s8717_s24 }
 0x65d   : > { %7930 = vrot.lane.b32.xlu0 %v7856_v44, %s8717_s24 }
 0x65e   : > { %1155 = vrot.lane.b32.xlu1 %v9220_v10, %s8716_s21 }
 0x661   : > { %7935 = vrot.lane.b32.xlu0 %v7851_v2, %s8717_s24 }
 0x662   : > { %1171 = vrot.lane.b32.xlu1 %v9220_v10, %s8715_s14 }
 0x665   : > { %1157 = vrot.lane.b32.xlu0 %v9234_v18, %s8716_s21 }
 0x666   : > { %7940 = vrot.lane.b32.xlu1 %v7866_v19, %s8717_s24 }
 0x669   : > { %1173 = vrot.lane.b32.xlu0 %v9234_v18, %s8715_s14 }
 0x66a   : > { %1143 = vrot.lane.b32.xlu1 %v9215_v8, %s8714_s6 }
 0x66d   : > { %7945 = vrot.lane.b32.xlu0 %v7871_v47, %s8717_s24 }
 0x66e   : > { %1159 = vrot.lane.b32.xlu1 %v9215_v8, %s8716_s21 }
 0x671   : > { %1145 = vrot.lane.b32.xlu0 %v9226_v16, %s8714_s6 }
 0x672   : > { %1175 = vrot.lane.b32.xlu1 %v9215_v8, %s8715_s14 }
 0x675   : > { %1161 = vrot.lane.b32.xlu0 %v9226_v16, %s8716_s21 }
 0x676   : > { %1112 = vrot.lane.b32.xlu1 %v6794_v52, %s8718_s17 }
 0x679   : > { %1177 = vrot.lane.b32.xlu0 %v9226_v16, %s8715_s14 }
 0x6a3   : > { %v7881_v28 = vpop.permute.xlu0 %7880 }
 0x6a4   : > { %v7883_v27 = vunpack.i.h.bf16 %v7881_v28  ;;  %v7882_v30 = vunpack.i.l.bf16 %v7881_v28 }
 0x6a6   : > { %v7584_v40 = vpack.c.bf16 %v7883_v27, %v7882_v30 }
 0x6a7   : > { %v7886_v5 = vpop.permute.xlu0 %7885 }
 0x6a8   : > { %v7888_v22 = vunpack.i.h.bf16 %v7886_v5  ;;  %v7887_v21 = vunpack.i.l.bf16 %v7886_v5  ;;  %v7891_v55 = vpop.permute.xlu1 %7890 }
 0x6a9   : > { %v7893_v38 = vunpack.i.h.bf16 %v7891_v55  ;;  %v7892_v13 = vunpack.i.l.bf16 %v7891_v55 }
 0x6aa   : > { %v7560_v62 = vpack.c.bf16 %v7888_v22, %v7887_v21 }
 0x6ab   : > { %v7566_v3 = vpack.c.bf16 %v7893_v38, %v7892_v13  ;;  %v1150_v4 = vpop.permute.xlu0 %1149 }
 0x6ac   : > { %v1164_v39 = vpop.permute.xlu1 %1163  ;;  %7562 = vmatprep.subr.msk.bf16.mxu0 %vm9266_vm2, %v7560_v62 }
 0x6ad   : > { %7565 = vmatpush3.bf16.xpose.msk.msra.mxu0 %vm9266_vm2, %v7560_v62  ;;  %7568 = vmatprep.subr.msk.bf16.mxu1 %vm9266_vm2, %v7566_v3 }
 0x6ae   : > { %7571 = vmatpush3.bf16.xpose.msk.msra.mxu1 %vm9266_vm2, %v7566_v3 }
 0x6af   : > { %7580 = vmatprep.subr.msk.bf16.mxu1 %vm9266_vm2, %v7578_v15  ;;  %v7896_v17 = vpop.permute.xlu0 %7895 }
 0x6b0   : > { %v7898_v24 = vunpack.i.h.bf16 %v7896_v17  ;;  %v7897_v25 = vunpack.i.l.bf16 %v7896_v17  ;;  %v7901_v26 = vpop.permute.xlu1 %7900 }
 0x6b1   : > { %v7903_v33 = vunpack.i.h.bf16 %v7901_v26  ;;  %v7902_v35 = vunpack.i.l.bf16 %v7901_v26 }
 0x6b2   : > { %v7572_v31 = vpack.c.bf16 %v7898_v24, %v7897_v25 }
 0x6b3   : > { %v1166_v37 = vpop.permute.xlu0 %1165  ;;  %v7590_v43 = vpack.c.bf16 %v7903_v33, %v7902_v35 }
 0x6b4   : > { %v1136_v61 = vpop.permute.xlu1 %1135  ;;  %7270 = vmatmul.mubr.msk.f32.vlgmr.msra.gmra.mrb[10].mxu0 %vm1295_vm1, %v1134_v53  ;;  %7574 = vmatprep.subr.msk.bf16.mxu0 %vm9266_vm2, %v7572_v31 }
 0x6b5   : > { %7277 = vmatmul.mubr.msk.f32.vlgmr.msra.gmra.mrb[16].mxu1 %vm1295_vm1, %v1150_v4  ;;  %7577 = vmatpush3.bf16.xpose.msk.msra.mxu0 %vm9266_vm2, %v7572_v31 }
 0x6b6   : > { %7283 = vmatprep.mubr.msk.f32.mxu0 %vm1295_vm1, %v1164_v39  ;;  %7583 = vmatpush3.bf16.xpose.msk.msra.mxu1 %vm9266_vm2, %v7578_v15 }
 0x6b7   : > { %7290 = vmatprep.mubr.msk.f32.mxu1 %vm1295_vm1, %v9193_v6  ;;  %7586 = vmatprep.subr.msk.bf16.mxu0 %vm9266_vm2, %v7584_v40  ;;  %v7906_v44 = vpop.permute.xlu0 %7905 }
 0x6b8   : > { %7592 = vmatprep.subr.msk.bf16.mxu1 %vm9266_vm2, %v7590_v43  ;;  %v7911_v63 = vpop.permute.xlu1 %7910  ;;  %v7908_v45 = vunpack.i.h.bf16 %v7906_v44  ;;  %v7907_v20 = vunpack.i.l.bf16 %v7906_v44 }
 0x6b9   : > { %v7913_v48 = vunpack.i.h.bf16 %v7911_v63  ;;  %v7912_v47 = vunpack.i.l.bf16 %v7911_v63 }
 0x6ba   : > { %v7596_v11 = vpack.c.bf16 %v7908_v45, %v7907_v20 }
 0x6bb   : > { %v1138_v50 = vpop.permute.xlu0 %1137  ;;  %v7602_v6 = vpack.c.bf16 %v7913_v48, %v7912_v47 }
 0x6bc   : > { %v1152_v1 = vpop.permute.xlu1 %1151  ;;  %7284 = vmatmul.mubr.msk.f32.vlgmr.msra.gmra.mrb[12].mxu0 %vm1295_vm1, %v1166_v37 }
 0x6bd   : > { %7291 = vmatmul.mubr.msk.f32.vlgmr.msra.gmra.mrb[18].mxu1 %vm1295_vm1, %v9201_v7  ;;  %7589 = vmatpush3.bf16.xpose.msk.msra.mxu0 %vm9266_vm2, %v7584_v40 }
 0x6be   : > { %7297 = vmatprep.mubr.msk.f32.mxu0 %vm1295_vm1, %v1136_v61  ;;  %7595 = vmatpush3.bf16.xpose.msk.msra.mxu1 %vm9266_vm2, %v7590_v43 }
 0x6bf   : > { %7304 = vmatprep.mubr.msk.f32.mxu1 %vm1295_vm1, %v1152_v1  ;;  %7598 = vmatprep.subr.msk.bf16.mxu0 %vm9266_vm2, %v7596_v11  ;;  %v1154_v51 = vpop.permute.xlu0 %1153 }
 0x6c0   : > { %7604 = vmatprep.subr.msk.bf16.mxu1 %vm9266_vm2, %v7602_v6  ;;  %v1168_v2 = vpop.permute.xlu1 %1167 }
 0x6c3   : > { %v1170_v7 = vpop.permute.xlu0 %1169 }
 0x6c4   : > { %v1140_v19 = vpop.permute.xlu1 %1139  ;;  %7298 = vmatmul.mubr.msk.f32.vlgmr.msra.gmra.mrb[14].mxu0 %vm1295_vm1, %v1138_v50 }
 0x6c5   : > { %7305 = vmatmul.mubr.msk.f32.vlgmr.msra.gmra.mrb[20].mxu1 %vm1295_vm1, %v1154_v51  ;;  %7601 = vmatpush3.bf16.xpose.msk.msra.mxu0 %vm9266_vm2, %v7596_v11 }
 0x6c6   : > { %7311 = vmatprep.mubr.msk.f32.mxu0 %vm1295_vm1, %v1168_v2  ;;  %7607 = vmatpush3.bf16.xpose.msk.msra.mxu1 %vm9266_vm2, %v7602_v6 }
 0x6c7   : > { %7318 = vmatprep.mubr.msk.f32.mxu1 %vm1295_vm1, %v9220_v10  ;;  %v7916_v52 = vpop.permute.xlu0 %7915 }
 0x6c8   : > { %v7918_v53 = vunpack.i.h.bf16 %v7916_v52  ;;  %v7917_v28 = vunpack.i.l.bf16 %v7916_v52  ;;  %v7921_v5 = vpop.permute.xlu1 %7920 }
 0x6c9   : > { %v7923_v22 = vunpack.i.h.bf16 %v7921_v5  ;;  %v7922_v21 = vunpack.i.l.bf16 %v7921_v5 }
 0x6ca   : > { %v7608_v55 = vpack.c.bf16 %v7918_v53, %v7917_v28 }
 0x6cb   : > { %v7614_v32 = vpack.c.bf16 %v7923_v22, %v7922_v21  ;;  %v1142_v36 = vpop.permute.xlu0 %1141 }
 0x6cc   : > { %v7926_v38 = vpop.permute.xlu1 %7925  ;;  %7312 = vmatmul.mubr.msk.f32.vlgmr.msra.gmra.mrb[16].mxu0 %vm1295_vm1, %v1170_v7  ;;  %7610 = vmatprep.subr.msk.bf16.mxu0 %vm9266_vm2, %v7608_v55 }
 0x6cd   : > { %v7928_v13 = vunpack.i.h.bf16 %v7926_v38  ;;  %v7927_v62 = vunpack.i.l.bf16 %v7926_v38  ;;  %7319 = vmatmul.mubr.msk.f32.vlgmr.msra.gmra.mrb[22].mxu1 %vm1295_vm1, %v9234_v18  ;;  %7613 = vmatpush3.bf16.xpose.msk.msra.mxu0 %vm9266_vm2, %v7608_v55 }
 0x6ce   : > { %7325 = vmatprep.mubr.msk.f32.mxu0 %vm1295_vm1, %v1140_v19  ;;  %7616 = vmatprep.subr.msk.bf16.mxu1 %vm9266_vm2, %v7614_v32 }
 0x6cf   : > { %v7626_v10 = vpack.c.bf16 %v7928_v13, %v7927_v62  ;;  %7619 = vmatpush3.bf16.xpose.msk.msra.mxu1 %vm9266_vm2, %v7614_v32  ;;  %v7931_v3 = vpop.permute.xlu0 %7930 }
 0x6d0   : > { %v7933_v4 = vunpack.i.h.bf16 %v7931_v3  ;;  %v7932_v39 = vunpack.i.l.bf16 %v7931_v3  ;;  %v1156_v15 = vpop.permute.xlu1 %1155 }
 0x6d1   : > { %7332 = vmatprep.mubr.msk.f32.mxu1 %vm1295_vm1, %v1156_v15  ;;  %7628 = vmatprep.subr.msk.bf16.mxu1 %vm9266_vm2, %v7626_v10 }
 0x6d2   : > { %v7620_v18 = vpack.c.bf16 %v7933_v4, %v7932_v39 }
 0x6d3   : > { %v7936_v17 = vpop.permute.xlu0 %7935 }
 0x6d4   : > { %v7938_v24 = vunpack.i.h.bf16 %v7936_v17  ;;  %v7937_v25 = vunpack.i.l.bf16 %v7936_v17  ;;  %v1172_v26 = vpop.permute.xlu1 %1171  ;;  %7326 = vmatmul.mubr.msk.f32.vlgmr.msra.gmra.mrb[18].mxu0 %vm1295_vm1, %v1142_v36  ;;  %7622 = vmatprep.subr.msk.bf16.mxu0 %vm9266_vm2, %v7620_v18 }
 0x6d5   : > { %7625 = vmatpush3.bf16.xpose.msk.msra.mxu0 %vm9266_vm2, %v7620_v18  ;;  %7339 = vmatprep.mubr.msk.f32.mxu0 %vm1295_vm1, %v1172_v26 }
 0x6d6   : > { %v7632_v27 = vpack.c.bf16 %v7938_v24, %v7937_v25 }
 0x6d7   : > { %v1158_v30 = vpop.permute.xlu0 %1157 }
 0x6d8   : > { %v7941_v31 = vpop.permute.xlu1 %7940  ;;  %7333 = vmatmul.mubr.msk.f32.vlgmr.msra.gmra.mrb[24].mxu1 %vm1295_vm1, %v1158_v30  ;;  %7634 = vmatprep.subr.msk.bf16.mxu0 %vm9266_vm2, %v7632_v27 }
 0x6d9   : > { %v7943_v33 = vunpack.i.h.bf16 %v7941_v31  ;;  %v7942_v35 = vunpack.i.l.bf16 %v7941_v31  ;;  %7631 = vmatpush3.bf16.xpose.msk.msra.mxu1 %vm9266_vm2, %v7626_v10  ;;  %7346 = vmatprep.mubr.msk.f32.mxu1 %vm1295_vm1, %v9215_v8 }
 0x6db   : > { %v7638_v37 = vpack.c.bf16 %v7943_v33, %v7942_v35  ;;  %v1174_v61 = vpop.permute.xlu0 %1173 }
 0x6dc   : > { %v1144_v40 = vpop.permute.xlu1 %1143  ;;  %7340 = vmatmul.mubr.msk.f32.vlgmr.msra.gmra.mrb[20].mxu0 %vm1295_vm1, %v1174_v61 }
 0x6dd   : > { %7637 = vmatpush3.bf16.xpose.msk.msra.mxu0 %vm9266_vm2, %v7632_v27  ;;  %7353 = vmatprep.mubr.msk.f32.mxu0 %vm1295_vm1, %v1144_v40 }
 0x6de   : > { %7640 = vmatprep.subr.msk.bf16.mxu1 %vm9266_vm2, %v7638_v37 }
 0x6df   : > { %v7946_v43 = vpop.permute.xlu0 %7945 }
 0x6e0   : > { %7347 = vmatmul.mubr.msk.f32.vlgmr.msra.gmra.mrb[26].mxu1 %vm1295_vm1, %v9226_v16  ;;  %v7948_v44 = vunpack.i.h.bf16 %v7946_v43  ;;  %v7947_v63 = vunpack.i.l.bf16 %v7946_v43  ;;  %v1160_v8 = vpop.permute.xlu1 %1159 }
 0x6e1   : > { %7643 = vmatpush3.bf16.xpose.msk.msra.mxu1 %vm9266_vm2, %v7638_v37  ;;  %7360 = vmatprep.mubr.msk.f32.mxu1 %vm1295_vm1, %v1160_v8 }
 0x6e2   : > { %v7644_v45 = vpack.c.bf16 %v7948_v44, %v7947_v63 }
 0x6e3   : > { %v1146_v20 = vpop.permute.xlu0 %1145 }
 0x6e4   : > { %v1176_v48 = vpop.permute.xlu1 %1175  ;;  %7354 = vmatmul.mubr.msk.f32.vlgmr.msra.gmra.mrb[22].mxu0 %vm1295_vm1, %v1146_v20  ;;  %7646 = vmatprep.subr.msk.bf16.mxu0 %vm9266_vm2, %v7644_v45 }
 0x6e5   : > { %7649 = vmatpush3.bf16.xpose.msk.msra.mxu0 %vm9266_vm2, %v7644_v45  ;;  %7367 = vmatprep.mubr.msk.f32.mxu0 %vm1295_vm1, %v1176_v48 }
 0x6e7   : > { %v1162_v16 = vpop.permute.xlu0 %1161 }
 0x6e8   : > { %v1113_v47 = vpop.permute.xlu1 %1112  ;;  %7361 = vmatmul.mubr.msk.f32.vlgmr.msra.gmra.mrb[28].mxu1 %vm1295_vm1, %v1162_v16 }
 0x6e9   : > { %v1115_v50 = vadd.f32 %v1113_v47, %v9195_v29  ;;  %v1116_v1 = vadd.f32 %v1113_v47, %v9204_v60  ;;  %v1117_v11 = vadd.f32 %v9190_v58, %v1113_v47  ;;  %v1118_v6 = vadd.f32 %v9198_v12, %v1113_v47 }
 0x6ea   : > { %v1119_v51 = vadd.f32 %v1113_v47, %v9217_v9  ;;  %v1120_v2 = vadd.f32 %v1113_v47, %v9229_v23  ;;  %v1121_v0 = vadd.f32 %v9211_v49, %v1113_v47  ;;  %v1122_v7 = vadd.f32 %v9222_v14, %v1113_v47 }
 0x6eb   : > { %v1178_v19 = vpop.permute.xlu0 %1177  ;;  %v7954_v52 = vpack.i.bf16 %v1116_v1, %v1115_v50  ;;  %v7969_v53 = vpack.i.bf16 %v1118_v6, %v1117_v11 }
 0x6ec   : > { %7368 = vmatmul.mubr.msk.f32.vlgmr.msra.gmra.mrb[24].mxu0 %vm1295_vm1, %v1178_v19  ;;  %v7979_v29 = vpack.i.bf16 %v1120_v2, %v1119_v51  ;;  %v7999_v58 = vpack.i.bf16 %v1122_v7, %v1121_v0 }
 0x6ed   : > { %7955 = vrot.lane.b32.xlu1 %v7954_v52, %s8716_s21  ;;  %7950 = vrot.lane.b32.xlu0 %v7954_v52, %s8714_s6 }
 0x6f1   : > { %7960 = vrot.lane.b32.xlu1 %v7954_v52, %s8715_s14  ;;  %7970 = vrot.lane.b32.xlu0 %v7969_v53, %s8716_s21 }
 0x6f5   : > { %7965 = vrot.lane.b32.xlu1 %v7969_v53, %s8714_s6  ;;  %7980 = vrot.lane.b32.xlu0 %v7979_v29, %s8714_s6 }
 0x6f9   : > { %7975 = vrot.lane.b32.xlu1 %v7969_v53, %s8715_s14  ;;  %7990 = vrot.lane.b32.xlu0 %v7979_v29, %s8715_s14 }
 0x6fd   : > { %7985 = vrot.lane.b32.xlu1 %v7979_v29, %s8716_s21  ;;  %8000 = vrot.lane.b32.xlu0 %v7999_v58, %s8716_s21 }
 0x701   : > { %7995 = vrot.lane.b32.xlu1 %v7999_v58, %s8714_s6  ;;  %8010 = vrot.lane.b32.xlu0 %v7954_v52, %s8718_s17  ;;  %s7021_s6 = sshll.u32 %s8796_s13, 10  ;;  %s10936_s13 = scalar_lea.sflag [#allocation5], %s385_s20 }
 0x705   : > { %8005 = vrot.lane.b32.xlu1 %v7999_v58, %s8715_s14 }
 0x729   : > { %v9434_v12 = vpop.f32.mrb[8].mxu0 }
 0x72a   : > { %v9436_v60 = vpop.f32.mrb[9].mxu0  ;;  %v2688_v16 = vsel %vm2684_vm3, %v9434_v12, -inf }
 0x72b   : > { %v2685_v15 = vsel %vm2684_vm3, %v9436_v60, -inf }
 0x75f   : > { %v7956_v49 = vpop.permute.xlu1 %7955  ;;  %v7951_v9 = vpop.permute.xlu0 %7950 }
 0x760   : > { %8020 = vrot.lane.b32.xlu0 %v7956_v49, %s8718_s17  ;;  %8015 = vrot.lane.b32.xlu1 %v7951_v9, %s8718_s17 }
 0x763   : > { %v7961_v14 = vpop.permute.xlu1 %7960  ;;  %v7971_v23 = vpop.permute.xlu0 %7970 }
 0x764   : > { %8025 = vrot.lane.b32.xlu0 %v7961_v14, %s8718_s17  ;;  %8030 = vrot.lane.b32.xlu1 %v7969_v53, %s8718_s17 }
 0x767   : > { %v7966_v28 = vpop.permute.xlu1 %7965  ;;  %v7981_v5 = vpop.permute.xlu0 %7980 }
 0x768   : > { %8040 = vrot.lane.b32.xlu0 %v7971_v23, %s8718_s17  ;;  %8035 = vrot.lane.b32.xlu1 %v7966_v28, %s8718_s17 }
 0x76b   : > { %v7976_v22 = vpop.permute.xlu1 %7975  ;;  %v7991_v21 = vpop.permute.xlu0 %7990 }
 0x76c   : > { %8045 = vrot.lane.b32.xlu1 %v7976_v22, %s8718_s17 }
 0x76f   : > { %v9444_v55 = vpop.permute.xlu0 %8000  ;;  %v7986_v62 = vpop.permute.xlu1 %7985 }
 0x770   : > { %8050 = vrot.lane.b32.xlu1 %v7979_v29, %s8718_s17 }
 0x773   : > { %v8011_v32 = vpop.permute.xlu0 %8010 }
 0x774   : > { %v8013_v36 = vunpack.i.h.bf16 %v8011_v32  ;;  %v8012_v38 = vunpack.i.l.bf16 %v8011_v32  ;;  %8055 = vrot.lane.b32.xlu1 %v7999_v58, %s8718_s17 }
 0x776   : > { %v7650_v13 = vpack.c.bf16 %v8013_v36, %v8012_v38 }
 0x778   : > { %7651 = vmatprep.subr.bf16.mxu1 %v7650_v13  ;;  %8060 = vrot.lane.b32.xlu1 %v7981_v5, %s8718_s17 }
 0x779   : > { %7653 = vmatpush3.bf16.msra.mxu1 %v7650_v13 }
 0x77c   : > { %8065 = vrot.lane.b32.xlu1 %v7986_v62, %s8718_s17 }
 0x780   : > { %8070 = vrot.lane.b32.xlu1 %v7991_v21, %s8718_s17 }
 0x787   : > { %v9452_v10 = vpop.f32.mrb[10].mxu0  ;;  %2686 = vmax.xlane.f32.xlu0 %v2685_v15 }
 0x788   : > { %v9454_v3 = vpop.f32.mrb[11].mxu0  ;;  %v9456_v4 = vpop.f32.mrb[16].mxu1  ;;  %v2694_v18 = vsel %vm2684_vm3, %v9452_v10, -inf }
 0x789   : > { %v9458_v39 = vpop.f32.mrb[17].mxu1  ;;  %v2691_v27 = vsel %vm2684_vm3, %v9454_v3, -inf  ;;  %v2700_v11 = vsel %vm2684_vm3, %v9456_v4, -inf }
 0x78a   : > { %v2697_v30 = vsel %vm2684_vm3, %v9458_v39, -inf }
 0x78b   : > { %2695 = vmax.xlane.f32.xlu0 %v2694_v18  ;;  %v9560_v18 = vpop.permute.xlu1 %7995 }
 0x78f   : > { %v9464_v17 = vpop.f32.mrb[12].mxu0  ;;  %2692 = vmax.xlane.f32.xlu0 %v2691_v27 }
 0x790   : > { %v9466_v24 = vpop.f32.mrb[13].mxu0  ;;  %v9468_v25 = vpop.f32.mrb[18].mxu1  ;;  %v2706_v0 = vsel %vm2684_vm3, %v9464_v17, -inf }
 0x791   : > { %v9470_v26 = vpop.f32.mrb[19].mxu1  ;;  %v2703_v61 = vsel %vm2684_vm3, %v9466_v24, -inf  ;;  %v2712_v53 = vsel %vm2684_vm3, %v9468_v25, -inf }
 0x792   : > { %v2709_v40 = vsel %vm2684_vm3, %v9470_v26, -inf }
 0x793   : > { %2698 = vmax.xlane.f32.xlu0 %v2697_v30  ;;  %v9564_v30 = vpop.permute.xlu1 %8005 }
 0x797   : > { %v9476_v31 = vpop.f32.mrb[14].mxu0  ;;  %2704 = vmax.xlane.f32.xlu0 %v2703_v61 }
 0x798   : > { %v9478_v33 = vpop.f32.mrb[15].mxu0  ;;  %v9480_v35 = vpop.f32.mrb[20].mxu1  ;;  %v2718_v9 = vsel %vm2684_vm3, %v9476_v31, -inf }
 0x799   : > { %v9482_v37 = vpop.f32.mrb[21].mxu1  ;;  %v2715_v45 = vsel %vm2684_vm3, %v9478_v33, -inf  ;;  %v2724_v5 = vsel %vm2684_vm3, %v9480_v35, -inf }
 0x79a   : > { %v2721_v20 = vsel %vm2684_vm3, %v9482_v37, -inf }
 0x79b   : > { %2710 = vmax.xlane.f32.xlu0 %v2709_v40 }
 0x79f   : > { %v9488_v43 = vpop.f32.mrb[16].mxu0  ;;  %2716 = vmax.xlane.f32.xlu0 %v2715_v45 }
 0x7a0   : > { %v9490_v44 = vpop.f32.mrb[17].mxu0  ;;  %v9492_v63 = vpop.f32.mrb[22].mxu1  ;;  %v2730_v36 = vsel %vm2684_vm3, %v9488_v43, -inf }
 0x7a1   : > { %v9494_v8 = vpop.f32.mrb[23].mxu1  ;;  %v2727_v50 = vsel %vm2684_vm3, %v9490_v44, -inf  ;;  %v2736_v13 = vsel %vm2684_vm3, %v9492_v63, -inf }
 0x7a2   : > { %v2733_v51 = vsel %vm2684_vm3, %v9494_v8, -inf }
 0x7a3   : > { %2722 = vmax.xlane.f32.xlu0 %v2721_v20 }
 0x7a4   : > { %2689 = vmax.xlane.f32.xlu1 %v2688_v16 }
 0x7a7   : > { %v9500_v48 = vpop.f32.mrb[18].mxu0  ;;  %2728 = vmax.xlane.f32.xlu0 %v2727_v50 }
 0x7a8   : > { %v9504_v47 = vpop.f32.mrb[19].mxu0  ;;  %2701 = vmax.xlane.f32.xlu1 %v2700_v11  ;;  %v2742_v62 = vsel %vm2684_vm3, %v9500_v48, -inf }
 0x7a9   : > { %v2739_v19 = vsel %vm2684_vm3, %v9504_v47, -inf }
 0x7ab   : > { %v9508_v1 = vpop.f32.mrb[24].mxu1  ;;  %2734 = vmax.xlane.f32.xlu0 %v2733_v51 }
 0x7ac   : > { %v9512_v6 = vpop.f32.mrb[25].mxu1  ;;  %2707 = vmax.xlane.f32.xlu1 %v2706_v0  ;;  %v2748_v15 = vsel %vm2684_vm3, %v9508_v1, -inf }
 0x7ad   : > { %v2745_v58 = vsel %vm2684_vm3, %v9512_v6, -inf }
 0x7af   : > { %v9516_v2 = vpop.f32.mrb[20].mxu0  ;;  %2740 = vmax.xlane.f32.xlu0 %v2739_v19 }
 0x7b0   : > { %v9520_v7 = vpop.f32.mrb[21].mxu0  ;;  %2713 = vmax.xlane.f32.xlu1 %v2712_v53  ;;  %v2754_v27 = vsel %vm2684_vm3, %v9516_v2, -inf }
 0x7b1   : > { %v2751_v23 = vsel %vm2684_vm3, %v9520_v7, -inf }
 0x7b3   : > { %v9524_v52 = vpop.f32.mrb[26].mxu1  ;;  %2746 = vmax.xlane.f32.xlu0 %v2745_v58 }
 0x7b4   : > { %v9528_v29 = vpop.f32.mrb[27].mxu1  ;;  %2719 = vmax.xlane.f32.xlu1 %v2718_v9  ;;  %v2760_v61 = vsel %vm2684_vm3, %v9524_v52, -inf }
 0x7b5   : > { %v2757_v21 = vsel %vm2684_vm3, %v9528_v29, -inf }
 0x7b7   : > { %v9532_v49 = vpop.f32.mrb[22].mxu0  ;;  %2752 = vmax.xlane.f32.xlu0 %v2751_v23 }
 0x7b8   : > { %v9536_v14 = vpop.f32.mrb[23].mxu0  ;;  %2725 = vmax.xlane.f32.xlu1 %v2724_v5 }
 0x7bb   : > { %v9540_v28 = vpop.f32.mrb[28].mxu1  ;;  %2758 = vmax.xlane.f32.xlu0 %v2757_v21 }
 0x7bc   : > { %v9544_v22 = vpop.f32.mrb[29].mxu1  ;;  %2731 = vmax.xlane.f32.xlu1 %v2730_v36 }
 0x7bf   : > { %v9548_v32 = vpop.f32.mrb[24].mxu0 }
 0x7c0   : > { %v9552_v38 = vpop.f32.mrb[25].mxu0  ;;  %2737 = vmax.xlane.f32.xlu1 %v2736_v13 }
 0x7c4   : > { %2743 = vmax.xlane.f32.xlu1 %v2742_v62 }
 0x7c8   : > { %2749 = vmax.xlane.f32.xlu1 %v2748_v15 }
 0x7cc   : > { %2755 = vmax.xlane.f32.xlu1 %v2754_v27 }
 0x7d0   : > { %2761 = vmax.xlane.f32.xlu1 %v2760_v61 }
 0x7d2   : > { %v9568_v40 = vpop.permute.xlu0 %8020  ;;  %v8016_v45 = vpop.permute.xlu1 %8015 }
 0x7d3   : > { %v8018_v20 = vunpack.i.h.bf16 %v8016_v45  ;;  %v8017_v16 = vunpack.i.l.bf16 %v8016_v45 }
 0x7d5   : > { %v9570_v50 = vpack.c.bf16 %v8018_v20, %v8017_v16 }
 0x7d6   : > { %v9572_v11 = vpop.permute.xlu0 %8025  ;;  %v8031_v51 = vpop.permute.xlu1 %8030 }
 0x7d7   : > { %v8033_v0 = vunpack.i.h.bf16 %v8031_v51  ;;  %v8032_v19 = vunpack.i.l.bf16 %v8031_v51  ;;  %7655 = vmatprep.subr.bf16.mxu1 %v9570_v50 }
 0x7d9   : > { %v7666_v53 = vpack.c.bf16 %v8033_v0, %v8032_v19 }
 0x7da   : > { %v8041_v58 = vpop.permute.xlu0 %8040  ;;  %v9578_v21 = vpop.permute.xlu1 %8035 }
 0x7db   : > { %v8043_v9 = vunpack.i.h.bf16 %v8041_v58  ;;  %v8042_v23 = vunpack.i.l.bf16 %v8041_v58  ;;  %7667 = vmatprep.subr.bf16.mxu0 %v7666_v53 }
 0x7dc   : > { %7669 = vmatpush3.bf16.msra.mxu0 %v7666_v53  ;;  %v2769_v53 = vsel %vm2684_vm3, %v9544_v22, -inf }
 0x7dd   : > { %v9575_v5 = vpack.c.bf16 %v8043_v9, %v8042_v23  ;;  %v2775_v23 = vsel %vm2684_vm3, %v9552_v38, -inf }
 0x7de   : > { %v9580_v36 = vpop.permute.xlu1 %8045 }
 0x7df   : > { %7675 = vmatprep.subr.bf16.mxu0 %v9575_v5 }
 0x7e2   : > { %v9582_v62 = vpop.permute.xlu1 %8050 }
 0x7e6   : > { %v9585_v61 = vpop.permute.xlu1 %8055 }
 0x7ea   : > { %v9587_v45 = vpop.permute.xlu1 %8060 }
 0x7ee   : > { %v9593_v0 = vpop.permute.xlu1 %8065 }
 0x7f2   : > { %v9601_v58 = vpop.permute.xlu1 %8070 }
 0x814   : > { %v2687_v13 = vpop.xlane.xlu0 %2686 }
 0x815   : > { %v2781_v15 = vsub.f32 %v9436_v60, %v2687_v13  ;;  %v2763_v60 = vsel %vm2684_vm3, %v9536_v14, -inf }
 0x817   : > { %v2813_v27 = vmul.f32 1.442695, %v2781_v15 }
 0x818   : > { %v2696_v20 = vpop.xlane.xlu0 %2695 }
 0x819   : > { %8241 = vpow2.f32 %v2813_v27 }
 0x81c   : > { %v9595_v19 = vpop.xlane.xlu0 %2692 }
 0x820   : > { %v9603_v9 = vpop.xlane.xlu0 %2698 }
 0x823   : > { %v9589_v16 = vpop.eup %8241 }
 0x824   : > { %v2877_v51 = vsel %vm2684_vm3, %v9589_v16, 0.0  ;;  %v9608_v27 = vpop.xlane.xlu0 %2704 }
 0x825   : > { %2878 = vadd.xlane.f32.xlu0 %v2877_v51 }
 0x829   : > { %2764 = vmax.xlane.f32.xlu0 %v2763_v60  ;;  %v9610_v60 = vpop.xlane.xlu0 %2710 }
 0x82d   : > { %2770 = vmax.xlane.f32.xlu0 %v2769_v53  ;;  %v9613_v41 = vpop.xlane.xlu0 %2716 }
 0x831   : > { %v2690_v13 = vpop.xlane.xlu1 %2689  ;;  %2776 = vmax.xlane.f32.xlu0 %v2775_v23 }
 0x832   : > { %v2782_v15 = vsub.f32 %v9434_v12, %v2690_v13 }
 0x834   : > { %v2815_v51 = vmul.f32 1.442695, %v2782_v15 }
 0x835   : > { %v2702_v59 = vpop.xlane.xlu1 %2701 }
 0x836   : > { %8243 = vpow2.f32 %v2815_v51  ;;  %v2786_v56 = vsub.f32 %v9456_v4, %v2702_v59  ;;  %v9621_v51 = vpop.xlane.xlu0 %2722  ;;  %v2766_v4 = vsel %vm2684_vm3, %v9532_v49, -inf }
 0x838   : > { %v2823_v42 = vmul.f32 1.442695, %v2786_v56 }
 0x839   : > { %v2708_v57 = vpop.xlane.xlu1 %2707 }
 0x83a   : > { %v2788_v23 = vsub.f32 %v9464_v17, %v2708_v57  ;;  %8245 = vpow2.f32 %v2823_v42  ;;  %v2772_v42 = vsel %vm2684_vm3, %v9540_v28, -inf }
 0x83c   : > { %v2827_v13 = vmul.f32 1.442695, %v2788_v23 }
 0x83d   : > { %v2714_v54 = vpop.xlane.xlu1 %2713 }
 0x83e   : > { %v2790_v15 = vsub.f32 %v9468_v25, %v2714_v54  ;;  %8247 = vpow2.f32 %v2827_v13  ;;  %v9630_v54 = vpop.xlane.xlu0 %2728 }
 0x840   : > { %v9615_v53 = vpop.eup %8243  ;;  %v2831_v56 = vmul.f32 1.442695, %v2790_v15 }
 0x841   : > { %v2720_v46 = vpop.xlane.xlu1 %2719  ;;  %v2880_v12 = vsel %vm2684_vm3, %v9615_v53, 0.0 }
 0x842   : > { %2881 = vadd.xlane.f32.xlu1 %v2880_v12  ;;  %v2792_v57 = vsub.f32 %v9476_v31, %v2720_v46  ;;  %8249 = vpow2.f32 %v2831_v56  ;;  %v2784_v46 = vsub.f32 %v9452_v10, %v2696_v20  ;;  %v2735_v15 = vpop.xlane.xlu0 %2734 }
 0x844   : > { %v2835_v25 = vmul.f32 1.442695, %v2792_v57 }
 0x845   : > { %v2726_v59 = vpop.xlane.xlu1 %2725 }
 0x846   : > { %2767 = vmax.xlane.f32.xlu1 %v2766_v4  ;;  %v2794_v23 = vsub.f32 %v9480_v35, %v2726_v59  ;;  %v2778_v4 = vsel %vm2684_vm3, %v9548_v32, -inf  ;;  %8251 = vpow2.f32 %v2835_v25  ;;  %v2819_v35 = vmul.f32 1.442695, %v2784_v46 }
 0x847   : > { %8075 = vrot.lane.b32.xlu0 %v9560_v18, %s8718_s17  ;;  %v9635_v18 = vpop.eup %8245  ;;  %v2783_v59 = vsub.f32 %v9454_v3, %v9595_v19  ;;  %v2785_v25 = vsub.f32 %v9458_v39, %v9603_v9  ;;  %v2797_v46 = vsub.f32 %v9494_v8, %v2735_v15 }
 0x848   : > { %v2839_v31 = vmul.f32 1.442695, %v2794_v23  ;;  %v2892_v56 = vsel %vm2684_vm3, %v9635_v18, 0.0  ;;  %v9641_v57 = vpop.eup %8247  ;;  %v2741_v23 = vpop.xlane.xlu0 %2740 }
 0x849   : > { %v2732_v17 = vpop.xlane.xlu1 %2731  ;;  %v2898_v20 = vsel %vm2684_vm3, %v9641_v57, 0.0 }
 0x84a   : > { %2773 = vmax.xlane.f32.xlu1 %v2772_v42  ;;  %v2796_v13 = vsub.f32 %v9488_v43, %v2732_v17  ;;  %8253 = vpow2.f32 %v2839_v31  ;;  %v2817_v17 = vmul.f32 1.442695, %v2783_v59  ;;  %v2821_v31 = vmul.f32 1.442695, %v2785_v25 }
 0x84b   : > { %8255 = vpow2.f32 %v2819_v35  ;;  %v2789_v59 = vsub.f32 %v9470_v26, %v9610_v60  ;;  %v2799_v60 = vsub.f32 %v9504_v47, %v2741_v23 }
 0x84c   : > { %v9648_v43 = vpop.eup %8249  ;;  %v9660_v9 = vpop.xlane.xlu0 %2746 }
 0x84d   : > { %v2738_v12 = vpop.xlane.xlu1 %2737  ;;  %v2849_v47 = vmul.f32 1.442695, %v2799_v60 }
 0x84e   : > { %2779 = vmax.xlane.f32.xlu1 %v2778_v4  ;;  %v2843_v4 = vmul.f32 1.442695, %v2796_v13  ;;  %v2798_v10 = vsub.f32 %v9492_v63, %v2738_v12  ;;  %v2904_v63 = vsel %vm2684_vm3, %v9648_v43, 0.0  ;;  %v2787_v13 = vsub.f32 %v9466_v24, %v9608_v27 }
 0x850   : > { %8257 = vpow2.f32 %v2843_v4  ;;  %v2847_v3 = vmul.f32 1.442695, %v2798_v10  ;;  %v9655_v12 = vpop.eup %8251  ;;  %v2825_v35 = vmul.f32 1.442695, %v2787_v13  ;;  %v9679_v26 = vpop.xlane.xlu0 %2752 }
 0x851   : > { %v2744_v42 = vpop.xlane.xlu1 %2743  ;;  %8259 = vpow2.f32 %v2817_v17  ;;  %v2910_v8 = vsel %vm2684_vm3, %v9655_v12, 0.0  ;;  %v2791_v17 = vsub.f32 %v9478_v33, %v9613_v41  ;;  %v2793_v33 = vsub.f32 %v9482_v37, %v9621_v51 }
 0x852   : > { %2893 = vadd.xlane.f32.xlu1 %v2892_v56  ;;  %v2845_v56 = vmul.f32 1.442695, %v2797_v46  ;;  %8261 = vpow2.f32 %v2847_v3  ;;  %v2800_v39 = vsub.f32 %v9500_v48, %v2744_v42  ;;  %v2795_v37 = vsub.f32 %v9490_v44, %v9630_v54 }
 0x853   : > { %8263 = vpow2.f32 %v2821_v31  ;;  %v2833_v41 = vmul.f32 1.442695, %v2791_v17  ;;  %v2801_v44 = vsub.f32 %v9512_v6, %v9660_v9 }
 0x854   : > { %v9664_v15 = vpop.eup %8253  ;;  %8265 = vpow2.f32 %v2845_v56  ;;  %v2851_v24 = vmul.f32 1.442695, %v2800_v39  ;;  %v2759_v13 = vpop.xlane.xlu0 %2758 }
 0x855   : > { %v2750_v19 = vpop.xlane.xlu1 %2749  ;;  %v9671_v48 = vpop.eup %8255  ;;  %v2916_v42 = vsel %vm2684_vm3, %v9664_v15, 0.0  ;;  %8267 = vpow2.f32 %v2825_v35  ;;  %v2837_v35 = vmul.f32 1.442695, %v2793_v33  ;;  %v2803_v33 = vsub.f32 %v9520_v7, %v9679_v26 }
 0x856   : > { %2899 = vadd.xlane.f32.xlu1 %v2898_v20  ;;  %v2802_v27 = vsub.f32 %v9508_v1, %v2750_v19  ;;  %v2829_v20 = vmul.f32 1.442695, %v2789_v59  ;;  %8269 = vpow2.f32 %v2851_v24  ;;  %v2886_v19 = vsel %vm2684_vm3, %v9671_v48, 0.0 }
 0x858   : > { %v2855_v25 = vmul.f32 1.442695, %v2802_v27  ;;  %8271 = vpow2.f32 %v2829_v20  ;;  %v2841_v20 = vmul.f32 1.442695, %v2795_v37 }
 0x859   : > { %v9668_v4 = vpop.xlane.xlu1 %2755 }
 0x85a   : > { %2905 = vadd.xlane.f32.xlu1 %v2904_v63  ;;  %v9675_v10 = vpop.eup %8257  ;;  %8273 = vpow2.f32 %v2855_v25  ;;  %v2804_v6 = vsub.f32 %v9516_v2, %v9668_v4 }
 0x85b   : > { %v9682_v1 = vpop.eup %8259  ;;  %v2922_v3 = vsel %vm2684_vm3, %v9675_v10, 0.0  ;;  %8275 = vpow2.f32 %v2833_v41 }
 0x85c   : > { %v9688_v63 = vpop.eup %8261  ;;  %v2883_v39 = vsel %vm2684_vm3, %v9682_v1, 0.0  ;;  %8277 = vpow2.f32 %v2849_v47  ;;  %v2859_v47 = vmul.f32 1.442695, %v2804_v6 }
 0x85d   : > { %v2762_v46 = vpop.xlane.xlu1 %2761  ;;  %v9693_v31 = vpop.eup %8263  ;;  %v2928_v56 = vsel %vm2684_vm3, %v9688_v63, 0.0  ;;  %8279 = vpow2.f32 %v2837_v35 }
 0x85e   : > { %2911 = vadd.xlane.f32.xlu1 %v2910_v8  ;;  %v2806_v23 = vsub.f32 %v9524_v52, %v2762_v46  ;;  %v9699_v8 = vpop.eup %8265  ;;  %v2805_v52 = vsub.f32 %v9528_v29, %v2759_v13  ;;  %v2889_v27 = vsel %vm2684_vm3, %v9693_v31, 0.0  ;;  %v2853_v46 = vmul.f32 1.442695, %v2801_v44 }
 0x85f   : > { %v9704_v59 = vpop.eup %8267  ;;  %v2925_v24 = vsel %vm2684_vm3, %v9699_v8, 0.0 }
 0x860   : > { %v2863_v51 = vmul.f32 1.442695, %v2806_v23  ;;  %v2861_v54 = vmul.f32 1.442695, %v2805_v52  ;;  %v2895_v60 = vsel %vm2684_vm3, %v9704_v59, 0.0 }
 0x862   : > { %2917 = vadd.xlane.f32.xlu1 %v2916_v42  ;;  %v9710_v42 = vpop.eup %8269  ;;  %8281 = vpow2.f32 %v2863_v51 }
 0x863   : > { %v9714_v29 = vpop.eup %8271  ;;  %v2934_v17 = vsel %vm2684_vm3, %v9710_v42, 0.0  ;;  %8283 = vpow2.f32 %v2841_v20 }
 0x864   : > { %v9720_v25 = vpop.eup %8273  ;;  %8285 = vpow2.f32 %v2861_v54 }
 0x865   : > { %v9724_v9 = vpop.eup %8275  ;;  %8287 = vpow2.f32 %v2853_v46 }
 0x866   : > { %2923 = vadd.xlane.f32.xlu1 %v2922_v3  ;;  %2887 = vadd.xlane.f32.xlu0 %v2886_v19  ;;  %v2940_v3 = vsel %vm2684_vm3, %v9720_v25, 0.0  ;;  %v2901_v19 = vsel %vm2684_vm3, %v9714_v29, 0.0  ;;  %v9730_v41 = vpop.eup %8277  ;;  %v2907_v4 = vsel %vm2684_vm3, %v9724_v9, 0.0  ;;  %8289 = vpow2.f32 %v2859_v47 }
 0x867   : > { %v9734_v23 = vpop.eup %8279  ;;  %v2931_v2 = vsel %vm2684_vm3, %v9730_v41, 0.0 }
 0x868   : > { %v2913_v26 = vsel %vm2684_vm3, %v9734_v23, 0.0 }
 0x86a   : > { %2929 = vadd.xlane.f32.xlu1 %v2928_v56  ;;  %2884 = vadd.xlane.f32.xlu0 %v2883_v39  ;;  %v2857_v56 = vmul.f32 1.442695, %v2803_v33 }
 0x86c   : > { %v9740_v13 = vpop.eup %8281  ;;  %8291 = vpow2.f32 %v2857_v56 }
 0x86d   : > { %v9742_v39 = vpop.eup %8283  ;;  %v2952_v7 = vsel %vm2684_vm3, %v9740_v13, 0.0 }
 0x86e   : > { %2926 = vadd.xlane.f32.xlu1 %v2925_v24  ;;  %2890 = vadd.xlane.f32.xlu0 %v2889_v27  ;;  %v9748_v35 = vpop.eup %8285  ;;  %v2919_v52 = vsel %vm2684_vm3, %v9742_v39, 0.0 }
 0x86f   : > { %v2949_v37 = vsel %vm2684_vm3, %v9748_v35, 0.0  ;;  %v9754_v51 = vpop.eup %8287 }
 0x870   : > { %v2937_v24 = vsel %vm2684_vm3, %v9754_v51, 0.0  ;;  %v9758_v27 = vpop.eup %8289 }
 0x871   : > { %v2946_v20 = vsel %vm2684_vm3, %v9758_v27, 0.0 }
 0x872   : > { %2935 = vadd.xlane.f32.xlu1 %v2934_v17  ;;  %2896 = vadd.xlane.f32.xlu0 %v2895_v60 }
 0x876   : > { %2941 = vadd.xlane.f32.xlu1 %v2940_v3  ;;  %2902 = vadd.xlane.f32.xlu0 %v2901_v19  ;;  %v9762_v44 = vpop.eup %8291 }
 0x877   : > { %v2943_v54 = vsel %vm2684_vm3, %v9762_v44, 0.0 }
 0x87a   : > { %2932 = vadd.xlane.f32.xlu1 %v2931_v2  ;;  %2908 = vadd.xlane.f32.xlu0 %v2907_v4 }
 0x87e   : > { %2953 = vadd.xlane.f32.xlu1 %v2952_v7  ;;  %2914 = vadd.xlane.f32.xlu0 %v2913_v26 }
 0x882   : > { %2950 = vadd.xlane.f32.xlu1 %v2949_v37  ;;  %2920 = vadd.xlane.f32.xlu0 %v2919_v52  ;;  %v8022_v52 = vunpack.i.l.bf16 %v9568_v40 }
 0x886   : > { %2938 = vadd.xlane.f32.xlu0 %v2937_v24 }
 0x88a   : > { %2947 = vadd.xlane.f32.xlu0 %v2946_v20 }
 0x88e   : > { %2944 = vadd.xlane.f32.xlu0 %v2943_v54 }
 0x8b2   : > { %v2879_v17 = vpop.xlane.xlu0 %2878 }
 0x8b3   : > { %8293 = vrcp.f32 %v2879_v17 }
 0x8b6   : > { %v2765_v6 = vpop.xlane.xlu0 %2764 }
 0x8b7   : > { %v2807_v19 = vsub.f32 %v9536_v14, %v2765_v6 }
 0x8b9   : > { %v2865_v4 = vmul.f32 1.442695, %v2807_v19 }
 0x8ba   : > { %v2771_v33 = vpop.xlane.xlu0 %2770 }
 0x8bb   : > { %v2809_v56 = vsub.f32 %v9544_v22, %v2771_v33 }
 0x8bd   : > { %v8294_v60 = vpop.eup %8293  ;;  %v2869_v20 = vmul.f32 1.442695, %v2809_v56 }
 0x8be   : > { %v3005_v46 = vmul.f32 %v8294_v60, %v9589_v16  ;;  %v8023_v16 = vunpack.i.h.bf16 %v9568_v40  ;;  %v2777_v54 = vpop.xlane.xlu0 %2776 }
 0x8c0   : > { %7374 = vmatprep.mubr.msk.f32.mxu1 %vm2684_vm3, %v3005_v46  ;;  %v9777_v60 = vpack.c.bf16 %v8023_v16, %v8022_v52 }
 0x8cf   : > { %v2882_v3 = vpop.xlane.xlu1 %2881 }
 0x8d0   : > { %8295 = vrcp.f32 %v2882_v3 }
 0x8d3   : > { %v2768_v47 = vpop.xlane.xlu1 %2767 }
 0x8d4   : > { %v2808_v2 = vsub.f32 %v9532_v49, %v2768_v47 }
 0x8d6   : > { %v2867_v7 = vmul.f32 1.442695, %v2808_v2 }
 0x8d7   : > { %v2774_v26 = vpop.xlane.xlu1 %2773 }
 0x8d8   : > { %8297 = vpow2.f32 %v2867_v7  ;;  %v2810_v37 = vsub.f32 %v9540_v28, %v2774_v26  ;;  %v2811_v28 = vsub.f32 %v9552_v38, %v2777_v54  ;;  %v9800_v26 = vpop.permute.xlu0 %8075 }
 0x8d9   : > { %8299 = vpow2.f32 %v2865_v4 }
 0x8da   : > { %v8296_v24 = vpop.eup %8295  ;;  %v2871_v14 = vmul.f32 1.442695, %v2810_v37  ;;  %v2873_v3 = vmul.f32 1.442695, %v2811_v28 }
 0x8db   : > { %v2780_v17 = vpop.xlane.xlu1 %2779  ;;  %v3006_v49 = vmul.f32 %v8296_v24, %v9615_v53 }
 0x8dc   : > { %8301 = vpow2.f32 %v2871_v14  ;;  %v2812_v22 = vsub.f32 %v9548_v32, %v2780_v17 }
 0x8dd   : > { %7375 = vmatmul.mubr.msk.f32.vlgmr.msra.gmra.mrb[30].mxu1 %vm2684_vm3, %v3006_v49  ;;  %8303 = vpow2.f32 %v2869_v20 }
 0x8de   : > { %v2875_v46 = vmul.f32 1.442695, %v2812_v22  ;;  %7657 = vmatpush3.bf16.msra.mxu1 %v9570_v50 }
 0x8df   : > { %7659 = vmatprep.subr.bf16.mxu1 %v9777_v60  ;;  %v2894_v40 = vpop.xlane.xlu1 %2893 }
 0x8e0   : > { %8305 = vpow2.f32 %v2875_v46 }
 0x8e1   : > { %8307 = vpow2.f32 %v2873_v3 }
 0x8e2   : > { %v9782_v6 = vpop.eup %8297 }
 0x8e3   : > { %v2900_v53 = vpop.xlane.xlu1 %2899  ;;  %v2958_v32 = vsel %vm2684_vm3, %v9782_v6, 0.0  ;;  %v9786_v19 = vpop.eup %8299 }
 0x8e4   : > { %2959 = vadd.xlane.f32.xlu1 %v2958_v32  ;;  %v2955_v50 = vsel %vm2684_vm3, %v9786_v19, 0.0 }
 0x8e6   : > { %v9788_v33 = vpop.eup %8301 }
 0x8e7   : > { %v2906_v38 = vpop.xlane.xlu1 %2905  ;;  %v2964_v47 = vsel %vm2684_vm3, %v9788_v33, 0.0  ;;  %v9794_v2 = vpop.eup %8303 }
 0x8e8   : > { %2956 = vadd.xlane.f32.xlu1 %v2955_v50  ;;  %2965 = vadd.xlane.f32.xlu0 %v2964_v47  ;;  %v2961_v56 = vsel %vm2684_vm3, %v9794_v2, 0.0  ;;  %v8028_v50 = vunpack.i.h.bf16 %v9572_v11  ;;  %v8027_v47 = vunpack.i.l.bf16 %v9572_v11 }
 0x8ea   : > { %v9798_v7 = vpop.eup %8305 }
 0x8eb   : > { %v2912_v4 = vpop.xlane.xlu1 %2911  ;;  %v2970_v16 = vsel %vm2684_vm3, %v9798_v7, 0.0  ;;  %v9804_v52 = vpop.eup %8307 }
 0x8ec   : > { %2962 = vadd.xlane.f32.xlu1 %v2961_v56  ;;  %v2967_v14 = vsel %vm2684_vm3, %v9804_v52, 0.0 }
 0x8ef   : > { %v2918_v37 = vpop.xlane.xlu1 %2917 }
 0x8f0   : > { %2971 = vadd.xlane.f32.xlu1 %v2970_v16 }
 0x8f3   : > { %v2924_v24 = vpop.xlane.xlu1 %2923  ;;  %v2888_v20 = vpop.xlane.xlu0 %2887 }
 0x8f4   : > { %2968 = vadd.xlane.f32.xlu1 %v2967_v14  ;;  %8309 = vrcp.f32 %v2888_v20  ;;  %v8038_v14 = vunpack.i.h.bf16 %v9578_v21 }
 0x8f7   : > { %v2930_v54 = vpop.xlane.xlu1 %2929  ;;  %v2885_v17 = vpop.xlane.xlu0 %2884 }
 0x8f8   : > { %8311 = vrcp.f32 %v2885_v17  ;;  %v8037_v17 = vunpack.i.l.bf16 %v9578_v21  ;;  %v8048_v21 = vunpack.i.h.bf16 %v9580_v36 }
 0x8f9   : > { %8313 = vrcp.f32 %v2894_v40 }
 0x8fb   : > { %v2927_v49 = vpop.xlane.xlu1 %2926  ;;  %v2891_v22 = vpop.xlane.xlu0 %2890 }
 0x8fc   : > { %8315 = vrcp.f32 %v2891_v22 }
 0x8fd   : > { %8317 = vrcp.f32 %v2900_v53 }
 0x8fe   : > { %8085 = vrot.lane.b32.xlu0 %v9564_v30, %s8718_s17  ;;  %v8310_v3 = vpop.eup %8309 }
 0x8ff   : > { %v2936_v28 = vpop.xlane.xlu1 %2935  ;;  %v2897_v46 = vpop.xlane.xlu0 %2896  ;;  %v3008_v40 = vmul.f32 %v8310_v3, %v9671_v48  ;;  %v8047_v3 = vunpack.i.l.bf16 %v9580_v36  ;;  %v8053_v36 = vunpack.i.h.bf16 %v9582_v62 }
 0x900   : > { %8319 = vrcp.f32 %v2897_v46 }
 0x901   : > { %8321 = vrcp.f32 %v2906_v38  ;;  %v7662_v38 = vpack.c.bf16 %v8028_v50, %v8027_v47 }
 0x902   : > { %v8312_v32 = vpop.eup %8311 }
 0x903   : > { %v2942_v56 = vpop.xlane.xlu1 %2941  ;;  %v2903_v16 = vpop.xlane.xlu0 %2902  ;;  %v3007_v20 = vmul.f32 %v8312_v32, %v9682_v1 }
 0x904   : > { %8323 = vrcp.f32 %v2903_v16  ;;  %v8314_v30 = vpop.eup %8313 }
 0x905   : > { %8080 = vrot.lane.b32.xlu1 %v9444_v55, %s8718_s17  ;;  %7381 = vmatprep.mubr.msk.f32.mxu1 %vm2684_vm3, %v3007_v20  ;;  %8325 = vrcp.f32 %v2912_v4  ;;  %v3010_v55 = vmul.f32 %v8314_v30, %v9635_v18  ;;  %v7670_v4 = vpack.c.bf16 %v8038_v14, %v8037_v17  ;;  %v8067_v17 = vunpack.i.l.bf16 %v9593_v0  ;;  %s10926_s17 = scalar_lea.hbm %s10987_s9, %s7021_s6 }
 0x906   : > { %v8316_v53 = vpop.eup %8315  ;;  %7382 = vmatmul.mubr.msk.f32.vlgmr.msra.gmra.mrb[32].mxu1 %vm2684_vm3, %v3008_v40 }
 0x907   : > { %v2933_v11 = vpop.xlane.xlu1 %2932  ;;  %v2909_v22 = vpop.xlane.xlu0 %2908  ;;  %7661 = vmatpush3.bf16.msra.mxu1 %v9777_v60  ;;  %v3009_v48 = vmul.f32 %v8316_v53, %v9693_v31 }
 0x908   : > { %7663 = vmatprep.subr.bf16.mxu1 %v7662_v38  ;;  %8327 = vrcp.f32 %v2909_v22  ;;  %v8318_v1 = vpop.eup %8317 }
 0x909   : > { %7388 = vmatprep.mubr.msk.f32.mxu1 %vm2684_vm3, %v3009_v48  ;;  %8329 = vrcp.f32 %v2918_v37  ;;  %v3012_v18 = vmul.f32 %v8318_v1, %v9641_v57  ;;  %v8052_v37 = vunpack.i.l.bf16 %v9582_v62  ;;  %v8063_v62 = vunpack.i.h.bf16 %v9587_v45 }
 0x90a   : > { %v8320_v46 = vpop.eup %8319  ;;  %7389 = vmatmul.mubr.msk.f32.vlgmr.msra.gmra.mrb[34].mxu1 %vm2684_vm3, %v3010_v55  ;;  %8331 = vrcp.f32 %v2927_v49  ;;  %v7678_v49 = vpack.c.bf16 %v8048_v21, %v8047_v3  ;;  %v8073_v55 = vunpack.i.h.bf16 %v9601_v58  ;;  %v8072_v1 = vunpack.i.l.bf16 %v9601_v58 }
 0x90b   : > { %v2915_v32 = vpop.xlane.xlu0 %2914  ;;  %7665 = vmatpush3.bf16.msra.mxu1 %v7662_v38  ;;  %v3011_v31 = vmul.f32 %v8320_v46, %v9704_v59  ;;  %v2954_v60 = vpop.xlane.xlu1 %2953 }
 0x90c   : > { %7671 = vmatprep.subr.bf16.mxu1 %v7670_v4  ;;  %8333 = vrcp.f32 %v2915_v32  ;;  %v8322_v50 = vpop.eup %8321 }
 0x90d   : > { %8335 = vrcp.f32 %v2924_v24  ;;  %7395 = vmatprep.mubr.msk.f32.mxu1 %vm2684_vm3, %v3011_v31  ;;  %v3014_v57 = vmul.f32 %v8322_v50, %v9648_v43  ;;  %v8078_v50 = vunpack.i.h.bf16 %v9800_v26 }
 0x90e   : > { %v8324_v47 = vpop.eup %8323  ;;  %8337 = vrcp.f32 %v2930_v54  ;;  %7396 = vmatmul.mubr.msk.f32.vlgmr.msra.gmra.mrb[36].mxu1 %vm2684_vm3, %v3012_v18  ;;  %v8062_v54 = vunpack.i.l.bf16 %v9587_v45  ;;  %v7694_v18 = vpack.c.bf16 %v8073_v55, %v8072_v1 }
 0x90f   : > { %v2921_v16 = vpop.xlane.xlu0 %2920  ;;  %8339 = vrcp.f32 %v2936_v28  ;;  %7673 = vmatpush3.bf16.msra.mxu1 %v7670_v4  ;;  %v3013_v59 = vmul.f32 %v8324_v47, %v9714_v29  ;;  %v8326_v24 = vpop.eup %8325  ;;  %v7682_v28 = vpack.c.bf16 %v8053_v36, %v8052_v37  ;;  %v8058_v4 = vunpack.i.h.bf16 %v9585_v61 }
 0x910   : > { %7679 = vmatprep.subr.bf16.mxu1 %v7678_v49  ;;  %8341 = vrcp.f32 %v2921_v16  ;;  %v2951_v40 = vpop.xlane.xlu1 %2950  ;;  %v3016_v53 = vmul.f32 %v8326_v24, %v9655_v12 }
 0x911   : > { %8343 = vrcp.f32 %v2933_v11  ;;  %7402 = vmatprep.mubr.msk.f32.mxu0 %vm2684_vm3, %v3013_v59  ;;  %v7686_v11 = vpack.c.bf16 %v8063_v62, %v8062_v54 }
 0x912   : > { %v8328_v20 = vpop.eup %8327  ;;  %8345 = vrcp.f32 %v2942_v56  ;;  %7403 = vmatmul.mubr.msk.f32.vlgmr.msra.gmra.mrb[26].mxu0 %vm2684_vm3, %v3014_v57  ;;  %v8068_v56 = vunpack.i.h.bf16 %v9593_v0 }
 0x913   : > { %v2939_v30 = vpop.xlane.xlu0 %2938  ;;  %7677 = vmatpush3.bf16.msra.mxu0 %v9575_v5  ;;  %v3015_v43 = vmul.f32 %v8328_v20, %v9724_v9  ;;  %v8330_v29 = vpop.eup %8329 }
 0x914   : > { %8347 = vrcp.f32 %v2939_v30  ;;  %7683 = vmatprep.subr.bf16.mxu0 %v7682_v28  ;;  %v8332_v14 = vpop.eup %8331  ;;  %v3018_v12 = vmul.f32 %v8330_v29, %v9664_v15  ;;  %v7690_v21 = vpack.c.bf16 %v8068_v56, %v8067_v17  ;;  %v8057_v15 = vunpack.i.l.bf16 %v9585_v61 }
 0x915   : > { %8349 = vrcp.f32 %v2951_v40  ;;  %7409 = vmatprep.mubr.msk.f32.mxu1 %vm2684_vm3, %v3015_v43  ;;  %v3021_v0 = vmul.f32 %v8332_v14, %v9699_v8  ;;  %v8077_v61 = vunpack.i.l.bf16 %v9800_v26 }
 0x916   : > { %v8334_v45 = vpop.eup %8333  ;;  %7410 = vmatmul.mubr.msk.f32.vlgmr.msra.gmra.mrb[38].mxu1 %vm2684_vm3, %v3016_v53  ;;  %8351 = vrcp.f32 %v2954_v60 }
 0x917   : > { %v2948_v5 = vpop.xlane.xlu0 %2947  ;;  %v8336_v38 = vpop.eup %8335  ;;  %7681 = vmatpush3.bf16.msra.mxu1 %v7678_v49  ;;  %v3017_v9 = vmul.f32 %v8334_v45, %v9734_v23  ;;  %v7702_v49 = vpack.c.bf16 %v8078_v50, %v8077_v61 }
 0x918   : > { %v8338_v22 = vpop.eup %8337  ;;  %7687 = vmatprep.subr.bf16.mxu1 %v7686_v11  ;;  %8353 = vrcp.f32 %v2948_v5  ;;  %v3020_v8 = vmul.f32 %v8336_v38, %v9675_v10 }
 0x919   : > { %v8340_v48 = vpop.eup %8339  ;;  %7416 = vmatprep.mubr.msk.f32.mxu0 %vm2684_vm3, %v3017_v9  ;;  %v3022_v31 = vmul.f32 %v8338_v22, %v9688_v63  ;;  %v7698_v63 = vpack.c.bf16 %v8058_v4, %v8057_v15  ;;  %v8161_v4 = vld [vmem:[#allocation8] sm:$0xff]  }
 0x91a   : > { %v8342_v46 = vpop.eup %8341  ;;  %7417 = vmatmul.mubr.msk.f32.vlgmr.msra.gmra.mrb[28].mxu0 %vm2684_vm3, %v3018_v12  ;;  %v3024_v36 = vmul.f32 %v8340_v48, %v9710_v42 }
 0x91b   : > { %v2945_v3 = vpop.xlane.xlu0 %2944  ;;  %v8344_v23 = vpop.eup %8343  ;;  %7685 = vmatpush3.bf16.msra.mxu0 %v7682_v28  ;;  %7430 = vmatprep.mubr.msk.f32.mxu0 %vm2684_vm3, %v3021_v0  ;;  %v3019_v58 = vmul.f32 %v8342_v46, %v9742_v39 }
 0x91c   : > { %8355 = vrcp.f32 %v2945_v3  ;;  %v8346_v32 = vpop.eup %8345  ;;  %7691 = vmatprep.subr.bf16.mxu0 %v7690_v21  ;;  %v3023_v39 = vmul.f32 %v8344_v23, %v9730_v41 }
 0x91d   : > { %7423 = vmatprep.mubr.msk.f32.mxu1 %vm2684_vm3, %v3019_v58  ;;  %v3026_v37 = vmul.f32 %v8346_v32, %v9720_v25  ;;  %v8162_v32 = vld [vmem:[#allocation8 + $0x8] sm:$0xff]  }
 0x91e   : > { %v8348_v60 = vpop.eup %8347  ;;  %7424 = vmatmul.mubr.msk.f32.vlgmr.msra.gmra.mrb[40].mxu1 %vm2684_vm3, %v3020_v8  ;;  %7431 = vmatmul.mubr.msk.f32.vlgmr.msra.gmra.mrb[30].mxu0 %vm2684_vm3, %v3022_v31 }
 0x91f   : > { %v3025_v47 = vmul.f32 %v8348_v60, %v9754_v51  ;;  %v8350_v10 = vpop.eup %8349  ;;  %7689 = vmatpush3.bf16.msra.mxu1 %v7686_v11  ;;  %7693 = vmatpush3.bf16.msra.mxu0 %v7690_v21 }
 0x920   : > { %7437 = vmatprep.mubr.msk.f32.mxu1 %vm2684_vm3, %v3023_v39  ;;  %7695 = vmatprep.subr.bf16.mxu1 %v7694_v18  ;;  %v8352_v26 = vpop.eup %8351  ;;  %v3029_v41 = vmul.f32 %v8350_v10, %v9748_v35 }
 0x921   : > { %7699 = vmatprep.subr.bf16.mxu0 %v7698_v63  ;;  %7444 = vmatprep.mubr.msk.f32.mxu0 %vm2684_vm3, %v3025_v47  ;;  %v3030_v42 = vmul.f32 %v8352_v26, %v9740_v13 }
 0x922   : > { %7438 = vmatmul.mubr.msk.f32.vlgmr.msra.gmra.mrb[42].mxu1 %vm2684_vm3, %v3024_v36  ;;  %7445 = vmatmul.mubr.msk.f32.vlgmr.msra.gmra.mrb[32].mxu0 %vm2684_vm3, %v3026_v37  ;;  %v8354_v51 = vpop.eup %8353 }
 0x923   : > { %7697 = vmatpush3.bf16.msra.mxu1 %v7694_v18  ;;  %7701 = vmatpush3.bf16.msra.mxu0 %v7698_v63  ;;  %v3028_v59 = vmul.f32 %v8354_v51, %v9758_v27 }
 0x924   : > { %7458 = vmatprep.mubr.msk.f32.mxu0 %vm2684_vm3, %v3029_v41  ;;  %7703 = vmatprep.subr.bf16.mxu1 %v7702_v49 }
 0x926   : > { %v8356_v25 = vpop.eup %8355  ;;  %7459 = vmatmul.mubr.msk.f32.vlgmr.msra.gmra.mrb[34].mxu0 %vm2684_vm3, %v3030_v42 }
 0x927   : > { %v3027_v16 = vmul.f32 %v8356_v25, %v9762_v44 }
 0x929   : > { %7451 = vmatprep.mubr.msk.f32.mxu1 %vm2684_vm3, %v3027_v16 }
 0x92a   : > { %7452 = vmatmul.mubr.msk.f32.vlgmr.msra.gmra.mrb[44].mxu1 %vm2684_vm3, %v3028_v59 }
 0x92b   : > { %7705 = vmatpush3.bf16.msra.mxu1 %v7702_v49 }
 0x971   : > { %v2960_v35 = vpop.xlane.xlu1 %2959 }
 0x972   : > { %8357 = vrcp.f32 %v2960_v35 }
 0x975   : > { %v2957_v57 = vpop.xlane.xlu1 %2956  ;;  %v2966_v24 = vpop.xlane.xlu0 %2965 }
 0x976   : > { %8359 = vrcp.f32 %v2957_v57 }
 0x979   : > { %v2963_v13 = vpop.xlane.xlu1 %2962  ;;  %v8086_v20 = vpop.permute.xlu0 %8085 }
 0x97a   : > { %8361 = vrcp.f32 %v2963_v13  ;;  %v8088_v62 = vunpack.i.h.bf16 %v8086_v20  ;;  %v8087_v54 = vunpack.i.l.bf16 %v8086_v20 }
 0x97b   : > { %8363 = vrcp.f32 %v2966_v24 }
 0x97c   : > { %v7710_v40 = vpack.c.bf16 %v8088_v62, %v8087_v54  ;;  %v8358_v44 = vpop.eup %8357 }
 0x97d   : > { %v2972_v28 = vpop.xlane.xlu1 %2971  ;;  %v3032_v29 = vmul.f32 %v8358_v44, %v9782_v6 }
 0x97e   : > { %7711 = vmatprep.subr.bf16.mxu1 %v7710_v40  ;;  %8365 = vrcp.f32 %v2972_v28 }
 0x980   : > { %v8360_v27 = vpop.eup %8359 }
 0x981   : > { %v2969_v30 = vpop.xlane.xlu1 %2968  ;;  %v3031_v43 = vmul.f32 %v8360_v27, %v9786_v19 }
 0x982   : > { %8367 = vrcp.f32 %v2969_v30 }
 0x983   : > { %7465 = vmatprep.mubr.msk.f32.mxu1 %vm2684_vm3, %v3031_v43 }
 0x984   : > { %v8362_v53 = vpop.eup %8361  ;;  %7466 = vmatmul.mubr.msk.f32.vlgmr.msra.gmra.mrb[46].mxu1 %vm2684_vm3, %v3032_v29 }
 0x985   : > { %7713 = vmatpush3.bf16.msra.mxu1 %v7710_v40  ;;  %v8081_v14 = vpop.permute.xlu1 %8080  ;;  %v3033_v45 = vmul.f32 %v8362_v53, %v9794_v2  ;;  %v8364_v5 = vpop.eup %8363 }
 0x986   : > { %v8083_v56 = vunpack.i.h.bf16 %v8081_v14  ;;  %v8082_v17 = vunpack.i.l.bf16 %v8081_v14  ;;  %v3034_v38 = vmul.f32 %v8364_v5, %v9788_v33 }
 0x987   : > { %7472 = vmatprep.mubr.msk.f32.mxu0 %vm2684_vm3, %v3033_v45 }
 0x988   : > { %v7706_v11 = vpack.c.bf16 %v8083_v56, %v8082_v17  ;;  %v8366_v19 = vpop.eup %8365 }
 0x989   : > { %v3036_v22 = vmul.f32 %v8366_v19, %v9798_v7 }
 0x98a   : > { %7707 = vmatprep.subr.bf16.mxu0 %v7706_v11 }
 0x98b   : > { %7709 = vmatpush3.bf16.msra.mxu0 %v7706_v11 }
 0x98c   : > { %v8368_v6 = vpop.eup %8367  ;;  %7482 = vmatprep.subr.bf16.mxu0 %v8161_v4 }
 0x98d   : > { %v3035_v9 = vmul.f32 %v8368_v6, %v9804_v52 }
 0x98e   : > { %7473 = vmatmul.mubr.msk.f32.vlgmr.msra.gmra.mrb[36].mxu0 %vm2684_vm3, %v3034_v38 }
 0x98f   : > { %7479 = vmatprep.mubr.msk.f32.mxu1 %vm2684_vm3, %v3035_v9  ;;  %7483 = vmatpush3.bf16.msra.mxu0 %v8161_v4 }
 0x990   : > { %7480 = vmatmul.mubr.msk.f32.vlgmr.msra.gmra.mrb[48].mxu1 %vm2684_vm3, %v3036_v22  ;;  %7484 = vmatprep.subr.bf16.mxu0 %v8162_v32 }
 0x993   : > { %7485 = vmatpush3.bf16.msra.mxu0 %v8162_v32 }
 0x9b0   : > { %v7376_v2 = vpop.f32.mrb[30].mxu1 }
 0x9b1   : > { %v9892_v12 = vpop.f32.mrb[31].mxu1 }
 0x9d9   : > { %v7383_v48 = vpop.f32.mrb[32].mxu1 }
 0x9da   : > { %v3202_v55 = vpop.f32.mrb[33].mxu1 }
 0x9db   : > { %v8089_v1 = vpack.i.bf16 %v7383_v48, %v3202_v55 }
 0x9dd   : > { %8090 = vrot.lane.b32.xlu1 %v8089_v1, %s8719_s15  ;;  %v7390_v33 = vpop.f32.mrb[34].mxu1 }
 0x9de   : > { %v3289_v0 = vpop.f32.mrb[35].mxu1 }
 0x9df   : > { %v8094_v52 = vpack.i.bf16 %v7390_v33, %v3289_v0 }
 0x9e1   : > { %8095 = vrot.lane.b32.xlu1 %v8094_v52, %s8720_s25  ;;  %v7397_v7 = vpop.f32.mrb[36].mxu1 }
 0x9e2   : > { %v3376_v46 = vpop.f32.mrb[37].mxu1 }
 0x9e3   : > { %v8099_v21 = vpack.i.bf16 %v7397_v7, %v3376_v46 }
 0x9e5   : > { %8100 = vrot.lane.b32.xlu1 %v8099_v21, %s8721_s29  ;;  %v9897_v3 = vpop.f32.mrb[26].mxu0 }
 0x9e6   : > { %v9899_v23 = vpop.f32.mrb[27].mxu0 }
 0x9e9   : > { %v7411_v15 = vpop.f32.mrb[38].mxu1 }
 0x9ea   : > { %v3550_v58 = vpop.f32.mrb[39].mxu1 }
 0x9eb   : > { %v8104_v8 = vpack.i.bf16 %v7411_v15, %v3550_v58 }
 0x9ed   : > { %8105 = vrot.lane.b32.xlu0 %v8104_v8, %s8719_s15  ;;  %v7418_v31 = vpop.f32.mrb[28].mxu0 }
 0x9ee   : > { %v3637_v60 = vpop.f32.mrb[29].mxu0 }
 0x9ef   : > { %v8109_v18 = vpack.i.bf16 %v7418_v31, %v3637_v60 }
 0x9f1   : > { %8110 = vrot.lane.b32.xlu0 %v8109_v18, %s8720_s25  ;;  %v7425_v50 = vpop.f32.mrb[40].mxu1  ;;  %v9903_v61 = vpop.f32.mrb[30].mxu0 }
 0x9f2   : > { %v3724_v39 = vpop.f32.mrb[41].mxu1  ;;  %v9905_v47 = vpop.f32.mrb[31].mxu0 }
 0x9f3   : > { %v8114_v10 = vpack.i.bf16 %v7425_v50, %v3724_v39 }
 0x9f5   : > { %8115 = vrot.lane.b32.xlu0 %v8114_v10, %s8721_s29  ;;  %v7439_v63 = vpop.f32.mrb[42].mxu1  ;;  %v7446_v36 = vpop.f32.mrb[32].mxu0 }
 0x9f6   : > { %v3898_v37 = vpop.f32.mrb[43].mxu1  ;;  %v3985_v26 = vpop.f32.mrb[33].mxu0 }
 0x9f7   : > { %v8119_v49 = vpack.i.bf16 %v7439_v63, %v3898_v37  ;;  %v8124_v41 = vpack.i.bf16 %v7446_v36, %v3985_v26 }
 0x9f9   : > { %8120 = vrot.lane.b32.xlu1 %v8119_v49, %s8719_s15  ;;  %v9909_v51 = vpop.f32.mrb[34].mxu0 }
 0x9fa   : > { %v9911_v42 = vpop.f32.mrb[35].mxu0 }
 0x9fd   : > { %v7453_v25 = vpop.f32.mrb[44].mxu1  ;;  %8125 = vrot.lane.b32.xlu1 %v8124_v41, %s8720_s25 }
 0x9fe   : > { %v4072_v16 = vpop.f32.mrb[45].mxu1 }
 0x9ff   : > { %v8129_v59 = vpack.i.bf16 %v7453_v25, %v4072_v16 }
 0xa01   : > { %8130 = vrot.lane.b32.xlu1 %v8129_v59, %s8721_s29 }
 0xa4f   : > { %v8091_v35 = vpop.permute.xlu1 %8090 }
 0xa50   : > { %v8093_v57 = vunpack.i.h.bf16 %v8091_v35  ;;  %v8092_v13 = vunpack.i.l.bf16 %v8091_v35 }
 0xa52   : > { %v4526_v40 = vsel %vm1295_vm1, %v7376_v2, %v8093_v57  ;;  %v4525_v27 = vsel %vm1295_vm1, %v9892_v12, %v8092_v13 }
 0xa53   : > { %v8096_v24 = vpop.permute.xlu1 %8095 }
 0xa54   : > { %v8098_v20 = vunpack.i.h.bf16 %v8096_v24  ;;  %v8097_v62 = vunpack.i.l.bf16 %v8096_v24 }
 0xa56   : > { %v4534_v53 = vsel %vm2684_vm3, %v4526_v40, %v8098_v20  ;;  %v4533_v14 = vsel %vm2684_vm3, %v4525_v27, %v8097_v62 }
 0xa57   : > { %v7467_v54 = vpop.f32.mrb[46].mxu1  ;;  %v8101_v28 = vpop.permute.xlu1 %8100 }
 0xa58   : > { %v4246_v44 = vpop.f32.mrb[47].mxu1  ;;  %v8103_v30 = vunpack.i.h.bf16 %v8101_v28  ;;  %v8102_v43 = vunpack.i.l.bf16 %v8101_v28 }
 0xa59   : > { %v8134_v29 = vpack.i.bf16 %v7467_v54, %v4246_v44 }
 0xa5a   : > { %v4543_v45 = vsel %vm4541_vm4, %v4534_v53, %v8103_v30  ;;  %v4542_v56 = vsel %vm4541_vm4, %v4533_v14, %v8102_v43  ;;  %v6891_v43 = vld [vmem:[#allocation3 + $0x8] ss:$0 sm:$0xff] }
 0xa5b   : > { %8135 = vrot.lane.b32.xlu0 %v8134_v29, %s8719_s15  ;;  %v4550_v17 = vpack.c.bf16 %v4543_v45, %v4542_v56 }
 0xa5d   : > { %7486 = vmatprep.mubr.msk.bf16.mxu0 %vm407_vm0, %v4550_v17 }
 0xa5f   : > { %v8106_v11 = vpop.permute.xlu0 %8105 }
 0xa60   : > { %v8108_v2 = vunpack.i.h.bf16 %v8106_v11  ;;  %v8107_v12 = vunpack.i.l.bf16 %v8106_v11 }
 0xa61   : > { %v7474_v5 = vpop.f32.mrb[36].mxu0 }
 0xa62   : > { %v4333_v19 = vpop.f32.mrb[37].mxu0  ;;  %v4528_v0 = vsel %vm1295_vm1, %v9897_v3, %v8108_v2  ;;  %v4527_v52 = vsel %vm1295_vm1, %v9899_v23, %v8107_v12 }
 0xa63   : > { %v8139_v6 = vpack.i.bf16 %v7474_v5, %v4333_v19  ;;  %v7481_v38 = vpop.f32.mrb[48].mxu1  ;;  %v8111_v9 = vpop.permute.xlu0 %8110  ;;  %v11049_v5 = vld [vmem:[#allocation22_spill] sm:$0xff] }
 0xa64   : > { %v4420_v22 = vpop.f32.mrb[49].mxu1  ;;  %v8113_v55 = vunpack.i.h.bf16 %v8111_v9  ;;  %v8112_v1 = vunpack.i.l.bf16 %v8111_v9 }
 0xa65   : > { %v8144_v48 = vpack.i.bf16 %v7481_v38, %v4420_v22  ;;  %8140 = vrot.lane.b32.xlu0 %v8139_v6, %s8720_s25  ;;  %v11051_v6 = vld [vmem:[#allocation21_spill] sm:$0xff]  ;;  %v11053_v22 = vld [vmem:[#allocation20_spill] sm:$0xff] }
 0xa66   : > { %v4535_v21 = vsel %vm2684_vm3, %v4527_v52, %v8112_v1  ;;  %v4536_v4 = vsel %vm2684_vm3, %v4528_v0, %v8113_v55 }
 0xa67   : > { %v8116_v33 = vpop.permute.xlu0 %8115 }
 0xa68   : > { %v8118_v7 = vunpack.i.h.bf16 %v8116_v33  ;;  %v8117_v46 = vunpack.i.l.bf16 %v8116_v33 }
 0xa69   : > { %8145 = vrot.lane.b32.xlu0 %v8144_v48, %s8721_s29  ;;  %s8723_s29 = smov [#allocation11]  }
 0xa6a   : > { %v4544_v15 = vsel %vm4541_vm4, %v4535_v21, %v8117_v46  ;;  %v4545_v58 = vsel %vm4541_vm4, %v4536_v4, %v8118_v7  ;;  %v11055_v46 = vld [vmem:[#allocation23_spill] sm:$0xff]  ;;  %s8633_s28 = sshll.u32 %s8723_s29, 4  ;;  %s8634_s28 = int_to_ptr.vmem [resolvable:$false] %s8633_s28 }
 0xa6b   : > { %v4551_v32 = vpack.c.bf16 %v4545_v58, %v4544_v15  ;;  %v8121_v8 = vpop.permute.xlu1 %8120  ;;  %v11057_v58 = vld [vmem:[#allocation24_spill] sm:$0xff]  ;;  %s8635_s22 = scalar_lea.vmem %s8634_s28, 2048 }
 0xa6c   : > { %v8123_v31 = vunpack.i.h.bf16 %v8121_v8  ;;  %v8122_v60 = vunpack.i.l.bf16 %v8121_v8  ;;  %v11059_v8 = vld [vmem:[#allocation25_spill] sm:$0xff] }
 0xa6d   : > { %7487 = vmatmul.mubr.msk.bf16.vlgmr.msra.gmra.mrb[40].mxu0 %vm407_vm0, %v4551_v32 }
 0xa6e   : > { %v4530_v39 = vsel %vm1295_vm1, %v9903_v61, %v8123_v31  ;;  %v4529_v10 = vsel %vm1295_vm1, %v9905_v47, %v8122_v60  ;;  %v11061_v60 = vld [vmem:[#allocation26_spill] sm:$0xff] }
 0xa6f   : > { %v8126_v3 = vpop.permute.xlu1 %8125 }
 0xa70   : > { %v8128_v23 = vunpack.i.h.bf16 %v8126_v3  ;;  %v8127_v18 = vunpack.i.l.bf16 %v8126_v3 }
 0xa72   : > { %v4538_v37 = vsel %vm2684_vm3, %v4530_v39, %v8128_v23  ;;  %v4537_v26 = vsel %vm2684_vm3, %v4529_v10, %v8127_v18 }
 0xa73   : > { %v8131_v50 = vpop.permute.xlu1 %8130 }
 0xa74   : > { %v8133_v63 = vunpack.i.h.bf16 %v8131_v50  ;;  %v8132_v36 = vunpack.i.l.bf16 %v8131_v50 }
 0xa76   : > { %v4547_v49 = vsel %vm4541_vm4, %v4538_v37, %v8133_v63  ;;  %v4546_v41 = vsel %vm4541_vm4, %v4537_v26, %v8132_v36 }
 0xa77   : > { %v4552_v25 = vpack.c.bf16 %v4547_v49, %v4546_v41 }
 0xa79   : > { %7490 = vmatprep.mubr.msk.bf16.mxu0 %vm407_vm0, %v4552_v25 }
 0xacd   : > { %v8136_v16 = vpop.permute.xlu0 %8135 }
 0xace   : > { %v8138_v35 = vunpack.i.h.bf16 %v8136_v16  ;;  %v8137_v61 = vunpack.i.l.bf16 %v8136_v16 }
 0xad0   : > { %v4532_v13 = vsel %vm1295_vm1, %v9909_v51, %v8138_v35  ;;  %v4531_v20 = vsel %vm1295_vm1, %v9911_v42, %v8137_v61 }
 0xad7   : > { %v8141_v59 = vpop.permute.xlu0 %8140 }
 0xad8   : > { %v8143_v57 = vunpack.i.h.bf16 %v8141_v59  ;;  %v8142_v24 = vunpack.i.l.bf16 %v8141_v59 }
 0xada   : > { %v4539_v40 = vsel %vm2684_vm3, %v4531_v20, %v8142_v24  ;;  %v4540_v28 = vsel %vm2684_vm3, %v4532_v13, %v8143_v57 }
 0xadb   : > { %v8146_v47 = vpop.permute.xlu0 %8145 }
 0xadc   : > { %v8148_v62 = vunpack.i.h.bf16 %v8146_v47  ;;  %v8147_v54 = vunpack.i.l.bf16 %v8146_v47 }
 0xade   : > { %v4549_v44 = vsel %vm4541_vm4, %v4540_v28, %v8148_v62  ;;  %v4548_v27 = vsel %vm4541_vm4, %v4539_v40, %v8147_v54  ;;  %v8163_v28 = vld [vmem:[#allocation6] sm:$0xff]  }
 0xadf   : > { %v4553_v30 = vpack.c.bf16 %v4549_v44, %v4548_v27  ;;  %7494 = vmatprep.subr.bf16.mxu1 %v8163_v28  ;;  %v8164_v44 = vld [vmem:[#allocation6 + $0x8] sm:$0xff]  }
 0xae0   : > { %7495 = vmatpush3.bf16.msra.mxu1 %v8163_v28 }
 0xae1   : > { %7491 = vmatmul.mubr.msk.bf16.gmra.mrb[44].mxu0 %vm407_vm0, %v4553_v30  ;;  %7496 = vmatprep.subr.bf16.mxu1 %v8164_v44 }
 0xae4   : > { %7497 = vmatpush3.bf16.msra.mxu1 %v8164_v44 }
 0xb40   : > { %v7488_v29 = vpop.f32.mrb[40].mxu0 }
 0xb41   : > { %v4621_v53 = vpop.f32.mrb[41].mxu0  ;;  %v4630_v56 = vadd.f32 %v7488_v29, %v6891_v43 }
 0xb42   : > { %v4622_v51 = vadd.f32 %v6891_v43, %v4621_v53  ;;  %v7489_v14 = vpop.f32.mrb[42].mxu0 }
 0xb43   : > { %v4633_v45 = vadd.f32 %v7489_v14, %v6891_v43  ;;  %v4624_v42 = vpop.f32.mrb[43].mxu0  ;;  %v9965_v2 = vadd.f32 %v4630_v56, %v11053_v22 }
 0xb44   : > { %v9954_v17 = vadd.f32 %v4622_v51, %v9084_v34  ;;  %v4625_v11 = vadd.f32 %v6891_v43, %v4624_v42 }
 0xb45   : > { %v9957_v19 = vadd.f32 %v4633_v45, %v11049_v5  ;;  %11054 = vst [vmem:[#allocation20_spill] sm:$0xff] %v9965_v2  ;;  %v4668_v48 = vsel %vm407_vm0, %v9965_v2, 0.0 }
 0xb46   : > { %11048 = vst [vmem:[#allocation27_spill] sm:$0xff] %v9954_v17  ;;  %v9960_v38 = vadd.f32 %v4625_v11, %v11051_v6  ;;  %v4662_v9 = vsel %vm407_vm0, %v9954_v17, 0.0 }
 0xb47   : > { %11050 = vst [vmem:[#allocation22_spill] sm:$0xff] %v9957_v19  ;;  %4663 = vadd.xlane.f32.xlu1 %v4662_v9  ;;  %v4671_v34 = vsel %vm407_vm0, %v9957_v19, 0.0 }
 0xb48   : > { %11052 = vst [vmem:[#allocation21_spill] sm:$0xff] %v9960_v38  ;;  %v4665_v12 = vsel %vm407_vm0, %v9960_v38, 0.0 }
 0xb49   : > { %4666 = vadd.xlane.f32.xlu0 %v4665_v12 }
 0xb4b   : > { %4672 = vadd.xlane.f32.xlu1 %v4671_v34 }
 0xb4d   : > { %4669 = vadd.xlane.f32.xlu0 %v4668_v48 }
 0xbb4   : > { %v7492_v55 = vpop.f32.mrb[44].mxu0 }
 0xbb5   : > { %v4637_v1 = vpop.f32.mrb[45].mxu0  ;;  %v4646_v33 = vadd.f32 %v7492_v55, %v6891_v43 }
 0xbb6   : > { %v4638_v0 = vadd.f32 %v6891_v43, %v4637_v1  ;;  %v7493_v52 = vpop.f32.mrb[46].mxu0 }
 0xbb7   : > { %v4640_v7 = vpop.f32.mrb[47].mxu0  ;;  %v4649_v4 = vadd.f32 %v7493_v52, %v6891_v43  ;;  %v9977_v32 = vadd.f32 %v4646_v33, %v11057_v58  ;;  %v6907_v52 = vld [vmem:[#allocation3 + $0xc] ss:$0 sm:$0xff] }
 0xbb8   : > { %v9974_v21 = vadd.f32 %v4638_v0, %v11055_v46  ;;  %v4641_v15 = vadd.f32 %v6891_v43, %v4640_v7 }
 0xbb9   : > { %11058 = vst [vmem:[#allocation24_spill] sm:$0xff] %v9977_v32  ;;  %v9985_v23 = vadd.f32 %v4649_v4, %v11061_v60  ;;  %v4680_v50 = vsel %vm407_vm0, %v9977_v32, 0.0 }
 0xbba   : > { %11056 = vst [vmem:[#allocation23_spill] sm:$0xff] %v9974_v21  ;;  %v9980_v3 = vadd.f32 %v4641_v15, %v11059_v8  ;;  %v4674_v31 = vsel %vm407_vm0, %v9974_v21, 0.0 }
 0xbbb   : > { %4675 = vadd.xlane.f32.xlu0 %v4674_v31  ;;  %11062 = vst [vmem:[#allocation26_spill] sm:$0xff] %v9985_v23  ;;  %v4683_v39 = vsel %vm407_vm0, %v9985_v23, 0.0 }
 0xbbc   : > { %11060 = vst [vmem:[#allocation25_spill] sm:$0xff] %v9980_v3  ;;  %v4677_v18 = vsel %vm407_vm0, %v9980_v3, 0.0 }
 0xbbd   : > { %4678 = vadd.xlane.f32.xlu1 %v4677_v18 }
 0xbbf   : > { %4681 = vadd.xlane.f32.xlu0 %v4680_v50 }
 0xbc1   : > { %4684 = vadd.xlane.f32.xlu1 %v4683_v39 }
 0xbd4   : > { %v4664_v10 = vpop.xlane.xlu1 %4663 }
 0xbd5   : > { %v4686_v63 = vmul.f32 0.03125, %v4664_v10  ;;  %v6898_v10 = vld [vmem:[#allocation3 + $0x9] ss:$0 sm:$0xff] }
 0xbd6   : > { %v4667_v36 = vpop.xlane.xlu0 %4666 }
 0xbd7   : > { %v9994_v37 = vsub.f32 %v9954_v17, %v4686_v63  ;;  %v4687_v26 = vmul.f32 0.03125, %v4667_v36 }
 0xbd8   : > { %v4673_v49 = vpop.xlane.xlu1 %4672 }
 0xbd9   : > { %v9997_v41 = vsub.f32 %v9960_v38, %v4687_v26  ;;  %v4689_v25 = vmul.f32 0.03125, %v4673_v49  ;;  %v4702_v16 = vmul.f32 %v9994_v37, %v9994_v37 }
 0xbda   : > { %v4670_v59 = vpop.xlane.xlu0 %4669 }
 0xbdb   : > { %v10002_v35 = vsub.f32 %v9957_v19, %v4689_v25  ;;  %v4688_v61 = vmul.f32 0.03125, %v4670_v59  ;;  %v4710_v57 = vsel %vm407_vm0, %v4702_v16, 0.0  ;;  %v4703_v24 = vmul.f32 %v9997_v41, %v9997_v41  ;;  %v6899_v25 = vld [vmem:[#allocation3 + $0xa] ss:$0 sm:$0xff] }
 0xbdc   : > { %4711 = vadd.xlane.f32.xlu0 %v4710_v57 }
 0xbdd   : > { %v10008_v47 = vsub.f32 %v9965_v2, %v4688_v61  ;;  %v4713_v13 = vsel %vm407_vm0, %v4703_v24, 0.0  ;;  %v4705_v20 = vmul.f32 %v10002_v35, %v10002_v35 }
 0xbde   : > { %4714 = vadd.xlane.f32.xlu1 %v4713_v13 }
 0xbdf   : > { %v4704_v62 = vmul.f32 %v10008_v47, %v10008_v47  ;;  %v4719_v54 = vsel %vm407_vm0, %v4705_v20, 0.0 }
 0xbe1   : > { %v4716_v40 = vsel %vm407_vm0, %v4704_v62, 0.0 }
 0xbe2   : > { %4720 = vadd.xlane.f32.xlu1 %v4719_v54  ;;  %4717 = vadd.xlane.f32.xlu0 %v4716_v40 }
 0xc48   : > { %v4676_v27 = vpop.xlane.xlu0 %4675 }
 0xc49   : > { %v4690_v30 = vmul.f32 0.03125, %v4676_v27 }
 0xc4a   : > { %v4679_v43 = vpop.xlane.xlu1 %4678 }
 0xc4b   : > { %v10018_v29 = vsub.f32 %v9974_v21, %v4690_v30  ;;  %v4691_v53 = vmul.f32 0.03125, %v4679_v43 }
 0xc4c   : > { %v4682_v51 = vpop.xlane.xlu0 %4681 }
 0xc4d   : > { %v10021_v14 = vsub.f32 %v9980_v3, %v4691_v53  ;;  %v4692_v45 = vmul.f32 0.03125, %v4682_v51  ;;  %v4706_v42 = vmul.f32 %v10018_v29, %v10018_v29 }
 0xc4e   : > { %v4685_v56 = vpop.xlane.xlu1 %4684 }
 0xc4f   : > { %v10026_v11 = vsub.f32 %v9977_v32, %v4692_v45  ;;  %v4693_v5 = vmul.f32 0.03125, %v4685_v56  ;;  %v4722_v6 = vsel %vm407_vm0, %v4706_v42, 0.0  ;;  %v4707_v9 = vmul.f32 %v10021_v14, %v10021_v14 }
 0xc50   : > { %4723 = vadd.xlane.f32.xlu0 %v4722_v6 }
 0xc51   : > { %v10032_v22 = vsub.f32 %v9985_v23, %v4693_v5  ;;  %v4725_v12 = vsel %vm407_vm0, %v4707_v9, 0.0  ;;  %v4708_v34 = vmul.f32 %v10026_v11, %v10026_v11 }
 0xc52   : > { %4726 = vadd.xlane.f32.xlu1 %v4725_v12 }
 0xc53   : > { %v4728_v48 = vsel %vm407_vm0, %v4708_v34, 0.0  ;;  %v4709_v55 = vmul.f32 %v10032_v22, %v10032_v22 }
 0xc54   : > { %4729 = vadd.xlane.f32.xlu0 %v4728_v48 }
 0xc55   : > { %v4731_v1 = vsel %vm407_vm0, %v4709_v55, 0.0 }
 0xc56   : > { %4732 = vadd.xlane.f32.xlu1 %v4731_v1 }
 0xc69   : > { %v4712_v33 = vpop.xlane.xlu0 %4711 }
 0xc6a   : > { %v4734_v0 = vmul.f32 0.03125, %v4712_v33  ;;  %4906 = vrot.lane.b32.xlu0 %v6907_v52, %s8713_s11  ;;  %s10902_s11 = scalar_lea.vmem [#allocation11], %s6754_s16 }
 0xc6b   : > { %v4715_v7 = vpop.xlane.xlu1 %4714  ;;  %s6639_s14 = sshll.u32 %s10902_s11, 4  ;;  %s10930_s14 = int_to_ptr.vmem [resolvable:$true] %s6639_s14 }
 0xc6c   : > { %v4742_v46 = vadd.f32 1e-05, %v4734_v0  ;;  %v4735_v4 = vmul.f32 0.03125, %v4715_v7  ;;  %s8629_s25 = scalar_lea.vmem %s10930_s14, 1024  ;;  %p8636_p8 = scmp.lt.s32.totalorder %s10930_s14, %s8634_s28 }
 0xc6d   : > { %p8630_p2 = scmp.ne.s32.totalorder %s10930_s14, %s8629_s25  ;;  %p8637_p11 = scmp.lt.s32.totalorder %s8635_s22, %s8629_s25 }
 0xc6e   : > { %8369 = vrsqrt.f32 %v4742_v46  ;;  %v4743_v15 = vadd.f32 1e-05, %v4735_v4 }
 0xc6f   : > { %v4721_v58 = vpop.xlane.xlu1 %4720  ;;  %v4718_v8 = vpop.xlane.xlu0 %4717  ;;  %p8631_p4 = pnand %p8630_p2, %p11143_p3  ;;  %p8638_p5 = por %p8637_p11, %p8636_p8 }
 0xc70   : > { %8371 = vrsqrt.f32 %v4743_v15  ;;  %v4737_v31 = vmul.f32 0.03125, %v4721_v58  ;;  %v4736_v60 = vmul.f32 0.03125, %v4718_v8 }
 0xc71   : > { %p8632_p7 = pneg %p8631_p4 }
 0xc72   : > { %v4745_v18 = vadd.f32 1e-05, %v4737_v31  ;;  %v4744_v50 = vadd.f32 1e-05, %v4736_v60 }
 0xc73   : > { %p8639_p0 = pnand %p8638_p5, %p8632_p7 }
 0xc74   : > { %8373 = vrsqrt.f32 %v4745_v18 }
 0xc75   : > { %8375 = vrsqrt.f32 %v4744_v50 }
 0xc78   : > { %v8370_v39 = vpop.eup %8369 }
 0xc79   : > { %v4758_v63 = vmul.f32 %v8370_v39, %v9994_v37 }
 0xc7a   : > { %v8372_v36 = vpop.eup %8371 }
 0xc7b   : > { %v4759_v26 = vmul.f32 %v8372_v36, %v9997_v41  ;;  %v4770_v49 = vmul.f32 %v6898_v10, %v4758_v63  ;;  %v8722_v36 = vmov 0.0  }
 0xc7c   : > { %5005 = vst.msk [vmem:[#allocation2] sm:$0xff] %vm407_vm0, %v8722_v36  ;;  %5006 = vst.msk [vmem:[#allocation2 + $0x8] sm:$0xff] %vm407_vm0, %v8722_v36 }
 0xc7d   : > { %v4771_v16 = vmul.f32 %v6898_v10, %v4759_v26  ;;  %v4782_v24 = vadd.f32 %v6899_v25, %v4770_v49  ;;  %5007 = vst.msk [vmem:[#allocation2 + $0x30] sm:$0xff] %vm407_vm0, %v8722_v36  ;;  %5008 = vst.msk [vmem:[#allocation2 + $0x38] sm:$0xff] %vm407_vm0, %v8722_v36 }
 0xc7e   : > { %v8374_v59 = vpop.eup %8373  ;;  %5009 = vst.msk [vmem:[#allocation2 + $0x60] sm:$0xff] %vm407_vm0, %v8722_v36  ;;  %5010 = vst.msk [vmem:[#allocation2 + $0x68] sm:$0xff] %vm407_vm0, %v8722_v36 }
 0xc7f   : > { %v8376_v61 = vpop.eup %8375  ;;  %v4761_v57 = vmul.f32 %v8374_v59, %v10002_v35  ;;  %v4783_v13 = vadd.f32 %v6899_v25, %v4771_v16  ;;  %5011 = vst.msk [vmem:[#allocation2 + $0x90] sm:$0xff] %vm407_vm0, %v8722_v36  ;;  %5012 = vst.msk [vmem:[#allocation2 + $0x98] sm:$0xff] %vm407_vm0, %v8722_v36 }
 0xc80   : > { %v4760_v20 = vmul.f32 %v8376_v61, %v10008_v47  ;;  %5013 = vst.msk [vmem:[#allocation2 + $0x20] sm:$0xff] %vm407_vm0, %v8722_v36  ;;  %5014 = vst.msk [vmem:[#allocation2 + $0x28] sm:$0xff] %vm407_vm0, %v8722_v36 }
 0xc81   : > { %v4773_v62 = vmul.f32 %v6898_v10, %v4761_v57  ;;  %v4790_v54 = vpack.c.bf16 %v4783_v13, %v4782_v24  ;;  %5015 = vst.msk [vmem:[#allocation2 + $0x50] sm:$0xff] %vm407_vm0, %v8722_v36  ;;  %5016 = vst.msk [vmem:[#allocation2 + $0x58] sm:$0xff] %vm407_vm0, %v8722_v36 }
 0xc82   : > { %v4772_v40 = vmul.f32 %v6898_v10, %v4760_v20  ;;  %5017 = vst.msk [vmem:[#allocation2 + $0x80] sm:$0xff] %vm407_vm0, %v8722_v36  ;;  %5018 = vst.msk [vmem:[#allocation2 + $0x88] sm:$0xff] %vm407_vm0, %v8722_v36 }
 0xc83   : > { %7498 = vmatprep.mubr.msk.bf16.mxu1 %vm407_vm0, %v4790_v54  ;;  %v4785_v37 = vadd.f32 %v6899_v25, %v4773_v62  ;;  %5019 = vst.msk [vmem:[#allocation2 + $0xb0] sm:$0xff] %vm407_vm0, %v8722_v36  ;;  %5020 = vst.msk [vmem:[#allocation2 + $0xb8] sm:$0xff] %vm407_vm0, %v8722_v36 }
 0xc84   : > { %v4784_v28 = vadd.f32 %v6899_v25, %v4772_v40  ;;  %v5031_v36 = vld [vmem:[#allocation2 + $0x31] sm:$0xff] }
 0xc86   : > { %v4791_v44 = vpack.c.bf16 %v4785_v37, %v4784_v28 }
 0xc88   : > { %7499 = vmatmul.mubr.msk.bf16.vlgmr.msra.gmra.mrb[52].mxu1 %vm407_vm0, %v4791_v44 }
 0xc89   : > { %v5638_v3 = vld [vmem:[#allocation2 + $0x80] sm:$0xff] }
 0xcdd   : > { %v4724_v41 = vpop.xlane.xlu0 %4723 }
 0xcde   : > { %v4738_v27 = vmul.f32 0.03125, %v4724_v41 }
 0xcdf   : > { %v4727_v30 = vpop.xlane.xlu1 %4726 }
 0xce0   : > { %v4746_v43 = vadd.f32 1e-05, %v4738_v27  ;;  %v4739_v53 = vmul.f32 0.03125, %v4727_v30 }
 0xce1   : > { %v4730_v35 = vpop.xlane.xlu0 %4729 }
 0xce2   : > { %8377 = vrsqrt.f32 %v4746_v43  ;;  %v4747_v51 = vadd.f32 1e-05, %v4739_v53  ;;  %v4740_v45 = vmul.f32 0.03125, %v4730_v35 }
 0xce3   : > { %v4733_v47 = vpop.xlane.xlu1 %4732 }
 0xce4   : > { %8379 = vrsqrt.f32 %v4747_v51  ;;  %v4748_v42 = vadd.f32 1e-05, %v4740_v45  ;;  %v4741_v56 = vmul.f32 0.03125, %v4733_v47 }
 0xce6   : > { %8381 = vrsqrt.f32 %v4748_v42  ;;  %v4749_v5 = vadd.f32 1e-05, %v4741_v56 }
 0xce8   : > { %8383 = vrsqrt.f32 %v4749_v5 }
 0xcec   : > { %v8378_v6 = vpop.eup %8377 }
 0xced   : > { %v4762_v9 = vmul.f32 %v8378_v6, %v10018_v29 }
 0xcee   : > { %v8380_v12 = vpop.eup %8379 }
 0xcef   : > { %v4763_v34 = vmul.f32 %v8380_v12, %v10021_v14  ;;  %v4774_v48 = vmul.f32 %v6898_v10, %v4762_v9  ;;  %v4907_v14 = vpop.permute.xlu0 %4906 }
 0xcf0   : > { %v8382_v55 = vpop.eup %8381 }
 0xcf1   : > { %v4764_v1 = vmul.f32 %v8382_v55, %v10026_v11  ;;  %v4775_v33 = vmul.f32 %v6898_v10, %v4763_v34  ;;  %v4786_v7 = vadd.f32 %v6899_v25, %v4774_v48 }
 0xcf2   : > { %v8384_v0 = vpop.eup %8383 }
 0xcf3   : > { %v4765_v52 = vmul.f32 %v8384_v0, %v10032_v22  ;;  %v4787_v46 = vadd.f32 %v6899_v25, %v4775_v33  ;;  %v4776_v4 = vmul.f32 %v6898_v10, %v4764_v1  ;;  %v10096_v1 = vld [vmem:[#allocation3 + $0xb] ss:$0 sm:$0xff] }
 0xcf5   : > { %v4792_v15 = vpack.c.bf16 %v4787_v46, %v4786_v7  ;;  %v4777_v58 = vmul.f32 %v6898_v10, %v4765_v52  ;;  %v4788_v8 = vadd.f32 %v6899_v25, %v4776_v4 }
 0xcf7   : > { %7502 = vmatprep.mubr.msk.bf16.mxu1 %vm407_vm0, %v4792_v15  ;;  %v4789_v29 = vadd.f32 %v6899_v25, %v4777_v58 }
 0xcf9   : > { %v4793_v31 = vpack.c.bf16 %v4789_v29, %v4788_v8 }
 0xcfb   : > { %7503 = vmatmul.mubr.msk.bf16.gmra.mrb[56].mxu1 %vm407_vm0, %v4793_v31 }
 0xd5b   : > { %v10054_v60 = vpop.f32.mrb[52].mxu1 }
 0xd5c   : > { %v4911_v11 = vadd.f32 %v10054_v60, %v4907_v14  ;;  %v10057_v18 = vpop.f32.mrb[53].mxu1  ;;  %v4894_v58 = vadd.f32 %v10054_v60, %v10096_v1  ;;  %v10110_v60 = vld [vmem:[#allocation9] ss:$0 sm:$0xff] }
 0xd5d   : > { %v4909_v22 = vadd.f32 %v4907_v14, %v10057_v18  ;;  %v10060_v50 = vpop.f32.mrb[54].mxu1  ;;  %v4892_v52 = vadd.f32 %v10096_v1, %v10057_v18  ;;  %v8166_v18 = vld [vmem:[#allocation8 + $0x18] sm:$0xff]  }
 0xd5e   : > { %v6910_v39 = vmul.f32 -1.442695, %v4911_v11  ;;  %v10062_v10 = vpop.f32.mrb[55].mxu1  ;;  %v4912_v57 = vadd.f32 %v10060_v50, %v4907_v14  ;;  %v8165_v11 = vld [vmem:[#allocation8 + $0x10] sm:$0xff]  }
 0xd5f   : > { %v6908_v63 = vmul.f32 -1.442695, %v4909_v22  ;;  %v4910_v24 = vadd.f32 %v4907_v14, %v10062_v10  ;;  %7506 = vmatprep.subr.bf16.mxu0 %v8165_v11  ;;  %v5029_v22 = vld [vmem:[#allocation2 + $0x1] sm:$0xff] }
 0xd60   : > { %8385 = vpow2.f32 %v6910_v39  ;;  %v6911_v13 = vmul.f32 -1.442695, %v4912_v57  ;;  %7507 = vmatpush3.bf16.msra.mxu0 %v8165_v11  ;;  %v5058_v39 = vld [vmem:[#allocation2 + $0x2] sm:$0xff]  ;;  %v5234_v11 = vld [vmem:[#allocation2 + $0x38] sm:$0xff] }
 0xd61   : > { %8387 = vpow2.f32 %v6908_v63  ;;  %v6909_v20 = vmul.f32 -1.442695, %v4910_v24  ;;  %7508 = vmatprep.subr.bf16.mxu0 %v8166_v18  ;;  %v10112_v63 = vld [vmem:[#allocation9 + $0x1] ss:$0 sm:$0xff]  ;;  %v5089_v24 = vld [vmem:[#allocation2 + $0x33] sm:$0xff] }
 0xd64   : > { %7509 = vmatpush3.bf16.msra.mxu0 %v8166_v18 }
 0xd6a   : > { %v8386_v26 = vpop.eup %8385 }
 0xd6b   : > { %v8388_v49 = vpop.eup %8387  ;;  %v4943_v16 = vadd.f32 1.0, %v8386_v26  ;;  %v5060_v26 = vld [vmem:[#allocation2 + $0x32] sm:$0xff] }
 0xd6c   : > { %v4941_v25 = vadd.f32 1.0, %v8388_v49  ;;  %v5042_v49 = vmul.f32 %v10110_v60, %v5029_v22  ;;  %v5073_v57 = vmul.f32 %v10112_v63, %v5060_v26 }
 0xd6e   : > { %8389 = vrcp.f32 %v4941_v25  ;;  %v5071_v25 = vmul.f32 %v10112_v63, %v5058_v39  ;;  %v10141_v39 = vld [vmem:[#allocation9 + $0x8] ss:$0 sm:$0xff] }
 0xd6f   : > { %8391 = vrcp.f32 %v4943_v16  ;;  %v5087_v16 = vld [vmem:[#allocation2 + $0x3] sm:$0xff] }
 0xd70   : > { %8393 = vpow2.f32 %v6911_v13  ;;  %v5079_v13 = vadd.f32 %v5071_v25, %v5042_v49 }
 0xd71   : > { %8395 = vpow2.f32 %v6909_v20 }
 0xd78   : > { %v8390_v59 = vpop.eup %8389 }
 0xd79   : > { %4973 = vrot.lane.b32.xlu1 %v8390_v59, %s8717_s24  ;;  %v8392_v61 = vpop.eup %8391  ;;  %v10116_v59 = vld [vmem:[#allocation9 + $0x2] ss:$0 sm:$0xff] }
 0xd7a   : > { %v8394_v51 = vpop.eup %8393  ;;  %v5100_v20 = vmul.f32 %v10116_v59, %v5087_v16  ;;  %v5035_v16 = vld [vmem:[#allocation2 + $0x91] sm:$0xff] }
 0xd7b   : > { %v8396_v45 = vpop.eup %8395  ;;  %v4944_v6 = vadd.f32 1.0, %v8394_v51  ;;  %v10125_v51 = vld [vmem:[#allocation9 + $0x4] ss:$0 sm:$0xff] }
 0xd7c   : > { %v4942_v12 = vadd.f32 1.0, %v8396_v45 }
 0xd7d   : > { %4977 = vrot.lane.b32.xlu1 %v8392_v61, %s8717_s24  ;;  %v5044_v61 = vmul.f32 %v10110_v60, %v5031_v36 }
 0xdce   : > { %v10084_v62 = vpop.f32.mrb[56].mxu1 }
 0xdcf   : > { %v4915_v54 = vadd.f32 %v10084_v62, %v4907_v14  ;;  %v10087_v40 = vpop.f32.mrb[57].mxu1 }
 0xdd0   : > { %v4913_v37 = vadd.f32 %v4907_v14, %v10087_v40  ;;  %v10090_v28 = vpop.f32.mrb[58].mxu1 }
 0xdd1   : > { %v6914_v44 = vmul.f32 -1.442695, %v4915_v54  ;;  %v4916_v41 = vadd.f32 %v10090_v28, %v4907_v14  ;;  %v10093_v27 = vpop.f32.mrb[59].mxu1  ;;  %v5116_v54 = vld [vmem:[#allocation2 + $0x4] sm:$0xff] }
 0xdd2   : > { %v6912_v30 = vmul.f32 -1.442695, %v4913_v37  ;;  %v4914_v43 = vadd.f32 %v4907_v14, %v10093_v27  ;;  %v10121_v37 = vld [vmem:[#allocation9 + $0x3] ss:$0 sm:$0xff] }
 0xdd3   : > { %8397 = vpow2.f32 %v6914_v44  ;;  %v6915_v53 = vmul.f32 -1.442695, %v4916_v41  ;;  %v5081_v44 = vadd.f32 %v5073_v57, %v5044_v61  ;;  %v5102_v41 = vmul.f32 %v10116_v59, %v5089_v24  ;;  %v5064_v61 = vld [vmem:[#allocation2 + $0x92] sm:$0xff] }
 0xdd4   : > { %8399 = vpow2.f32 %v6912_v30  ;;  %v6913_v35 = vmul.f32 -1.442695, %v4914_v43  ;;  %v5118_v30 = vld [vmem:[#allocation2 + $0x34] sm:$0xff]  ;;  %v5108_v43 = vadd.f32 %v5100_v20, %v5079_v13  ;;  %v5033_v13 = vld [vmem:[#allocation2 + $0x61] sm:$0xff] }
 0xdd5   : > { %8401 = vpow2.f32 %v6915_v53  ;;  %v5129_v53 = vmul.f32 %v10121_v37, %v5116_v54  ;;  %v5110_v45 = vadd.f32 %v5102_v41, %v5081_v44  ;;  %v5062_v20 = vld [vmem:[#allocation2 + $0x62] sm:$0xff] }
 0xdd6   : > { %8403 = vpow2.f32 %v6913_v35  ;;  %v5145_v35 = vld [vmem:[#allocation2 + $0x5] sm:$0xff] }
 0xddd   : > { %v8398_v47 = vpop.eup %8397 }
 0xdde   : > { %v8400_v42 = vpop.eup %8399  ;;  %v4947_v56 = vadd.f32 1.0, %v8398_v47  ;;  %v5131_v47 = vmul.f32 %v10121_v37, %v5118_v30 }
 0xddf   : > { %v4945_v5 = vadd.f32 1.0, %v8400_v42  ;;  %v8402_v9 = vpop.eup %8401  ;;  %v5147_v42 = vld [vmem:[#allocation2 + $0x35] sm:$0xff] }
 0xde0   : > { %8405 = vrcp.f32 %v4947_v56  ;;  %v8404_v34 = vpop.eup %8403  ;;  %v4948_v48 = vadd.f32 1.0, %v8402_v9  ;;  %v5137_v56 = vadd.f32 %v5129_v53, %v5108_v43  ;;  %v10129_v9 = vld [vmem:[#allocation9 + $0x5] ss:$0 sm:$0xff]  ;;  %v5048_v43 = vmul.f32 %v10110_v60, %v5035_v16 }
 0xde1   : > { %8407 = vrcp.f32 %v4945_v5  ;;  %v4946_v55 = vadd.f32 1.0, %v8404_v34  ;;  %v5158_v5 = vmul.f32 %v10125_v51, %v5145_v35  ;;  %v5160_v34 = vmul.f32 %v10125_v51, %v5147_v42  ;;  %v5093_v35 = vld [vmem:[#allocation2 + $0x93] sm:$0xff] }
 0xde2   : > { %8409 = vrcp.f32 %v4944_v6  ;;  %v5174_v6 = vld [vmem:[#allocation2 + $0x6] sm:$0xff]  ;;  %v5077_v53 = vmul.f32 %v10112_v63, %v5064_v61  ;;  %v5046_v42 = vmul.f32 %v10110_v60, %v5033_v13  ;;  %v10166_v13 = vld [vmem:[#allocation9 + $0xb] ss:$0 sm:$0xff] }
 0xde3   : > { %8411 = vrcp.f32 %v4942_v12  ;;  %v5139_v12 = vadd.f32 %v5131_v47, %v5110_v45  ;;  %v10148_v45 = vld [vmem:[#allocation9 + $0x9] ss:$0 sm:$0xff] }
 0xde4   : > { %8413 = vrcp.f32 %v4948_v48  ;;  %v5176_v48 = vld [vmem:[#allocation2 + $0x36] sm:$0xff] }
 0xde5   : > { %8415 = vrcp.f32 %v4946_v55  ;;  %v5166_v55 = vadd.f32 %v5158_v5, %v5137_v56  ;;  %v5075_v56 = vmul.f32 %v10112_v63, %v5062_v20 }
 0xdea   : > { %v8406_v33 = vpop.eup %8405 }
 0xdeb   : > { %v8408_v0 = vpop.eup %8407  ;;  %4985 = vrot.lane.b32.xlu1 %v8406_v33, %s8717_s24  ;;  %v4974_v7 = vpop.permute.xlu1 %4973  ;;  %v5187_v33 = vmul.f32 %v10129_v9, %v5174_v6 }
 0xdec   : > { %4981 = vrot.lane.b32.xlu0 %v8408_v0, %s8717_s24  ;;  %v4997_v46 = vmul.f32 %v4974_v7, %v4892_v52  ;;  %v8410_v4 = vpop.eup %8409  ;;  %v5203_v0 = vld [vmem:[#allocation2 + $0x7] sm:$0xff]  ;;  %v5168_v7 = vadd.f32 %v5160_v34, %v5139_v12 }
 0xded   : > { %v8412_v15 = vpop.eup %8411  ;;  %v10133_v52 = vld [vmem:[#allocation9 + $0x6] ss:$0 sm:$0xff] }
 0xdee   : > { %5021 = vst.msk [vmem:[#allocation2 + $0x10] sm:$0xff] %vm407_vm0, %v4997_v46  ;;  %v8414_v31 = vpop.eup %8413  ;;  %v5189_v46 = vmul.f32 %v10129_v9, %v5176_v48  ;;  %v5091_v48 = vld [vmem:[#allocation2 + $0x63] sm:$0xff] }
 0xdef   : > { %4979 = vrot.lane.b32.xlu1 %v8410_v4, %s8717_s24  ;;  %v4978_v8 = vpop.permute.xlu1 %4977  ;;  %v8416_v14 = vpop.eup %8415  ;;  %v5205_v4 = vld [vmem:[#allocation2 + $0x37] sm:$0xff] }
 0xdf0   : > { %4975 = vrot.lane.b32.xlu0 %v8412_v15, %s8717_s24  ;;  %v4999_v29 = vmul.f32 %v4978_v8, %v4894_v58  ;;  %v5195_v15 = vadd.f32 %v5187_v33, %v5166_v55  ;;  %v5216_v58 = vmul.f32 %v10133_v52, %v5203_v0  ;;  %v5232_v8 = vld [vmem:[#allocation2 + $0x8] sm:$0xff]  ;;  %v5085_v33 = vadd.f32 %v5077_v53, %v5048_v43 }
 0xdf1   : > { %v5106_v0 = vmul.f32 %v10116_v59, %v5093_v35 }
 0xdf2   : > { %5023 = vst.msk [vmem:[#allocation2 + $0x40] sm:$0xff] %vm407_vm0, %v4999_v29  ;;  %v10137_v29 = vld [vmem:[#allocation9 + $0x7] ss:$0 sm:$0xff]  ;;  %v5224_v18 = vadd.f32 %v5216_v58, %v5195_v15 }
 0xdf3   : > { %4987 = vrot.lane.b32.xlu1 %v8414_v31, %s8717_s24  ;;  %v5197_v31 = vadd.f32 %v5189_v46, %v5168_v7  ;;  %v5245_v22 = vmul.f32 %v10137_v29, %v5232_v8  ;;  %v5247_v49 = vmul.f32 %v10137_v29, %v5234_v11  ;;  %v5122_v46 = vld [vmem:[#allocation2 + $0x94] sm:$0xff] }
 0xdf4   : > { %4983 = vrot.lane.b32.xlu0 %v8416_v14, %s8717_s24  ;;  %v5218_v14 = vmul.f32 %v10133_v52, %v5205_v4  ;;  %v10158_v4 = vld [vmem:[#allocation9 + $0xa] ss:$0 sm:$0xff] }
 0xdf5   : > { %v5030_v36 = vld [vmem:[#allocation2 + $0x9] sm:$0xff]  ;;  %v5253_v57 = vadd.f32 %v5245_v22, %v5224_v18 }
 0xdf6   : > { %v5226_v26 = vadd.f32 %v5218_v14, %v5197_v31  ;;  %v5270_v24 = vmul.f32 %v10141_v39, %v5030_v36  ;;  %v5059_v54 = vld [vmem:[#allocation2 + $0xa] sm:$0xff]  ;;  %v5043_v47 = vmul.f32 %v10110_v60, %v5030_v36  ;;  %v5083_v31 = vadd.f32 %v5075_v56, %v5046_v42 }
 0xdf7   : > { %v5072_v5 = vmul.f32 %v10112_v63, %v5059_v54  ;;  %v5295_v7 = vmul.f32 %v10148_v45, %v5059_v54  ;;  %v5088_v15 = vld [vmem:[#allocation2 + $0xb] sm:$0xff]  ;;  %v5104_v14 = vmul.f32 %v10116_v59, %v5091_v48  ;;  %v5180_v48 = vld [vmem:[#allocation2 + $0x96] sm:$0xff] }
 0xdf8   : > { %v5255_v44 = vadd.f32 %v5247_v49, %v5226_v26  ;;  %v5278_v6 = vadd.f32 %v5270_v24, %v5253_v57  ;;  %v5120_v36 = vld [vmem:[#allocation2 + $0x64] sm:$0xff]  ;;  %v5114_v49 = vadd.f32 %v5106_v0, %v5085_v33  ;;  %v5101_v16 = vmul.f32 %v10116_v59, %v5088_v15  ;;  %v5151_v24 = vld [vmem:[#allocation2 + $0x95] sm:$0xff]  ;;  %v5117_v20 = vld [vmem:[#allocation2 + $0xc] sm:$0xff] }
 0xdf9   : > { %v5032_v25 = vld [vmem:[#allocation2 + $0x39] sm:$0xff]  ;;  %v5080_v11 = vadd.f32 %v5072_v5, %v5043_v47  ;;  %v5320_v61 = vmul.f32 %v10158_v4, %v5088_v15  ;;  %v5149_v47 = vld [vmem:[#allocation2 + $0x65] sm:$0xff]  ;;  %v5164_v5 = vmul.f32 %v10125_v51, %v5151_v24  ;;  %v5146_v33 = vld [vmem:[#allocation2 + $0xd] sm:$0xff] }
 0xdfa   : > { %v5061_v41 = vld [vmem:[#allocation2 + $0x3a] sm:$0xff]  ;;  %v5272_v30 = vmul.f32 %v10141_v39, %v5032_v25  ;;  %v5045_v12 = vmul.f32 %v10110_v60, %v5032_v25  ;;  %v5303_v18 = vadd.f32 %v5295_v7, %v5278_v6  ;;  %v5135_v25 = vmul.f32 %v10121_v37, %v5122_v46 }
 0xdfb   : > { %v5074_v34 = vmul.f32 %v10112_v63, %v5061_v41  ;;  %v5090_v58 = vld [vmem:[#allocation2 + $0x3b] sm:$0xff]  ;;  %v5297_v8 = vmul.f32 %v10148_v45, %v5061_v41  ;;  %v5112_v41 = vadd.f32 %v5104_v14, %v5083_v31  ;;  %v5109_v43 = vadd.f32 %v5101_v16, %v5080_v11  ;;  %v5178_v14 = vld [vmem:[#allocation2 + $0x66] sm:$0xff]  ;;  %v10182_v16 = vld [vmem:[#allocation9 + $0xd] ss:$0 sm:$0xff] }
 0xdfc   : > { %v5280_v55 = vadd.f32 %v5272_v30, %v5255_v44  ;;  %v5103_v57 = vmul.f32 %v10116_v59, %v5090_v58  ;;  %v5119_v54 = vld [vmem:[#allocation2 + $0x3c] sm:$0xff]  ;;  %v5322_v44 = vmul.f32 %v10158_v4, %v5090_v58  ;;  %v5133_v30 = vmul.f32 %v10121_v37, %v5120_v36 }
 0xdfd   : > { %v5082_v22 = vadd.f32 %v5074_v34, %v5045_v12  ;;  %v5328_v53 = vadd.f32 %v5320_v61, %v5303_v18  ;;  %v5143_v56 = vadd.f32 %v5135_v25, %v5114_v49  ;;  %v5130_v6 = vmul.f32 %v10121_v37, %v5117_v20  ;;  %v5148_v0 = vld [vmem:[#allocation2 + $0x3d] sm:$0xff]  ;;  %v5175_v61 = vld [vmem:[#allocation2 + $0xe] sm:$0xff] }
 0xdfe   : > { %v5305_v26 = vadd.f32 %v5297_v8, %v5280_v55  ;;  %v5345_v12 = vmul.f32 %v10166_v13, %v5117_v20  ;;  %v5132_v34 = vmul.f32 %v10121_v37, %v5119_v54  ;;  %v10174_v55 = vld [vmem:[#allocation9 + $0xc] ss:$0 sm:$0xff]  ;;  %v5347_v7 = vmul.f32 %v10166_v13, %v5119_v54  ;;  %v5209_v25 = vld [vmem:[#allocation2 + $0x97] sm:$0xff] }
 0xdff   : > { %v5111_v35 = vadd.f32 %v5103_v57, %v5082_v22  ;;  %v5141_v46 = vadd.f32 %v5133_v30, %v5112_v41  ;;  %v5162_v15 = vmul.f32 %v10125_v51, %v5149_v47  ;;  %v5138_v58 = vadd.f32 %v5130_v6, %v5109_v43  ;;  %v5177_v57 = vld [vmem:[#allocation2 + $0x3e] sm:$0xff]  ;;  %v5207_v43 = vld [vmem:[#allocation2 + $0x67] sm:$0xff] }
 0xe00   : > { %v5330_v42 = vadd.f32 %v5322_v44, %v5305_v26  ;;  %v5353_v8 = vadd.f32 %v5345_v12, %v5328_v53  ;;  %v5172_v18 = vadd.f32 %v5164_v5, %v5143_v56  ;;  %v5193_v22 = vmul.f32 %v10129_v9, %v5180_v48  ;;  %v5238_v6 = vld [vmem:[#allocation2 + $0x98] sm:$0xff]  ;;  %v10190_v12 = vld [vmem:[#allocation9 + $0xe] ss:$0 sm:$0xff] }
 0xe01   : > { %v5140_v31 = vadd.f32 %v5132_v34, %v5111_v35  ;;  %v5159_v36 = vmul.f32 %v10125_v51, %v5146_v33  ;;  %v5370_v26 = vmul.f32 %v10174_v55, %v5146_v33  ;;  %v5161_v49 = vmul.f32 %v10125_v51, %v5148_v0  ;;  %v5204_v34 = vld [vmem:[#allocation2 + $0xf] sm:$0xff]  ;;  %v5206_v48 = vld [vmem:[#allocation2 + $0x3f] sm:$0xff] }
 0xe02   : > { %v5355_v11 = vadd.f32 %v5347_v7, %v5330_v42  ;;  %v5372_v24 = vmul.f32 %v10174_v55, %v5148_v0  ;;  %v5170_v20 = vadd.f32 %v5162_v15, %v5141_v46  ;;  %v5191_v54 = vmul.f32 %v10129_v9, %v5178_v14 }
 0xe03   : > { %v5167_v44 = vadd.f32 %v5159_v36, %v5138_v58  ;;  %v5378_v41 = vadd.f32 %v5370_v26, %v5353_v8  ;;  %v5169_v30 = vadd.f32 %v5161_v49, %v5140_v31  ;;  %v5201_v35 = vadd.f32 %v5193_v22, %v5172_v18 }
 0xe04   : > { %v5380_v53 = vadd.f32 %v5372_v24, %v5355_v11  ;;  %v5222_v47 = vmul.f32 %v10133_v52, %v5209_v25  ;;  %v5188_v42 = vmul.f32 %v10129_v9, %v5175_v61  ;;  %v5395_v56 = vmul.f32 %v10182_v16, %v5175_v61  ;;  %v5236_v11 = vld [vmem:[#allocation2 + $0x68] sm:$0xff]  ;;  %v10202_v25 = vld [vmem:[#allocation9 + $0xf] ss:$0 sm:$0xff] }
 0xe05   : > { %v5190_v5 = vmul.f32 %v10129_v9, %v5177_v57  ;;  %v5397_v33 = vmul.f32 %v10182_v16, %v5177_v57  ;;  %v5199_v0 = vadd.f32 %v5191_v54, %v5170_v20  ;;  %v5220_v7 = vmul.f32 %v10133_v52, %v5207_v43  ;;  %11063 = vst [vmem:[#allocation28_spill] sm:$0xff] %v10202_v25  ;;  %v5233_v61 = vld [vmem:[#allocation2 + $0x10] sm:$0xff]  ;;  %v5235_v57 = vld [vmem:[#allocation2 + $0x40] sm:$0xff] }
 0xe06   : > { %v5196_v46 = vadd.f32 %v5188_v42, %v5167_v44  ;;  %v5403_v15 = vadd.f32 %v5395_v56, %v5378_v41  ;;  %v5230_v31 = vadd.f32 %v5222_v47, %v5201_v35  ;;  %v5251_v14 = vmul.f32 %v10137_v29, %v5238_v6  ;;  %v5636_v47 = vld [vmem:[#allocation2 + $0x20] sm:$0xff] }
 0xe07   : > { %v5198_v58 = vadd.f32 %v5190_v5, %v5169_v30  ;;  %v5405_v8 = vadd.f32 %v5397_v33, %v5380_v53  ;;  %v5217_v18 = vmul.f32 %v10133_v52, %v5204_v34  ;;  %v5420_v22 = vmul.f32 %v10190_v12, %v5204_v34  ;;  %v5661_v42 = vld [vmem:[#allocation2 + $0x21] sm:$0xff]  ;;  %v10215_v33 = vld [vmem:[#allocation9 + $0x17] ss:$0 sm:$0xff] }
 0xe08   : > { %v5219_v36 = vmul.f32 %v10133_v52, %v5206_v48  ;;  %v4895_v26 = vadd.f32 %v10060_v50, %v10096_v1  ;;  %v4898_v49 = vadd.f32 %v10084_v62, %v10096_v1  ;;  %v5422_v24 = vmul.f32 %v10190_v12, %v5206_v48 }
 0xe09   : > { %v5228_v20 = vadd.f32 %v5220_v7, %v5199_v0  ;;  %v5225_v54 = vadd.f32 %v5217_v18, %v5196_v46  ;;  %v5428_v44 = vadd.f32 %v5420_v22, %v5403_v15  ;;  %v5249_v30 = vmul.f32 %v10137_v29, %v5236_v11  ;;  %v10219_v0 = vld [vmem:[#allocation9 + $0x19] ss:$0 sm:$0xff]  ;;  %v5711_v7 = vld [vmem:[#allocation2 + $0x23] sm:$0xff] }
 0xe0a   : > { %v5227_v41 = vadd.f32 %v5219_v36, %v5198_v58  ;;  %v4893_v43 = vadd.f32 %v10096_v1, %v10062_v10  ;;  %v4896_v50 = vadd.f32 %v10096_v1, %v10087_v40  ;;  %v5430_v53 = vadd.f32 %v5422_v24, %v5405_v8  ;;  %v10217_v10 = vld [vmem:[#allocation9 + $0x18] ss:$0 sm:$0xff]  ;;  %v5686_v40 = vld [vmem:[#allocation2 + $0x22] sm:$0xff] }
 0xe0b   : > { %v10210_v62 = vadd.f32 %v5251_v14, %v5230_v31  ;;  %v5246_v56 = vmul.f32 %v10137_v29, %v5233_v61  ;;  %v5445_v5 = vmul.f32 %v10202_v25, %v5233_v61  ;;  %v5248_v6 = vmul.f32 %v10137_v29, %v5235_v57  ;;  %v5736_v46 = vld [vmem:[#allocation2 + $0x24] sm:$0xff]  ;;  %v10228_v14 = vld [vmem:[#allocation9 + $0x1a] ss:$0 sm:$0xff]  ;;  %v10230_v11 = vld [vmem:[#allocation9 + $0x1b] ss:$0 sm:$0xff] }
 0xe0c   : > { %v4899_v15 = vadd.f32 %v10090_v28, %v10096_v1  ;;  %v10225_v58 = vadd.f32 %v10096_v1, %v10093_v27  ;;  %v5447_v8 = vmul.f32 %v10202_v25, %v5235_v57  ;;  %v5761_v18 = vld [vmem:[#allocation2 + $0x25] sm:$0xff]  ;;  %v10232_v22 = vld [vmem:[#allocation9 + $0x1c] ss:$0 sm:$0xff]  ;;  %v10241_v27 = vadd.f32 %v5249_v30, %v5228_v20  ;;  %v5712_v30 = vld [vmem:[#allocation2 + $0x53] sm:$0xff] }
 0xe0d   : > { %v5786_v36 = vld [vmem:[#allocation2 + $0x26] sm:$0xff]  ;;  %v10234_v61 = vadd.f32 %v5246_v56, %v5225_v54  ;;  %v10236_v24 = vadd.f32 %v5445_v5, %v5428_v44  ;;  %v10238_v28 = vadd.f32 %v5248_v6, %v5227_v41  ;;  %v10243_v1 = vld [vmem:[#allocation9 + $0x1d] ss:$0 sm:$0xff]  ;;  %v10251_v44 = vmul.f32 %v10215_v33, %v5636_v47  ;;  %v5737_v56 = vld [vmem:[#allocation2 + $0x54] sm:$0xff] }
 0xe0e   : > { %v10245_v57 = vld [vmem:[#allocation9 + $0x1e] ss:$0 sm:$0xff]  ;;  %v10247_v23 = vadd.f32 %v5447_v8, %v5430_v53  ;;  %v10254_v41 = vmul.f32 %v10217_v10, %v5661_v42  ;;  %v10257_v20 = vmul.f32 %v10219_v0, %v5686_v40  ;;  %v5762_v5 = vld [vmem:[#allocation2 + $0x55] sm:$0xff]  ;;  %v10260_v53 = vmul.f32 %v10228_v14, %v5711_v7 }
 0xe0f   : > { %11064 = vst [vmem:[#allocation29_spill] sm:$0xff] %v10245_v57  ;;  %11065 = vst [vmem:[#allocation30_spill] sm:$0xff] %v10251_v44  ;;  %v10263_v8 = vmul.f32 %v10230_v11, %v5736_v46  ;;  %v10266_v47 = vmul.f32 %v10232_v22, %v5761_v18  ;;  %v5812_v42 = vld [vmem:[#allocation2 + $0x57] sm:$0xff]  ;;  %v10269_v40 = vmul.f32 %v10243_v1, %v5786_v36  ;;  %v5663_v7 = vld [vmem:[#allocation2 + $0x81] sm:$0xff] }
 0xe10   : > { %11066 = vst [vmem:[#allocation31_spill] sm:$0xff] %v10254_v41  ;;  %11067 = vst [vmem:[#allocation32_spill] sm:$0xff] %v10257_v20  ;;  %v5713_v46 = vld [vmem:[#allocation2 + $0x83] sm:$0xff]  ;;  %v10288_v36 = vmul.f32 %v10230_v11, %v5737_v56 }
 0xe11   : > { %11068 = vst [vmem:[#allocation33_spill] sm:$0xff] %v10260_v53  ;;  %11069 = vst [vmem:[#allocation34_spill] sm:$0xff] %v10263_v8  ;;  %v5813_v56 = vld [vmem:[#allocation2 + $0x87] sm:$0xff] }
 0xe12   : > { %11070 = vst [vmem:[#allocation35_spill] sm:$0xff] %v10266_v47  ;;  %11071 = vst [vmem:[#allocation36_spill] sm:$0xff] %v10269_v40 }
 0xe13   : > { %11077 = vst [vmem:[#allocation42_spill] sm:$0xff] %v10288_v36 }
 0xe5d   : > { %v4986_v35 = vpop.permute.xlu1 %4985 }
 0xe5e   : > { %v5003_v34 = vmul.f32 %v4986_v35, %v4898_v49  ;;  %v4982_v48 = vpop.permute.xlu0 %4981  ;;  %v5811_v49 = vld [vmem:[#allocation2 + $0x27] sm:$0xff]  ;;  %v5662_v35 = vld [vmem:[#allocation2 + $0x51] sm:$0xff] }
 0xe5f   : > { %v5001_v31 = vmul.f32 %v4982_v48, %v4896_v50  ;;  %v5637_v50 = vld [vmem:[#allocation2 + $0x50] sm:$0xff]  ;;  %v10272_v21 = vmul.f32 %v10245_v57, %v5811_v49  ;;  %v10279_v18 = vmul.f32 %v10217_v10, %v5662_v35  ;;  %v5738_v49 = vld [vmem:[#allocation2 + $0x84] sm:$0xff] }
 0xe60   : > { %5027 = vst.msk [vmem:[#allocation2 + $0xa0] sm:$0xff] %vm407_vm0, %v5003_v34  ;;  %v5687_v48 = vld [vmem:[#allocation2 + $0x52] sm:$0xff] }
 0xe61   : > { %5025 = vst.msk [vmem:[#allocation2 + $0x70] sm:$0xff] %vm407_vm0, %v5001_v31  ;;  %v4980_v54 = vpop.permute.xlu1 %4979  ;;  %v5787_v31 = vld [vmem:[#allocation2 + $0x56] sm:$0xff]  ;;  %11072 = vst [vmem:[#allocation37_spill] sm:$0xff] %v10272_v21  ;;  %v10282_v19 = vmul.f32 %v10219_v0, %v5687_v48  ;;  %v10298_v48 = vmul.f32 %v10245_v57, %v5812_v42  ;;  %v10304_v21 = vmul.f32 %v10217_v10, %v5663_v7 }
 0xe62   : > { %v5000_v6 = vmul.f32 %v4980_v54, %v4895_v26  ;;  %v4976_v34 = vpop.permute.xlu0 %4975  ;;  %v10275_v26 = vmul.f32 %v10215_v33, %v5637_v50  ;;  %v5688_v54 = vld [vmem:[#allocation2 + $0x82] sm:$0xff]  ;;  %11074 = vst [vmem:[#allocation39_spill] sm:$0xff] %v10279_v18  ;;  %v10295_v35 = vmul.f32 %v10243_v1, %v5787_v31 }
 0xe63   : > { %v4998_v32 = vmul.f32 %v4976_v34, %v4893_v43  ;;  %11075 = vst [vmem:[#allocation40_spill] sm:$0xff] %v10282_v19  ;;  %v10285_v43 = vmul.f32 %v10228_v14, %v5712_v30  ;;  %v5763_v50 = vld [vmem:[#allocation2 + $0x85] sm:$0xff]  ;;  %11080 = vst [vmem:[#allocation45_spill] sm:$0xff] %v10298_v48  ;;  %v10301_v30 = vmul.f32 %v10215_v33, %v5638_v3 }
 0xe64   : > { %11073 = vst [vmem:[#allocation38_spill] sm:$0xff] %v10275_v26  ;;  %5024 = vst.msk [vmem:[#allocation2 + $0x48] sm:$0xff] %vm407_vm0, %v5000_v6  ;;  %v5788_v34 = vld [vmem:[#allocation2 + $0x86] sm:$0xff]  ;;  %v10292_v6 = vmul.f32 %v10232_v22, %v5762_v5  ;;  %v10310_v5 = vmul.f32 %v10228_v14, %v5713_v46  ;;  %v10314_v3 = vmul.f32 %v10230_v11, %v5738_v49 }
 0xe65   : > { %11076 = vst [vmem:[#allocation41_spill] sm:$0xff] %v10285_v43  ;;  %5022 = vst.msk [vmem:[#allocation2 + $0x18] sm:$0xff] %vm407_vm0, %v4998_v32  ;;  %v4988_v38 = vpop.permute.xlu1 %4987  ;;  %v10307_v32 = vmul.f32 %v10219_v0, %v5688_v54 }
 0xe66   : > { %11078 = vst [vmem:[#allocation43_spill] sm:$0xff] %v10292_v6  ;;  %11079 = vst [vmem:[#allocation44_spill] sm:$0xff] %v10295_v35  ;;  %v5004_v2 = vmul.f32 %v4988_v38, %v4899_v15  ;;  %v4984_v17 = vpop.permute.xlu0 %4983  ;;  %v10317_v38 = vmul.f32 %v10232_v22, %v5763_v50  ;;  %v10320_v15 = vmul.f32 %v10243_v1, %v5788_v34 }
 0xe67   : > { %11081 = vst [vmem:[#allocation46_spill] sm:$0xff] %v10301_v30  ;;  %11082 = vst [vmem:[#allocation47_spill] sm:$0xff] %v10304_v21  ;;  %v5036_v31 = vld [vmem:[#allocation2 + $0x99] sm:$0xff]  ;;  %v5002_v42 = vmul.f32 %v4984_v17, %v10225_v58  ;;  %v10327_v17 = vmul.f32 %v10245_v57, %v5813_v56 }
 0xe68   : > { %11083 = vst [vmem:[#allocation48_spill] sm:$0xff] %v10307_v32  ;;  %11084 = vst [vmem:[#allocation49_spill] sm:$0xff] %v10310_v5  ;;  %v5065_v40 = vld [vmem:[#allocation2 + $0x9a] sm:$0xff]  ;;  %v5049_v7 = vmul.f32 %v10110_v60, %v5036_v31  ;;  %v5276_v21 = vmul.f32 %v10141_v39, %v5036_v31  ;;  %v5063_v30 = vld [vmem:[#allocation2 + $0x6a] sm:$0xff] }
 0xe69   : > { %v5094_v35 = vld [vmem:[#allocation2 + $0x9b] sm:$0xff]  ;;  %11085 = vst [vmem:[#allocation50_spill] sm:$0xff] %v10314_v3  ;;  %11086 = vst [vmem:[#allocation51_spill] sm:$0xff] %v10317_v38  ;;  %v5078_v54 = vmul.f32 %v10112_v63, %v5065_v40  ;;  %v5301_v56 = vmul.f32 %v10148_v45, %v5065_v40  ;;  %v5092_v48 = vld [vmem:[#allocation2 + $0x6b] sm:$0xff] }
 0xe6a   : > { %11087 = vst [vmem:[#allocation52_spill] sm:$0xff] %v10320_v15  ;;  %v5123_v46 = vld [vmem:[#allocation2 + $0x9c] sm:$0xff]  ;;  %5028 = vst.msk [vmem:[#allocation2 + $0xa8] sm:$0xff] %vm407_vm0, %v5004_v2  ;;  %v5107_v58 = vmul.f32 %v10116_v59, %v5094_v35  ;;  %v5284_v2 = vadd.f32 %v5276_v21, %v10210_v62  ;;  %v5326_v6 = vmul.f32 %v10158_v4, %v5094_v35  ;;  %v5121_v53 = vld [vmem:[#allocation2 + $0x6c] sm:$0xff] }
 0xe6b   : > { %v5152_v5 = vld [vmem:[#allocation2 + $0x9d] sm:$0xff]  ;;  %11088 = vst [vmem:[#allocation53_spill] sm:$0xff] %v10327_v17  ;;  %v5136_v49 = vmul.f32 %v10121_v37, %v5123_v46  ;;  %5026 = vst.msk [vmem:[#allocation2 + $0x78] sm:$0xff] %vm407_vm0, %v5002_v42  ;;  %v5086_v3 = vadd.f32 %v5078_v54, %v5049_v7  ;;  %v5034_v17 = vld [vmem:[#allocation2 + $0x69] sm:$0xff]  ;;  %v5351_v8 = vmul.f32 %v10166_v13, %v5123_v46 }
 0xe6c   : > { %v5181_v32 = vld [vmem:[#allocation2 + $0x9e] sm:$0xff]  ;;  %v5165_v50 = vmul.f32 %v10125_v51, %v5152_v5  ;;  %v5376_v36 = vmul.f32 %v10174_v55, %v5152_v5  ;;  %v5150_v42 = vld [vmem:[#allocation2 + $0x6d] sm:$0xff]  ;;  %v5309_v54 = vadd.f32 %v5301_v56, %v5284_v2  ;;  %v5047_v19 = vmul.f32 %v10110_v60, %v5034_v17 }
 0xe6d   : > { %v5194_v34 = vmul.f32 %v10129_v9, %v5181_v32  ;;  %v5210_v15 = vld [vmem:[#allocation2 + $0x9f] sm:$0xff]  ;;  %v5115_v7 = vadd.f32 %v5107_v58, %v5086_v3  ;;  %v5401_v43 = vmul.f32 %v10182_v16, %v5181_v32  ;;  %v5179_v62 = vld [vmem:[#allocation2 + $0x6e] sm:$0xff]  ;;  %v5076_v35 = vmul.f32 %v10112_v63, %v5063_v30 }
 0xe6e   : > { %v5239_v38 = vld [vmem:[#allocation2 + $0xa0] sm:$0xff]  ;;  %v5223_v31 = vmul.f32 %v10133_v52, %v5210_v15  ;;  %v5426_v21 = vmul.f32 %v10190_v12, %v5210_v15  ;;  %v5208_v40 = vld [vmem:[#allocation2 + $0x6f] sm:$0xff]  ;;  %v5105_v46 = vmul.f32 %v10116_v59, %v5092_v48  ;;  %v5334_v18 = vadd.f32 %v5326_v6, %v5309_v54 }
 0xe6f   : > { %v5252_v47 = vmul.f32 %v10137_v29, %v5239_v38  ;;  %v5451_v20 = vmul.f32 %v10202_v25, %v5239_v38  ;;  %v5237_v41 = vld [vmem:[#allocation2 + $0x70] sm:$0xff]  ;;  %v5144_v5 = vadd.f32 %v5136_v49, %v5115_v7  ;;  %v5134_v3 = vmul.f32 %v10121_v37, %v5121_v53  ;;  %v5262_v44 = vld [vmem:[#allocation2 + $0x41] sm:$0xff] }
 0xe70   : > { %v5163_v58 = vmul.f32 %v10125_v51, %v5150_v42  ;;  %v5084_v32 = vadd.f32 %v5076_v35, %v5047_v19  ;;  %v5192_v15 = vmul.f32 %v10129_v9, %v5179_v62  ;;  %v5221_v2 = vmul.f32 %v10133_v52, %v5208_v40  ;;  %v5287_v51 = vld [vmem:[#allocation2 + $0x42] sm:$0xff]  ;;  %v5336_v26 = vld [vmem:[#allocation2 + $0x14] sm:$0xff] }
 0xe71   : > { %v5274_v38 = vmul.f32 %v10141_v39, %v5034_v17  ;;  %v5173_v56 = vadd.f32 %v5165_v50, %v5144_v5  ;;  %v5359_v60 = vadd.f32 %v5351_v8, %v5334_v18  ;;  %v5250_v63 = vmul.f32 %v10137_v29, %v5237_v41  ;;  %v5312_v8 = vld [vmem:[#allocation2 + $0x43] sm:$0xff]  ;;  %v10363_v5 = vld [vmem:[#allocation9 + $0x10] ss:$0 sm:$0xff] }
 0xe72   : > { %v5299_v59 = vmul.f32 %v10148_v45, %v5063_v30  ;;  %v5113_v49 = vadd.f32 %v5105_v46, %v5084_v32  ;;  %v5324_v37 = vmul.f32 %v10158_v4, %v5092_v48  ;;  %v5349_v19 = vmul.f32 %v10166_v13, %v5121_v53  ;;  %v5337_v54 = vld [vmem:[#allocation2 + $0x44] sm:$0xff]  ;;  %11089 = vst [vmem:[#allocation54_spill] sm:$0xff] %v10363_v5 }
 0xe73   : > { %v5282_v6 = vadd.f32 %v5274_v38, %v10241_v27  ;;  %v5202_v9 = vadd.f32 %v5194_v34, %v5173_v56  ;;  %v5384_v7 = vadd.f32 %v5376_v36, %v5359_v60  ;;  %v5374_v52 = vmul.f32 %v10174_v55, %v5150_v42  ;;  %v5362_v27 = vld [vmem:[#allocation2 + $0x45] sm:$0xff] }
 0xe74   : > { %v5399_v17 = vmul.f32 %v10182_v16, %v5179_v62  ;;  %v5142_v18 = vadd.f32 %v5134_v3, %v5113_v49  ;;  %v5424_v30 = vmul.f32 %v10190_v12, %v5208_v40  ;;  %v5273_v50 = vmul.f32 %v10141_v39, %v5262_v44  ;;  %v5387_v36 = vld [vmem:[#allocation2 + $0x46] sm:$0xff]  ;;  %v10375_v49 = vld [vmem:[#allocation9 + $0x12] ss:$0 sm:$0xff] }
 0xe75   : > { %v5307_v29 = vadd.f32 %v5299_v59, %v5282_v6  ;;  %v5231_v35 = vadd.f32 %v5223_v31, %v5202_v9  ;;  %v5409_v48 = vadd.f32 %v5401_v43, %v5384_v7  ;;  %v5449_v53 = vmul.f32 %v10202_v25, %v5237_v41  ;;  %v10367_v40 = vld [vmem:[#allocation2 + $0x47] sm:$0xff]  ;;  %v10373_v59 = vld [vmem:[#allocation9 + $0x11] ss:$0 sm:$0xff] }
 0xe76   : > { %v5298_v34 = vmul.f32 %v10148_v45, %v5287_v51  ;;  %v5171_v46 = vadd.f32 %v5163_v58, %v5142_v18  ;;  %v5281_v62 = vadd.f32 %v5273_v50, %v10238_v28  ;;  %v5323_v3 = vmul.f32 %v10158_v4, %v5312_v8  ;;  %v5437_v32 = vld [vmem:[#allocation2 + $0x48] sm:$0xff]  ;;  %v10388_v50 = vld [vmem:[#allocation9 + $0x14] ss:$0 sm:$0xff] }
 0xe77   : > { %v5332_v42 = vadd.f32 %v5324_v37, %v5307_v29  ;;  %v10369_v38 = vadd.f32 %v5252_v47, %v5231_v35  ;;  %v5434_v31 = vadd.f32 %v5426_v21, %v5409_v48  ;;  %v5348_v43 = vmul.f32 %v10166_v13, %v5337_v54  ;;  %v5462_v56 = vld [vmem:[#allocation2 + $0x49] sm:$0xff]  ;;  %v10386_v29 = vld [vmem:[#allocation9 + $0x13] ss:$0 sm:$0xff]  ;;  %v10390_v35 = vld [vmem:[#allocation9 + $0x15] ss:$0 sm:$0xff] }
 0xe78   : > { %v5373_v41 = vmul.f32 %v10174_v55, %v5362_v27  ;;  %v5200_v60 = vadd.f32 %v5192_v15, %v5171_v46  ;;  %v5306_v28 = vadd.f32 %v5298_v34, %v5281_v62  ;;  %v5398_v6 = vmul.f32 %v10182_v16, %v5387_v36  ;;  %v5487_v37 = vld [vmem:[#allocation2 + $0x4a] sm:$0xff] }
 0xe79   : > { %v5357_v58 = vadd.f32 %v5349_v19, %v5332_v42  ;;  %v10378_v9 = vadd.f32 %v5451_v20, %v5434_v31  ;;  %v5423_v47 = vmul.f32 %v10190_v12, %v10367_v40  ;;  %v5448_v21 = vmul.f32 %v10202_v25, %v5437_v32  ;;  %v10384_v18 = vld [vmem:[#allocation2 + $0x4b] sm:$0xff] }
 0xe7a   : > { %v5472_v7 = vmul.f32 %v10363_v5, %v5262_v44  ;;  %11090 = vst [vmem:[#allocation55_spill] sm:$0xff] %v10384_v18  ;;  %v5229_v15 = vadd.f32 %v5221_v2, %v5200_v60  ;;  %v5331_v48 = vadd.f32 %v5323_v3, %v5306_v28  ;;  %v5473_v20 = vmul.f32 %v10363_v5, %v5462_v56  ;;  %v5261_v3 = vld [vmem:[#allocation2 + $0x11] sm:$0xff] }
 0xe7b   : > { %v5382_v19 = vadd.f32 %v5374_v52, %v5357_v58  ;;  %v5497_v46 = vmul.f32 %v10373_v59, %v5287_v51  ;;  %v10396_v42 = vmul.f32 %v10373_v59, %v5487_v37  ;;  %v5522_v44 = vmul.f32 %v10375_v49, %v5312_v8  ;;  %v5286_v60 = vld [vmem:[#allocation2 + $0x12] sm:$0xff] }
 0xe7c   : > { %v5480_v34 = vadd.f32 %v5472_v7, %v10247_v23  ;;  %v10399_v2 = vadd.f32 %v5250_v63, %v5229_v15  ;;  %v5356_v62 = vadd.f32 %v5348_v43, %v5331_v48  ;;  %v10403_v31 = vmul.f32 %v10375_v49, %v10384_v18  ;;  %v5311_v7 = vld [vmem:[#allocation2 + $0x13] sm:$0xff] }
 0xe7d   : > { %v5407_v52 = vadd.f32 %v5399_v17, %v5382_v19  ;;  %v5547_v23 = vmul.f32 %v10386_v29, %v5337_v54  ;;  %v5572_v51 = vmul.f32 %v10388_v50, %v5362_v27  ;;  %v5597_v28 = vmul.f32 %v10390_v35, %v5387_v36  ;;  %v5361_v15 = vld [vmem:[#allocation2 + $0x15] sm:$0xff] }
 0xe7e   : > { %v5505_v58 = vadd.f32 %v5497_v46, %v5480_v34  ;;  %v5381_v63 = vadd.f32 %v5373_v41, %v5356_v62  ;;  %v10409_v17 = vmul.f32 %v10215_v33, %v5437_v32  ;;  %v10412_v43 = vmul.f32 %v10217_v10, %v5462_v56  ;;  %v10419_v36 = vld [vmem:[#allocation2 + $0x16] sm:$0xff]  ;;  %v5289_v62 = vld [vmem:[#allocation2 + $0xa2] sm:$0xff] }
 0xe7f   : > { %v5432_v8 = vadd.f32 %v5424_v30, %v5407_v52  ;;  %v10415_v48 = vmul.f32 %v10219_v0, %v5487_v37  ;;  %v5271_v54 = vmul.f32 %v10141_v39, %v5261_v3  ;;  %v5296_v27 = vmul.f32 %v10148_v45, %v5286_v60  ;;  %v5264_v52 = vld [vmem:[#allocation2 + $0xa1] sm:$0xff] }
 0xe80   : > { %11091 = vst [vmem:[#allocation56_spill] sm:$0xff] %v10409_v17  ;;  %11092 = vst [vmem:[#allocation57_spill] sm:$0xff] %v10412_v43  ;;  %v5530_v19 = vadd.f32 %v5522_v44, %v5505_v58  ;;  %v5406_v30 = vadd.f32 %v5398_v6, %v5381_v63  ;;  %v5321_v32 = vmul.f32 %v10158_v4, %v5311_v7  ;;  %v10441_v17 = vld [vmem:[#allocation2 + $0xa6] sm:$0xff] }
 0xe81   : > { %11093 = vst [vmem:[#allocation58_spill] sm:$0xff] %v10415_v48  ;;  %v10421_v34 = vadd.f32 %v5449_v53, %v5432_v8  ;;  %v5346_v41 = vmul.f32 %v10166_v13, %v5336_v26  ;;  %v5279_v46 = vadd.f32 %v5271_v54, %v10234_v61  ;;  %v5371_v44 = vmul.f32 %v10174_v55, %v5361_v15  ;;  %v5314_v8 = vld [vmem:[#allocation2 + $0xa3] sm:$0xff] }
 0xe82   : > { %v5555_v56 = vadd.f32 %v5547_v23, %v5530_v19  ;;  %v5470_v37 = vmul.f32 %v10363_v5, %v5261_v3  ;;  %v5431_v58 = vadd.f32 %v5423_v47, %v5406_v30  ;;  %v5396_v48 = vmul.f32 %v10182_v16, %v10419_v36  ;;  %v5339_v19 = vld [vmem:[#allocation2 + $0xa4] sm:$0xff]  ;;  %11094 = vst [vmem:[#allocation59_spill] sm:$0xff] %v10441_v17 }
 0xe83   : > { %v5495_v53 = vmul.f32 %v10373_v59, %v5286_v60  ;;  %v5520_v6 = vmul.f32 %v10375_v49, %v5311_v7  ;;  %v5304_v43 = vadd.f32 %v5296_v27, %v5279_v46  ;;  %v10434_v61 = vmul.f32 %v10386_v29, %v5336_v26  ;;  %v5364_v3 = vld [vmem:[#allocation2 + $0xa5] sm:$0xff]  ;;  %v5263_v46 = vld [vmem:[#allocation2 + $0x71] sm:$0xff] }
 0xe84   : > { %v5580_v63 = vadd.f32 %v5572_v51, %v5555_v56  ;;  %v5478_v23 = vadd.f32 %v5470_v37, %v10236_v24  ;;  %v5456_v54 = vadd.f32 %v5448_v21, %v5431_v58  ;;  %v10437_v47 = vmul.f32 %v10388_v50, %v5361_v15 }
 0xe85   : > { %v5277_v30 = vmul.f32 %v10141_v39, %v5264_v52  ;;  %v5302_v60 = vmul.f32 %v10148_v45, %v5289_v62  ;;  %v5329_v51 = vadd.f32 %v5321_v32, %v5304_v43  ;;  %v5327_v24 = vmul.f32 %v10158_v4, %v5314_v8 }
 0xe86   : > { %v10443_v7 = vadd.f32 %v5597_v28, %v5580_v63  ;;  %v5503_v27 = vadd.f32 %v5495_v53, %v5478_v23  ;;  %v5481_v26 = vadd.f32 %v5473_v20, %v5456_v54  ;;  %v5352_v21 = vmul.f32 %v10166_v13, %v5339_v19  ;;  %v5288_v63 = vld [vmem:[#allocation2 + $0x72] sm:$0xff] }
 0xe87   : > { %v5285_v56 = vadd.f32 %v5277_v30, %v10369_v38  ;;  %v5377_v15 = vmul.f32 %v10174_v55, %v5364_v3  ;;  %v5354_v37 = vadd.f32 %v5346_v41, %v5329_v51  ;;  %v5402_v18 = vmul.f32 %v10182_v16, %v10441_v17  ;;  %v5313_v53 = vld [vmem:[#allocation2 + $0x73] sm:$0xff] }
 0xe88   : > { %v5528_v58 = vadd.f32 %v5520_v6, %v5503_v27  ;;  %v5476_v28 = vmul.f32 %v10363_v5, %v5264_v52  ;;  %v5506_v43 = vadd.f32 %v10396_v42, %v5481_v26  ;;  %v5501_v20 = vmul.f32 %v10373_v59, %v5289_v62  ;;  %v5338_v30 = vld [vmem:[#allocation2 + $0x74] sm:$0xff] }
 0xe89   : > { %v5310_v32 = vadd.f32 %v5302_v60, %v5285_v56  ;;  %v5526_v38 = vmul.f32 %v10375_v49, %v5314_v8  ;;  %v5379_v23 = vadd.f32 %v5371_v44, %v5354_v37  ;;  %v10457_v41 = vmul.f32 %v10386_v29, %v5339_v19  ;;  %v5363_v51 = vld [vmem:[#allocation2 + $0x75] sm:$0xff] }
 0xe8a   : > { %v5484_v54 = vadd.f32 %v5476_v28, %v10378_v9  ;;  %v5275_v6 = vmul.f32 %v10141_v39, %v5263_v46  ;;  %v10461_v52 = vadd.f32 %v10403_v31, %v5506_v43  ;;  %v10464_v60 = vmul.f32 %v10388_v50, %v5364_v3  ;;  %v10467_v8 = vld [vmem:[#allocation2 + $0x76] sm:$0xff] }
 0xe8b   : > { %11095 = vst [vmem:[#allocation60_spill] sm:$0xff] %v10457_v41  ;;  %v5335_v42 = vadd.f32 %v5327_v24, %v5310_v32  ;;  %v5300_v62 = vmul.f32 %v10148_v45, %v5288_v63  ;;  %v5404_v44 = vadd.f32 %v5396_v48, %v5379_v23  ;;  %v5325_v27 = vmul.f32 %v10158_v4, %v5313_v53  ;;  %v5411_v56 = vld [vmem:[#allocation2 + $0x17] sm:$0xff] }
 0xe8c   : > { %11096 = vst [vmem:[#allocation61_spill] sm:$0xff] %v10464_v60  ;;  %v5509_v9 = vadd.f32 %v5501_v20, %v5484_v54  ;;  %v5283_v19 = vadd.f32 %v5275_v6, %v10399_v2  ;;  %v5350_v26 = vmul.f32 %v10166_v13, %v5338_v30  ;;  %v5375_v31 = vmul.f32 %v10174_v55, %v5363_v51  ;;  %v5436_v3 = vld [vmem:[#allocation2 + $0x18] sm:$0xff] }
 0xe8d   : > { %v5360_v39 = vadd.f32 %v5352_v21, %v5335_v42  ;;  %v5474_v24 = vmul.f32 %v10363_v5, %v5263_v46  ;;  %v5400_v48 = vmul.f32 %v10182_v16, %v10467_v8  ;;  %v5499_v28 = vmul.f32 %v10373_v59, %v5288_v63  ;;  %v5461_v2 = vld [vmem:[#allocation2 + $0x19] sm:$0xff] }
 0xe8e   : > { %v10474_v37 = vadd.f32 %v5526_v38, %v5509_v9  ;;  %v5308_v45 = vadd.f32 %v5300_v62, %v5283_v19  ;;  %v5486_v43 = vld [vmem:[#allocation2 + $0x1a] sm:$0xff]  ;;  %v5524_v13 = vmul.f32 %v10375_v49, %v5313_v53  ;;  %v10482_v55 = vmul.f32 %v10386_v29, %v5338_v30 }
 0xe8f   : > { %v5385_v4 = vadd.f32 %v5377_v15, %v5360_v39  ;;  %v5482_v21 = vadd.f32 %v5474_v24, %v10421_v34  ;;  %v5511_v46 = vld [vmem:[#allocation2 + $0x1b] sm:$0xff]  ;;  %v10485_v20 = vmul.f32 %v10388_v50, %v5363_v51  ;;  %v5421_v38 = vmul.f32 %v10190_v12, %v5411_v56 }
 0xe90   : > { %11097 = vst [vmem:[#allocation62_spill] sm:$0xff] %v10474_v37  ;;  %v5333_v32 = vadd.f32 %v5325_v27, %v5308_v45  ;;  %v5446_v16 = vmul.f32 %v10202_v25, %v5436_v3  ;;  %v5536_v63 = vld [vmem:[#allocation2 + $0x1c] sm:$0xff]  ;;  %v5471_v34 = vmul.f32 %v10363_v5, %v5461_v2  ;;  %v5496_v53 = vmul.f32 %v10373_v59, %v5486_v43 }
 0xe91   : > { %v5561_v23 = vld [vmem:[#allocation2 + $0x1d] sm:$0xff]  ;;  %v10489_v54 = vadd.f32 %v5402_v18, %v5385_v4  ;;  %v5507_v15 = vadd.f32 %v5499_v28, %v5482_v21  ;;  %v5429_v42 = vadd.f32 %v5421_v38, %v5404_v44  ;;  %v5521_v62 = vmul.f32 %v10375_v49, %v5511_v46 }
 0xe92   : > { %v5586_v6 = vld [vmem:[#allocation2 + $0x1e] sm:$0xff]  ;;  %v5358_v30 = vadd.f32 %v5350_v26, %v5333_v32  ;;  %v5553_v51 = vadd.f32 %v10434_v61, %v5528_v58  ;;  %v5546_v39 = vmul.f32 %v10386_v29, %v5536_v63  ;;  %v5571_v18 = vmul.f32 %v10388_v50, %v5561_v23 }
 0xe93   : > { %11098 = vst [vmem:[#allocation63_spill] sm:$0xff] %v10489_v54  ;;  %v5611_v9 = vld [vmem:[#allocation2 + $0x1f] sm:$0xff]  ;;  %v10495_v19 = vld [vmem:[#allocation9 + $0x16] ss:$0 sm:$0xff]  ;;  %v5532_v27 = vadd.f32 %v5524_v13, %v5507_v15  ;;  %v5595_v24 = vmul.f32 %v10390_v35, %v10419_v36  ;;  %v5454_v28 = vadd.f32 %v5446_v16, %v5429_v42  ;;  %v5596_v44 = vmul.f32 %v10390_v35, %v5586_v6  ;;  %v5537_v13 = vld [vmem:[#allocation2 + $0x4c] sm:$0xff] }
 0xe94   : > { %v5383_v45 = vadd.f32 %v5375_v31, %v5358_v30  ;;  %v5578_v26 = vadd.f32 %v10437_v47, %v5553_v51  ;;  %v5620_v4 = vmul.f32 %v10495_v19, %v5411_v56  ;;  %v5621_v61 = vmul.f32 %v10495_v19, %v5611_v9  ;;  %v5562_v31 = vld [vmem:[#allocation2 + $0x4d] sm:$0xff]  ;;  %v11102_v54 = vld [vmem:[#allocation58_spill] sm:$0xff] }
 0xe95   : > { %v5645_v58 = vmul.f32 %v10215_v33, %v5436_v3  ;;  %v5670_v21 = vmul.f32 %v10217_v10, %v5461_v2  ;;  %v5479_v38 = vadd.f32 %v5471_v34, %v5454_v28  ;;  %v5695_v36 = vmul.f32 %v10219_v0, %v5486_v43  ;;  %v5587_v16 = vld [vmem:[#allocation2 + $0x4e] sm:$0xff]  ;;  %v11099_v28 = vld [vmem:[#allocation55_spill] sm:$0xff] }
 0xe96   : > { %v5408_v32 = vadd.f32 %v5400_v48, %v5383_v45  ;;  %v5603_v15 = vadd.f32 %v5595_v24, %v5578_v26  ;;  %v5612_v30 = vld [vmem:[#allocation2 + $0x4f] sm:$0xff]  ;;  %v5720_v47 = vmul.f32 %v10228_v14, %v5511_v46  ;;  %v5745_v42 = vmul.f32 %v10230_v11, %v5536_v63  ;;  %v5438_v26 = vld [vmem:[#allocation2 + $0x78] sm:$0xff] }
 0xe97   : > { %v5770_v56 = vmul.f32 %v10232_v22, %v5561_v23  ;;  %v10512_v51 = vmul.f32 %v10243_v1, %v5586_v6  ;;  %v5504_v3 = vadd.f32 %v5496_v53, %v5479_v38  ;;  %v10515_v48 = vmul.f32 %v10245_v57, %v5611_v9  ;;  %v5413_v23 = vld [vmem:[#allocation2 + $0x77] sm:$0xff] }
 0xe98   : > { %v5628_v2 = vadd.f32 %v5620_v4, %v5603_v15  ;;  %v5548_v34 = vmul.f32 %v10386_v29, %v5537_v13  ;;  %v5573_v43 = vmul.f32 %v10388_v50, %v5562_v31  ;;  %v5598_v24 = vmul.f32 %v10390_v35, %v5587_v16  ;;  %v5463_v4 = vld [vmem:[#allocation2 + $0x79] sm:$0xff] }
 0xe99   : > { %v5622_v46 = vmul.f32 %v10495_v19, %v10367_v40  ;;  %v5623_v63 = vmul.f32 %v10495_v19, %v5612_v30  ;;  %v5529_v45 = vadd.f32 %v5521_v62, %v5504_v3  ;;  %v5722_v9 = vmul.f32 %v10228_v14, %v11099_v28  ;;  %v11100_v3 = vld [vmem:[#allocation56_spill] sm:$0xff] }
 0xe9a   : > { %v5653_v6 = vadd.f32 %v5645_v58, %v5628_v2  ;;  %v5556_v53 = vadd.f32 %v5548_v34, %v10461_v52  ;;  %v5747_v15 = vmul.f32 %v10230_v11, %v5537_v13  ;;  %v5772_v60 = vmul.f32 %v10232_v22, %v5562_v31  ;;  %v5488_v58 = vld [vmem:[#allocation2 + $0x7a] sm:$0xff] }
 0xe9b   : > { %v5630_v38 = vadd.f32 %v5622_v46, %v10443_v7  ;;  %v5797_v40 = vmul.f32 %v10243_v1, %v5587_v16  ;;  %v5554_v17 = vadd.f32 %v5546_v39, %v5529_v45  ;;  %v5425_v62 = vmul.f32 %v10190_v12, %v5413_v23  ;;  %v5513_v52 = vld [vmem:[#allocation2 + $0x7b] sm:$0xff] }
 0xe9c   : > { %v5678_v41 = vadd.f32 %v5670_v21, %v5653_v6  ;;  %v5581_v37 = vadd.f32 %v5573_v43, %v5556_v53  ;;  %v10533_v34 = vmul.f32 %v10245_v57, %v5612_v30  ;;  %v5450_v7 = vmul.f32 %v10202_v25, %v5438_v26  ;;  %v5538_v39 = vld [vmem:[#allocation2 + $0x7c] sm:$0xff]  ;;  %v11101_v21 = vld [vmem:[#allocation57_spill] sm:$0xff] }
 0xe9d   : > { %v5655_v2 = vadd.f32 %v11100_v3, %v5630_v38  ;;  %v5475_v13 = vmul.f32 %v10363_v5, %v5463_v4  ;;  %v5579_v46 = vadd.f32 %v5571_v18, %v5554_v17  ;;  %v5433_v16 = vadd.f32 %v5425_v62, %v5408_v32  ;;  %v5563_v25 = vld [vmem:[#allocation2 + $0x7d] sm:$0xff] }
 0xe9e   : > { %v5703_v31 = vadd.f32 %v5695_v36, %v5678_v41  ;;  %v5606_v28 = vadd.f32 %v5598_v24, %v5581_v37  ;;  %v5500_v45 = vmul.f32 %v10373_v59, %v5488_v58  ;;  %v5525_v6 = vmul.f32 %v10375_v49, %v5513_v52  ;;  %v11103_v36 = vld [vmem:[#allocation38_spill] sm:$0xff] }
 0xe9f   : > { %v5680_v43 = vadd.f32 %v11101_v21, %v5655_v2  ;;  %v5557_v53 = vadd.f32 %v10482_v55, %v5532_v27  ;;  %v5604_v38 = vadd.f32 %v5596_v44, %v5579_v46  ;;  %v5458_v57 = vadd.f32 %v5450_v7, %v5433_v16  ;;  %v5588_v55 = vld [vmem:[#allocation2 + $0x7e] sm:$0xff]  ;;  %v11107_v16 = vld [vmem:[#allocation40_spill] sm:$0xff] }
 0xea0   : > { %v5728_v30 = vadd.f32 %v5720_v47, %v5703_v31  ;;  %v5631_v3 = vadd.f32 %v5623_v63, %v5606_v28  ;;  %v5550_v17 = vmul.f32 %v10386_v29, %v5538_v39  ;;  %v5599_v37 = vmul.f32 %v10390_v35, %v10467_v8  ;;  %v11105_v46 = vld [vmem:[#allocation39_spill] sm:$0xff] }
 0xea1   : > { %v5705_v5 = vadd.f32 %v11102_v54, %v5680_v43  ;;  %v5582_v41 = vadd.f32 %v10485_v20, %v5557_v53  ;;  %v5629_v18 = vadd.f32 %v5621_v61, %v5604_v38  ;;  %v5483_v62 = vadd.f32 %v5475_v13, %v5458_v57  ;;  %v11104_v54 = vld [vmem:[#allocation30_spill] sm:$0xff]  ;;  %v10558_v43 = vld [vmem:[#allocation3 + $0xd] ss:$0 sm:$0xff] }
 0xea2   : > { %v5753_v32 = vadd.f32 %v5745_v42, %v5728_v30  ;;  %v5656_v24 = vadd.f32 %v11103_v36, %v5631_v3  ;;  %v5575_v44 = vmul.f32 %v10388_v50, %v5563_v25  ;;  %v5624_v63 = vmul.f32 %v10495_v19, %v5413_v23  ;;  %v10551_v28 = vld [vmem:[#allocation2 + $0x7f] sm:$0xff]  ;;  %v11108_v38 = vld [vmem:[#allocation32_spill] sm:$0xff]  ;;  %v11109_v3 = vld [vmem:[#allocation41_spill] sm:$0xff] }
 0xea3   : > { %v5730_v27 = vadd.f32 %v5722_v9, %v5705_v5  ;;  %v5607_v47 = vadd.f32 %v5599_v37, %v5582_v41  ;;  %v5654_v2 = vadd.f32 %v11104_v54, %v5629_v18  ;;  %v5508_v31 = vadd.f32 %v5500_v45, %v5483_v62  ;;  %v11106_v5 = vld [vmem:[#allocation31_spill] sm:$0xff]  ;;  %v11110_v36 = vld [vmem:[#allocation33_spill] sm:$0xff] }
 0xea4   : > { %v5778_v7 = vadd.f32 %v5770_v56, %v5753_v32  ;;  %v5681_v20 = vadd.f32 %v11105_v46, %v5656_v24  ;;  %v5600_v61 = vmul.f32 %v10390_v35, %v5588_v55  ;;  %v5649_v57 = vmul.f32 %v10215_v33, %v5438_v26  ;;  %v11113_v46 = vld [vmem:[#allocation43_spill] sm:$0xff] }
 0xea5   : > { %v5755_v8 = vadd.f32 %v5747_v15, %v5730_v27  ;;  %v5632_v42 = vadd.f32 %v5624_v63, %v5607_v47  ;;  %v5679_v9 = vadd.f32 %v11106_v5, %v5654_v2  ;;  %v5533_v21 = vadd.f32 %v5525_v6, %v5508_v31  ;;  %v10573_v63 = vld [vmem:[#allocation2 + $0xa7] sm:$0xff]  ;;  %v11112_v2 = vld [vmem:[#allocation34_spill] sm:$0xff] }
 0xea6   : > { %v5803_v13 = vadd.f32 %v10512_v51, %v5778_v7  ;;  %v5706_v23 = vadd.f32 %v11107_v16, %v5681_v20  ;;  %v5625_v45 = vmul.f32 %v10495_v19, %v10551_v28  ;;  %v5674_v15 = vmul.f32 %v10217_v10, %v5463_v4  ;;  %v10566_v51 = vld [vmem:[#allocation3 + $0xe] ss:$0 sm:$0xff]  ;;  %v11111_v4 = vld [vmem:[#allocation42_spill] sm:$0xff] }
 0xea7   : > { %v5780_v56 = vadd.f32 %v5772_v60, %v5755_v8  ;;  %v5657_v53 = vadd.f32 %v5649_v57, %v5632_v42  ;;  %v5704_v30 = vadd.f32 %v11108_v38, %v5679_v9  ;;  %v5558_v37 = vadd.f32 %v5550_v17, %v5533_v21  ;;  %v10583_v8 = vld [vmem:[#allocation2 + $0xa8] sm:$0xff] }
 0xea8   : > { %v5828_v26 = vadd.f32 %v10515_v48, %v5803_v13  ;;  %v5731_v41 = vadd.f32 %v11109_v3, %v5706_v23  ;;  %v5699_v32 = vmul.f32 %v10219_v0, %v5488_v58  ;;  %v5724_v60 = vmul.f32 %v10228_v14, %v5513_v52  ;;  %v10575_v48 = vld [vmem:[#allocation3 + $0xf] ss:$0 sm:$0xff]  ;;  %v11116_v23 = vld [vmem:[#allocation63_spill] sm:$0xff] }
 0xea9   : > { %v5805_v18 = vadd.f32 %v5797_v40, %v5780_v56  ;;  %v5682_v6 = vadd.f32 %v5674_v15, %v5657_v53  ;;  %v5729_v24 = vadd.f32 %v11110_v36, %v5704_v30  ;;  %v5583_v47 = vadd.f32 %v5575_v44, %v5558_v37  ;;  %v10594_v13 = vld [vmem:[#allocation2 + $0xa9] sm:$0xff]  ;;  %v11120_v30 = vld [vmem:[#allocation46_spill] sm:$0xff] }
 0xeaa   : > { %v5841_v62 = vadd.f32 %v10558_v43, %v5828_v26  ;;  %v5756_v27 = vadd.f32 %v11111_v4, %v5731_v41  ;;  %v5749_v40 = vmul.f32 %v10230_v11, %v5538_v39  ;;  %v5774_v58 = vmul.f32 %v10232_v22, %v5563_v25  ;;  %v11114_v11 = vld [vmem:[#allocation35_spill] sm:$0xff]  ;;  %v11115_v22 = vld [vmem:[#allocation44_spill] sm:$0xff]  ;;  %v11119_v15 = vld [vmem:[#allocation45_spill] sm:$0xff] }
 0xeab   : > { %v5830_v17 = vadd.f32 %v10533_v34, %v5805_v18  ;;  %v5707_v54 = vadd.f32 %v5699_v32, %v5682_v6  ;;  %v5754_v52 = vadd.f32 %v11112_v2, %v5729_v24  ;;  %v5608_v31 = vadd.f32 %v5600_v61, %v5583_v47  ;;  %v11118_v56 = vld [vmem:[#allocation36_spill] sm:$0xff]  ;;  %v11121_v18 = vld [vmem:[#allocation54_spill] sm:$0xff]  ;;  %v11122_v32 = vld [vmem:[#allocation37_spill] sm:$0xff] }
 0xeac   : > { %v5854_v7 = vmul.f32 %v10566_v51, %v5841_v62  ;;  %v5781_v20 = vadd.f32 %v11113_v46, %v5756_v27  ;;  %v5799_v57 = vmul.f32 %v10243_v1, %v5588_v55  ;;  %v5427_v34 = vmul.f32 %v10190_v12, %v10573_v63  ;;  %v11117_v1 = vld [vmem:[#allocation28_spill] sm:$0xff]  ;;  %v11123_v24 = vld [vmem:[#allocation47_spill] sm:$0xff]  ;;  %v11124_v4 = vld [vmem:[#allocation29_spill] sm:$0xff] }
 0xead   : > { %v5843_v44 = vadd.f32 %v10558_v43, %v5830_v17  ;;  %v5732_v42 = vadd.f32 %v5724_v60, %v5707_v54  ;;  %v5779_v39 = vadd.f32 %v11114_v11, %v5754_v52  ;;  %v5633_v9 = vadd.f32 %v5625_v45, %v5608_v31  ;;  %v10604_v3 = vld [vmem:[#allocation2 + $0xaa] sm:$0xff]  ;;  %v11127_v11 = vld [vmem:[#allocation62_spill] sm:$0xff] }
 0xeae   : > { %v10591_v25 = vadd.f32 %v10575_v48, %v5854_v7  ;;  %v5806_v5 = vadd.f32 %v11115_v22, %v5781_v20  ;;  %v5435_v21 = vadd.f32 %v5427_v34, %v11116_v23  ;;  %v5452_v55 = vmul.f32 %v11117_v1, %v10583_v8  ;;  %v10616_v47 = vld [vmem:[#allocation2 + $0xab] sm:$0xff]  ;;  %v11129_v23 = vld [vmem:[#allocation59_spill] sm:$0xff] }
 0xeaf   : > { %v5856_v61 = vmul.f32 %v10566_v51, %v5843_v44  ;;  %v5757_v16 = vadd.f32 %v5749_v40, %v5732_v42  ;;  %v5804_v12 = vadd.f32 %v11118_v56, %v5779_v39  ;;  %v5658_v26 = vadd.f32 %v11120_v30, %v5633_v9  ;;  %v11125_v7 = vld [vmem:[#allocation48_spill] sm:$0xff] }
 0xeb0   : > { %v6950_v53 = vmul.f32 -1.442695, %v10591_v25  ;;  %v5831_v38 = vadd.f32 %v11119_v15, %v5806_v5  ;;  %v5460_v37 = vadd.f32 %v5452_v55, %v5435_v21  ;;  %v5477_v6 = vmul.f32 %v11121_v18, %v10594_v13  ;;  %v10624_v20 = vld [vmem:[#allocation2 + $0xac] sm:$0xff]  ;;  %v11130_v55 = vld [vmem:[#allocation50_spill] sm:$0xff] }
 0xeb1   : > { %v10607_v45 = vadd.f32 %v10575_v48, %v5856_v61  ;;  %v5782_v41 = vadd.f32 %v5774_v58, %v5757_v16  ;;  %v5829_v60 = vadd.f32 %v11122_v32, %v5804_v12  ;;  %v5683_v62 = vadd.f32 %v11123_v24, %v5658_v26  ;;  %v11128_v39 = vld [vmem:[#allocation60_spill] sm:$0xff]  ;;  %v11131_v12 = vld [vmem:[#allocation61_spill] sm:$0xff] }
 0xeb2   : > { %v5844_v36 = vadd.f32 %v10558_v43, %v5831_v38  ;;  %v5824_v27 = vmul.f32 %v11124_v4, %v10551_v28  ;;  %v5485_v40 = vadd.f32 %v5477_v6, %v5460_v37  ;;  %v5502_v58 = vmul.f32 %v10373_v59, %v10604_v3  ;;  %v11126_v59 = vld [vmem:[#allocation49_spill] sm:$0xff]  ;;  %v11132_v37 = vld [vmem:[#allocation51_spill] sm:$0xff] }
 0xeb3   : > { %v6952_v17 = vmul.f32 -1.442695, %v10607_v45  ;;  %v5807_v54 = vadd.f32 %v5799_v57, %v5782_v41  ;;  %v5842_v2 = vadd.f32 %v10558_v43, %v5829_v60  ;;  %8417 = vpow2.f32 %v6950_v53  ;;  %v10635_v5 = vld [vmem:[#allocation2 + $0xad] sm:$0xff] }
 0xeb4   : > { %v5857_v52 = vmul.f32 %v10566_v51, %v5844_v36  ;;  %v5708_v46 = vadd.f32 %v11125_v7, %v5683_v62  ;;  %v5510_v31 = vadd.f32 %v5502_v58, %v5485_v40  ;;  %v5527_v44 = vmul.f32 %v10375_v49, %v10616_v47  ;;  %v10648_v15 = vld [vmem:[#allocation2 + $0xae] sm:$0xff] }
 0xeb5   : > { %8419 = vpow2.f32 %v6952_v17  ;;  %v5832_v28 = vadd.f32 %v5824_v27, %v5807_v54  ;;  %v5855_v42 = vmul.f32 %v10566_v51, %v5842_v2  ;;  %v5559_v22 = vadd.f32 %v11128_v39, %v11127_v11  ;;  %v10657_v32 = vld [vmem:[#allocation2 + $0xaf] sm:$0xff] }
 0xeb6   : > { %v10630_v57 = vadd.f32 %v10575_v48, %v5857_v52  ;;  %v5733_v34 = vadd.f32 %v11126_v59, %v5708_v46  ;;  %v5535_v61 = vadd.f32 %v5527_v44, %v5510_v31  ;;  %v5552_v16 = vmul.f32 %v10386_v29, %v10624_v20  ;;  %v5639_v60 = vld [vmem:[#allocation2 + $0xb0] sm:$0xff] }
 0xeb7   : > { %v5845_v9 = vadd.f32 %v10558_v43, %v5832_v28  ;;  %v5601_v49 = vmul.f32 %v10390_v35, %v11129_v23  ;;  %v10643_v21 = vadd.f32 %v10575_v48, %v5855_v42  ;;  %v5584_v53 = vadd.f32 %v11131_v12, %v5559_v22  ;;  %v5664_v17 = vld [vmem:[#allocation2 + $0xb1] sm:$0xff] }
 0xeb8   : > { %v6953_v1 = vmul.f32 -1.442695, %v10630_v57  ;;  %v5758_v56 = vadd.f32 %v11130_v55, %v5733_v34  ;;  %v5560_v30 = vadd.f32 %v5552_v16, %v5535_v61  ;;  %v5577_v29 = vmul.f32 %v10388_v50, %v10635_v5  ;;  %v11133_v50 = vld [vmem:[#allocation52_spill] sm:$0xff]  ;;  %v11134_v52 = vld [vmem:[#allocation53_spill] sm:$0xff] }
 0xeb9   : > { %v5858_v38 = vmul.f32 %v10566_v51, %v5845_v9  ;;  %v5626_v26 = vmul.f32 %v10495_v19, %v10573_v63  ;;  %v6951_v41 = vmul.f32 -1.442695, %v10643_v21  ;;  %v5609_v6 = vadd.f32 %v5601_v49, %v5584_v53  ;;  %v5689_v31 = vld [vmem:[#allocation2 + $0xb2] sm:$0xff] }
 0xeba   : > { %8421 = vpow2.f32 %v6953_v1  ;;  %v5783_v18 = vadd.f32 %v11132_v37, %v5758_v56  ;;  %v5585_v24 = vadd.f32 %v5577_v29, %v5560_v30  ;;  %v5602_v62 = vmul.f32 %v10390_v35, %v10648_v15  ;;  %v8513_v56 = vld [vmem:[#allocation9 + $0x1b] ss:$0 sm:$0xff]  ;;  %v5764_v12 = vld [vmem:[#allocation2 + $0xb5] sm:$0xff] }
 0xebb   : > { %v10660_v36 = vadd.f32 %v10575_v48, %v5858_v38  ;;  %8423 = vpow2.f32 %v6951_v41  ;;  %v5634_v63 = vadd.f32 %v5626_v26, %v5609_v6  ;;  %v5651_v27 = vmul.f32 %v10215_v33, %v10583_v8  ;;  %v8514_v41 = vld [vmem:[#allocation9 + $0x1c] ss:$0 sm:$0xff]  ;;  %v5789_v37 = vld [vmem:[#allocation2 + $0xb6] sm:$0xff] }
 0xebc   : > { %v5808_v4 = vadd.f32 %v11133_v50, %v5783_v18  ;;  %v5610_v54 = vadd.f32 %v5602_v62, %v5585_v24  ;;  %v5627_v40 = vmul.f32 %v10495_v19, %v10657_v32  ;;  %v5652_v58 = vmul.f32 %v10215_v33, %v5639_v60  ;;  %v5714_v19 = vld [vmem:[#allocation2 + $0xb3] sm:$0xff]  ;;  %v8515_v24 = vld [vmem:[#allocation9 + $0x1d] ss:$0 sm:$0xff] }
 0xebd   : > { %v8418_v2 = vpop.eup %8417  ;;  %v6954_v46 = vmul.f32 -1.442695, %v10660_v36  ;;  %v5659_v35 = vadd.f32 %v5651_v27, %v5634_v63  ;;  %v5676_v28 = vmul.f32 %v10217_v10, %v10594_v13  ;;  %v5677_v8 = vmul.f32 %v10217_v10, %v5664_v17  ;;  %v5739_v10 = vld [vmem:[#allocation2 + $0xb4] sm:$0xff]  ;;  %v8516_v17 = vld [vmem:[#allocation9 + $0x1e] ss:$0 sm:$0xff] }
 0xebe   : > { %v5833_v7 = vadd.f32 %v11134_v52, %v5808_v4  ;;  %v5635_v42 = vadd.f32 %v5627_v40, %v5610_v54  ;;  %v5701_v33 = vmul.f32 %v10219_v0, %v10604_v3  ;;  %v5899_v11 = vadd.f32 1.0, %v8418_v2  ;;  %v5814_v50 = vld [vmem:[#allocation2 + $0xb7] sm:$0xff] }
 0xebf   : > { %v8420_v44 = vpop.eup %8419  ;;  %v5684_v34 = vadd.f32 %v5676_v28, %v5659_v35  ;;  %v5702_v22 = vmul.f32 %v10219_v0, %v5689_v31  ;;  %v5726_v9 = vmul.f32 %v10228_v14, %v10616_v47  ;;  %8425 = vpow2.f32 %v6954_v46 }
 0xec0   : > { %v5846_v59 = vadd.f32 %v10558_v43, %v5833_v7  ;;  %v5660_v39 = vadd.f32 %v5652_v58, %v5635_v42  ;;  %v5901_v13 = vadd.f32 1.0, %v8420_v44  ;;  %v5727_v49 = vmul.f32 %v10228_v14, %v5714_v19 }
 0xec1   : > { %v5709_v16 = vadd.f32 %v5701_v33, %v5684_v34  ;;  %v5751_v0 = vmul.f32 %v8513_v56, %v10624_v20  ;;  %8427 = vrcp.f32 %v5899_v11  ;;  %v5752_v38 = vmul.f32 %v8513_v56, %v5739_v10 }
 0xec2   : > { %v5859_v61 = vmul.f32 %v10566_v51, %v5846_v59  ;;  %v5685_v23 = vadd.f32 %v5677_v8, %v5660_v39  ;;  %8429 = vrcp.f32 %v5901_v13  ;;  %v5776_v14 = vmul.f32 %v8514_v41, %v10635_v5 }
 0xec3   : > { %v5734_v55 = vadd.f32 %v5726_v9, %v5709_v16  ;;  %v5777_v60 = vmul.f32 %v8514_v41, %v5764_v12  ;;  %v5801_v62 = vmul.f32 %v8515_v24, %v10648_v15  ;;  %v5802_v63 = vmul.f32 %v8515_v24, %v5789_v37  ;;  %v11136_v37 = vld [vmem:[#allocation20_spill] sm:$0xff] }
 0xec4   : > { %v8422_v1 = vpop.eup %8421  ;;  %v10684_v3 = vadd.f32 %v10575_v48, %v5859_v61  ;;  %v5710_v53 = vadd.f32 %v5702_v22, %v5685_v23  ;;  %v5826_v54 = vmul.f32 %v8516_v17, %v10657_v32  ;;  %v5827_v5 = vmul.f32 %v8516_v17, %v5814_v50  ;;  %v11138_v50 = vld [vmem:[#allocation22_spill] sm:$0xff] }
 0xec5   : > { %v5902_v47 = vadd.f32 1.0, %v8422_v1  ;;  %v8424_v30 = vpop.eup %8423  ;;  %v5759_v26 = vadd.f32 %v5751_v0, %v5734_v55 }
 0xec6   : > { %v6955_v29 = vmul.f32 -1.442695, %v10684_v3  ;;  %v5900_v18 = vadd.f32 1.0, %v8424_v30  ;;  %v5735_v6 = vadd.f32 %v5727_v49, %v5710_v53 }
 0xec7   : > { %8431 = vrcp.f32 %v5902_v47  ;;  %v5784_v20 = vadd.f32 %v5776_v14, %v5759_v26  ;;  %v6958_v47 = vld [vmem:[#allocation3 + $0x10] ss:$0 sm:$0xff]  ;;  %v11135_v26 = vld [vmem:[#allocation27_spill] sm:$0xff] }
 0xec8   : > { %8433 = vpow2.f32 %v6955_v29  ;;  %v5760_v4 = vadd.f32 %v5752_v38, %v5735_v6 }
 0xec9   : > { %8435 = vrcp.f32 %v5900_v18  ;;  %v5809_v27 = vadd.f32 %v5801_v62, %v5784_v20  ;;  %v8426_v58 = vpop.eup %8425 }
 0xeca   : > { %v5785_v40 = vadd.f32 %v5777_v60, %v5760_v4  ;;  %v5903_v35 = vadd.f32 1.0, %v8426_v58  ;;  %v11137_v60 = vld [vmem:[#allocation21_spill] sm:$0xff] }
 0xecb   : > { %v5834_v2 = vadd.f32 %v5826_v54, %v5809_v27  ;;  %v8428_v46 = vpop.eup %8427 }
 0xecc   : > { %v5810_v52 = vadd.f32 %v5802_v63, %v5785_v40  ;;  %v8430_v31 = vpop.eup %8429  ;;  %8437 = vrcp.f32 %v5903_v35  ;;  %v5923_v11 = vmul.f32 %v8428_v46, %v10591_v25 }
 0xecd   : > { %v5847_v7 = vadd.f32 %v10558_v43, %v5834_v2  ;;  %v5925_v9 = vmul.f32 %v8430_v31, %v10607_v45 }
 0xece   : > { %v5835_v28 = vadd.f32 %v5827_v5, %v5810_v52  ;;  %v11139_v52 = vld [vmem:[#allocation23_spill] sm:$0xff] }
 0xecf   : > { %v5860_v15 = vmul.f32 %v10566_v51, %v5847_v7 }
 0xed0   : > { %v5848_v42 = vadd.f32 %v10558_v43, %v5835_v28  ;;  %v11140_v28 = vld [vmem:[#allocation24_spill] sm:$0xff] }
 0xed1   : > { %v8432_v44 = vpop.eup %8431  ;;  %v5873_v59 = vadd.f32 %v10575_v48, %v5860_v15  ;;  %v11141_v15 = vld [vmem:[#allocation25_spill] sm:$0xff] }
 0xed2   : > { %v8434_v8 = vpop.eup %8433  ;;  %v5926_v34 = vmul.f32 %v8432_v44, %v10630_v57  ;;  %v5861_v19 = vmul.f32 %v10566_v51, %v5848_v42 }
 0xed3   : > { %v8436_v32 = vpop.eup %8435  ;;  %v5904_v33 = vadd.f32 1.0, %v8434_v8  ;;  %v6956_v22 = vmul.f32 -1.442695, %v5873_v59  ;;  %v11142_v8 = vld [vmem:[#allocation26_spill] sm:$0xff] }
 0xed4   : > { %v5924_v39 = vmul.f32 %v8436_v32, %v10643_v21  ;;  %v5874_v43 = vadd.f32 %v10575_v48, %v5861_v19  ;;  %v5932_v61 = vpack.c.bf16 %v5926_v34, %v5925_v9 }
 0xed5   : > { %8439 = vrcp.f32 %v5904_v33 }
 0xed6   : > { %v5931_v13 = vpack.c.bf16 %v5924_v39, %v5923_v11  ;;  %8441 = vpow2.f32 %v6956_v22  ;;  %v6957_v16 = vmul.f32 -1.442695, %v5874_v43  ;;  %v8438_v51 = vpop.eup %8437 }
 0xed7   : > { %v5927_v21 = vmul.f32 %v8438_v51, %v10660_v36 }
 0xed8   : > { %7510 = vmatprep.mubr.msk.bf16.mxu0 %vm407_vm0, %v5931_v13  ;;  %8443 = vpow2.f32 %v6957_v16 }
 0xed9   : > { %7511 = vmatmul.mubr.msk.bf16.vlgmr.msra.gmra.mrb[48].mxu0 %vm407_vm0, %v5932_v61 }
 0xedf   : > { %v8440_v57 = vpop.eup %8439 }
 0xee0   : > { %v8442_v25 = vpop.eup %8441  ;;  %v5928_v10 = vmul.f32 %v8440_v57, %v10684_v3 }
 0xee1   : > { %v5905_v45 = vadd.f32 1.0, %v8442_v25 }
 0xee2   : > { %v5933_v23 = vpack.c.bf16 %v5928_v10, %v5927_v21  ;;  %v8444_v49 = vpop.eup %8443 }
 0xee3   : > { %v5906_v48 = vadd.f32 1.0, %v8444_v49  ;;  %8445 = vrcp.f32 %v5905_v45 }
 0xee4   : > { %7514 = vmatprep.mubr.msk.bf16.mxu0 %vm407_vm0, %v5933_v23 }
 0xee5   : > { %8447 = vrcp.f32 %v5906_v48 }
 0xeed   : > { %v8446_v1 = vpop.eup %8445 }
 0xeee   : > { %v5929_v56 = vmul.f32 %v8446_v1, %v5873_v59 }
 0xeef   : > { %v8448_v55 = vpop.eup %8447 }
 0xef0   : > { %v5930_v0 = vmul.f32 %v8448_v55, %v5874_v43 }
 0xef2   : > { %v5934_v12 = vpack.c.bf16 %v5930_v0, %v5929_v56 }
 0xef4   : > { %7515 = vmatmul.mubr.msk.bf16.gmra.mrb[52].mxu0 %vm407_vm0, %v5934_v12 }
 0xfac   : > { %v7512_v53 = vpop.f32.mrb[48].mxu0 }
 0xfad   : > { %v6003_v36 = vpop.f32.mrb[49].mxu0  ;;  %v6012_v38 = vadd.f32 %v7512_v53, %v6958_v47 }
 0xfae   : > { %v6004_v3 = vadd.f32 %v6958_v47, %v6003_v36  ;;  %v7513_v30 = vpop.f32.mrb[50].mxu0 }
 0xfaf   : > { %v6006_v29 = vpop.f32.mrb[51].mxu0  ;;  %v10711_v18 = vadd.f32 %v6012_v38, %v11136_v37  ;;  %v6015_v6 = vadd.f32 %v7513_v30, %v6958_v47 }
 0xfb0   : > { %v10708_v41 = vadd.f32 %v6004_v3, %v11135_v26  ;;  %v6007_v14 = vadd.f32 %v6958_v47, %v6006_v29 }
 0xfb1   : > { %v10721_v4 = vadd.f32 %v6015_v6, %v11138_v50  ;;  %v6050_v63 = vsel %vm407_vm0, %v10711_v18, 0.0 }
 0xfb2   : > { %v10714_v20 = vadd.f32 %v6007_v14, %v11137_v60  ;;  %v6044_v24 = vsel %vm407_vm0, %v10708_v41, 0.0 }
 0xfb3   : > { %6045 = vadd.xlane.f32.xlu0 %v6044_v24  ;;  %v6053_v27 = vsel %vm407_vm0, %v10721_v4, 0.0 }
 0xfb4   : > { %v6047_v62 = vsel %vm407_vm0, %v10714_v20, 0.0 }
 0xfb5   : > { %6048 = vadd.xlane.f32.xlu1 %v6047_v62 }
 0xfb7   : > { %6051 = vadd.xlane.f32.xlu0 %v6050_v63 }
 0xfbb   : > { %6054 = vadd.xlane.f32.xlu0 %v6053_v27 }
 0xfc7   : > { %v7516_v17 = vpop.f32.mrb[52].mxu0 }
 0xfc8   : > { %v6019_v54 = vpop.f32.mrb[53].mxu0  ;;  %v6028_v40 = vadd.f32 %v7516_v17, %v6958_v47  ;;  %v8167_v17 = vld [vmem:[%s10981_s3 + $0x10] sm:$0xff]  }
 0xfc9   : > { %v6020_v5 = vadd.f32 %v6958_v47, %v6019_v54  ;;  %v7517_v58 = vpop.f32.mrb[54].mxu0  ;;  %7518 = vmatprep.subr.bf16.mxu1 %v8167_v17  ;;  %v8168_v54 = vld [vmem:[%s10981_s3 + $0x18] sm:$0xff]  }
 0xfca   : > { %v6022_v2 = vpop.f32.mrb[55].mxu0  ;;  %v6031_v46 = vadd.f32 %v7517_v58, %v6958_v47  ;;  %v10731_v31 = vadd.f32 %v6028_v40, %v11140_v28  ;;  %7519 = vmatpush3.bf16.msra.mxu1 %v8167_v17 }
 0xfcb   : > { %v10728_v7 = vadd.f32 %v6020_v5, %v11139_v52  ;;  %v6023_v35 = vadd.f32 %v6958_v47, %v6022_v2  ;;  %7520 = vmatprep.subr.bf16.mxu1 %v8168_v54 }
 0xfcc   : > { %v10739_v59 = vadd.f32 %v6031_v46, %v11142_v8  ;;  %v6062_v34 = vsel %vm407_vm0, %v10731_v31, 0.0 }
 0xfcd   : > { %v10734_v44 = vadd.f32 %v6023_v35, %v11141_v15  ;;  %v6056_v42 = vsel %vm407_vm0, %v10728_v7, 0.0 }
 0xfce   : > { %6057 = vadd.xlane.f32.xlu1 %v6056_v42  ;;  %v6065_v33 = vsel %vm407_vm0, %v10739_v59, 0.0  ;;  %7521 = vmatpush3.bf16.msra.mxu1 %v8168_v54 }
 0xfcf   : > { %v6059_v32 = vsel %vm407_vm0, %v10734_v44, 0.0 }
 0xfd0   : > { %6060 = vadd.xlane.f32.xlu0 %v6059_v32 }
 0xfd2   : > { %6063 = vadd.xlane.f32.xlu1 %v6062_v34 }
 0xfd4   : > { %6066 = vadd.xlane.f32.xlu0 %v6065_v33  ;;  %v6965_v33 = vld [vmem:[#allocation3 + $0x11] ss:$0 sm:$0xff] }
0x1040   : > { %v6046_v19 = vpop.xlane.xlu0 %6045 }
0x1041   : > { %v6068_v11 = vmul.f32 0.03125, %v6046_v19 }
0x1042   : > { %v6049_v39 = vpop.xlane.xlu1 %6048 }
0x1043   : > { %v10748_v22 = vsub.f32 %v10708_v41, %v6068_v11  ;;  %v6069_v9 = vmul.f32 0.03125, %v6049_v39 }
0x1044   : > { %v6052_v43 = vpop.xlane.xlu0 %6051 }
0x1045   : > { %v10751_v13 = vsub.f32 %v10714_v20, %v6069_v9  ;;  %v6070_v61 = vmul.f32 0.03125, %v6052_v43  ;;  %v6084_v16 = vmul.f32 %v10748_v22, %v10748_v22 }
0x1047   : > { %v10756_v51 = vsub.f32 %v10711_v18, %v6070_v61  ;;  %v6092_v57 = vsel %vm407_vm0, %v6084_v16, 0.0  ;;  %v6085_v25 = vmul.f32 %v10751_v13, %v10751_v13  ;;  %v6966_v61 = vld [vmem:[#allocation3 + $0x12] ss:$0 sm:$0xff] }
0x1048   : > { %v6055_v21 = vpop.xlane.xlu0 %6054  ;;  %6093 = vadd.xlane.f32.xlu1 %v6092_v57 }
0x1049   : > { %v6071_v10 = vmul.f32 0.03125, %v6055_v21  ;;  %v6095_v45 = vsel %vm407_vm0, %v6085_v25, 0.0  ;;  %v6086_v23 = vmul.f32 %v10756_v51, %v10756_v51 }
0x104a   : > { %6096 = vadd.xlane.f32.xlu0 %v6095_v45 }
0x104b   : > { %v10765_v49 = vsub.f32 %v10721_v4, %v6071_v10  ;;  %v6098_v48 = vsel %vm407_vm0, %v6086_v23, 0.0 }
0x104c   : > { %6099 = vadd.xlane.f32.xlu1 %v6098_v48 }
0x104d   : > { %v6087_v1 = vmul.f32 %v10765_v49, %v10765_v49 }
0x104f   : > { %v6101_v55 = vsel %vm407_vm0, %v6087_v1, 0.0 }
0x1050   : > { %6102 = vadd.xlane.f32.xlu0 %v6101_v55 }
0x105b   : > { %v6058_v56 = vpop.xlane.xlu1 %6057 }
0x105c   : > { %v6072_v0 = vmul.f32 0.03125, %v6058_v56 }
0x105d   : > { %v6061_v12 = vpop.xlane.xlu0 %6060 }
0x105e   : > { %v10772_v47 = vsub.f32 %v10728_v7, %v6072_v0  ;;  %v6073_v53 = vmul.f32 0.03125, %v6061_v12 }
0x105f   : > { %v6064_v36 = vpop.xlane.xlu1 %6063 }
0x1060   : > { %v10775_v38 = vsub.f32 %v10734_v44, %v6073_v53  ;;  %v6074_v3 = vmul.f32 0.03125, %v6064_v36  ;;  %v6088_v30 = vmul.f32 %v10772_v47, %v10772_v47 }
0x1061   : > { %v6067_v29 = vpop.xlane.xlu0 %6066 }
0x1062   : > { %v10780_v26 = vsub.f32 %v10731_v31, %v6074_v3  ;;  %v6075_v14 = vmul.f32 0.03125, %v6067_v29  ;;  %v6104_v37 = vsel %vm407_vm0, %v6088_v30, 0.0  ;;  %v6089_v6 = vmul.f32 %v10775_v38, %v10775_v38 }
0x1063   : > { %6105 = vadd.xlane.f32.xlu1 %v6104_v37 }
0x1064   : > { %v10786_v60 = vsub.f32 %v10739_v59, %v6075_v14  ;;  %v6107_v24 = vsel %vm407_vm0, %v6089_v6, 0.0  ;;  %v6090_v62 = vmul.f32 %v10780_v26, %v10780_v26 }
0x1065   : > { %6108 = vadd.xlane.f32.xlu0 %v6107_v24 }
0x1066   : > { %v6110_v50 = vsel %vm407_vm0, %v6090_v62, 0.0  ;;  %v6091_v63 = vmul.f32 %v10786_v60, %v10786_v60 }
0x1067   : > { %6111 = vadd.xlane.f32.xlu1 %v6110_v50 }
0x1068   : > { %v6113_v27 = vsel %vm407_vm0, %v6091_v63, 0.0 }
0x1069   : > { %6114 = vadd.xlane.f32.xlu0 %v6113_v27 }
0x10d5   : > { %v6094_v40 = vpop.xlane.xlu1 %6093 }
0x10d6   : > { %v6116_v5 = vmul.f32 0.03125, %v6094_v40 }
0x10d7   : > { %v6097_v58 = vpop.xlane.xlu0 %6096 }
0x10d8   : > { %v6124_v2 = vadd.f32 1e-05, %v6116_v5  ;;  %v6117_v52 = vmul.f32 0.03125, %v6097_v58 }
0x10d9   : > { %v6100_v46 = vpop.xlane.xlu1 %6099 }
0x10da   : > { %8449 = vrsqrt.f32 %v6124_v2  ;;  %v6125_v35 = vadd.f32 1e-05, %v6117_v52  ;;  %v6118_v28 = vmul.f32 0.03125, %v6100_v46 }
0x10dc   : > { %8451 = vrsqrt.f32 %v6125_v35  ;;  %v6126_v15 = vadd.f32 1e-05, %v6118_v28 }
0x10dd   : > { %v6103_v42 = vpop.xlane.xlu0 %6102 }
0x10de   : > { %8453 = vrsqrt.f32 %v6126_v15  ;;  %v6119_v8 = vmul.f32 0.03125, %v6103_v42  ;;  %v8172_v42 = vld [vmem:[%s10982_s4 + $0x58] sm:$0xff]  }
0x10e0   : > { %v6127_v32 = vadd.f32 1e-05, %v6119_v8  ;;  %v8173_v8 = vld [vmem:[%s10982_s4 + $0x60] sm:$0xff]  }
0x10e2   : > { %8455 = vrsqrt.f32 %v6127_v32  ;;  %v8174_v32 = vld [vmem:[%s10982_s4 + $0x68] sm:$0xff]  }
0x10e4   : > { %v8450_v34 = vpop.eup %8449 }
0x10e5   : > { %v6140_v19 = vmul.f32 %v8450_v34, %v10748_v22  ;;  %v8175_v34 = vld [vmem:[%s10982_s4 + $0x70] sm:$0xff]  }
0x10e6   : > { %v8452_v11 = vpop.eup %8451 }
0x10e7   : > { %v6141_v39 = vmul.f32 %v8452_v11, %v10751_v13  ;;  %v6152_v9 = vmul.f32 %v6965_v33, %v6140_v19  ;;  %v6971_v19 = vld [vmem:[%s10980_s2 + $0x1] ss:$0 sm:$0xff] }
0x10e8   : > { %v8454_v43 = vpop.eup %8453 }
0x10e9   : > { %v6142_v16 = vmul.f32 %v8454_v43, %v10756_v51  ;;  %v6153_v57 = vmul.f32 %v6965_v33, %v6141_v39  ;;  %v6164_v25 = vadd.f32 %v6966_v61, %v6152_v9 }
0x10eb   : > { %v6165_v21 = vadd.f32 %v6966_v61, %v6153_v57  ;;  %v6154_v45 = vmul.f32 %v6965_v33, %v6142_v16 }
0x10ec   : > { %v8456_v10 = vpop.eup %8455 }
0x10ed   : > { %v6143_v23 = vmul.f32 %v8456_v10, %v10765_v49  ;;  %v6172_v48 = vpack.c.bf16 %v6165_v21, %v6164_v25  ;;  %v6166_v22 = vadd.f32 %v6966_v61, %v6154_v45 }
0x10ef   : > { %v6155_v1 = vmul.f32 %v6965_v33, %v6143_v23  ;;  %7522 = vmatprep.mubr.msk.bf16.mxu1 %vm407_vm0, %v6172_v48 }
0x10f0   : > { %v6106_v56 = vpop.xlane.xlu1 %6105 }
0x10f1   : > { %v6167_v55 = vadd.f32 %v6966_v61, %v6155_v1  ;;  %v6120_v13 = vmul.f32 0.03125, %v6106_v56 }
0x10f2   : > { %v6109_v0 = vpop.xlane.xlu0 %6108 }
0x10f3   : > { %v6173_v12 = vpack.c.bf16 %v6167_v55, %v6166_v22  ;;  %v6128_v53 = vadd.f32 1e-05, %v6120_v13  ;;  %v6121_v36 = vmul.f32 0.03125, %v6109_v0 }
0x10f4   : > { %v6112_v51 = vpop.xlane.xlu1 %6111 }
0x10f5   : > { %7523 = vmatmul.mubr.msk.bf16.vlgmr.msra.gmra.mrb[60].mxu1 %vm407_vm0, %v6173_v12  ;;  %8457 = vrsqrt.f32 %v6128_v53  ;;  %v6129_v3 = vadd.f32 1e-05, %v6121_v36  ;;  %v6122_v30 = vmul.f32 0.03125, %v6112_v51 }
0x10f6   : > { %v6115_v29 = vpop.xlane.xlu0 %6114 }
0x10f7   : > { %8459 = vrsqrt.f32 %v6129_v3  ;;  %v6130_v49 = vadd.f32 1e-05, %v6122_v30  ;;  %v6123_v14 = vmul.f32 0.03125, %v6115_v29 }
0x10f9   : > { %8461 = vrsqrt.f32 %v6130_v49  ;;  %v6131_v37 = vadd.f32 1e-05, %v6123_v14 }
0x10fb   : > { %8463 = vrsqrt.f32 %v6131_v37 }
0x10ff   : > { %v8458_v6 = vpop.eup %8457 }
0x1100   : > { %v6144_v24 = vmul.f32 %v8458_v6, %v10772_v47 }
0x1101   : > { %v8460_v62 = vpop.eup %8459 }
0x1102   : > { %v6145_v50 = vmul.f32 %v8460_v62, %v10775_v38  ;;  %v6156_v63 = vmul.f32 %v6965_v33, %v6144_v24  ;;  %v8169_v38 = vld [vmem:[%s10982_s4 + $0x40] sm:$0xff]  }
0x1103   : > { %v8462_v27 = vpop.eup %8461  ;;  %7530 = vmatprep.subr.bf16.mxu0 %v8169_v38 }
0x1104   : > { %v6146_v17 = vmul.f32 %v8462_v27, %v10780_v26  ;;  %v6157_v54 = vmul.f32 %v6965_v33, %v6145_v50  ;;  %v6168_v58 = vadd.f32 %v6966_v61, %v6156_v63  ;;  %7531 = vmatpush3.bf16.msra.mxu0 %v8169_v38  ;;  %v8170_v26 = vld [vmem:[%s10982_s4 + $0x48] sm:$0xff]  }
0x1105   : > { %v8464_v40 = vpop.eup %8463  ;;  %7532 = vmatprep.subr.bf16.mxu0 %v8170_v26 }
0x1106   : > { %v6147_v5 = vmul.f32 %v8464_v40, %v10786_v60  ;;  %v6169_v2 = vadd.f32 %v6966_v61, %v6157_v54  ;;  %v6158_v52 = vmul.f32 %v6965_v33, %v6146_v17  ;;  %v8171_v60 = vld [vmem:[%s10982_s4 + $0x50] sm:$0xff]  }
0x1108   : > { %v6174_v46 = vpack.c.bf16 %v6169_v2, %v6168_v58  ;;  %v6159_v35 = vmul.f32 %v6965_v33, %v6147_v5  ;;  %v6170_v28 = vadd.f32 %v6966_v61, %v6158_v52  ;;  %7533 = vmatpush3.bf16.msra.mxu0 %v8170_v26  ;;  %v8176_v33 = vld [vmem:[%s10982_s4 + $0x78] sm:$0xff]  }
0x1109   : > { %7534 = vmatprep.subr.bf16.mxu0 %v8171_v60 }
0x110a   : > { %7526 = vmatprep.mubr.msk.bf16.mxu1 %vm407_vm0, %v6174_v46  ;;  %v6171_v47 = vadd.f32 %v6966_v61, %v6159_v35 }
0x110c   : > { %v6175_v15 = vpack.c.bf16 %v6171_v47, %v6170_v28  ;;  %7535 = vmatpush3.bf16.msra.mxu0 %v8171_v60 }
0x110d   : > { %7536 = vmatprep.subr.bf16.mxu0 %v8172_v42 }
0x110e   : > { %7527 = vmatmul.mubr.msk.bf16.gmra.mrb[64].mxu1 %vm407_vm0, %v6175_v15 }
0x1110   : > { %7537 = vmatpush3.bf16.msra.mxu0 %v8172_v42 }
0x1111   : > { %7538 = vmatprep.subr.bf16.mxu0 %v8173_v8 }
0x1114   : > { %7539 = vmatpush3.bf16.msra.mxu0 %v8173_v8 }
0x1115   : > { %7540 = vmatprep.subr.bf16.mxu0 %v8174_v32 }
0x1118   : > { %7541 = vmatpush3.bf16.msra.mxu0 %v8174_v32 }
0x1119   : > { %7542 = vmatprep.subr.bf16.mxu0 %v8175_v34 }
0x111c   : > { %7543 = vmatpush3.bf16.msra.mxu0 %v8175_v34 }
0x111d   : > { %7544 = vmatprep.subr.bf16.mxu0 %v8176_v33 }
0x1120   : > { %7545 = vmatpush3.bf16.msra.mxu0 %v8176_v33 }
0x11c8   : > { %v7524_v11 = vpop.f32.mrb[60].mxu1 }
0x11c9   : > { %v6253_v39 = vadd.f32 %v7524_v11, %v6971_v19  ;;  %v6244_v9 = vpop.f32.mrb[61].mxu1 }
0x11ca   : > { %v6245_v43 = vadd.f32 %v6971_v19, %v6244_v9  ;;  %v7525_v61 = vpop.f32.mrb[62].mxu1 }
0x11cb   : > { %v6980_v16 = vmul.f32 -1.442695, %v6253_v39  ;;  %v6256_v57 = vadd.f32 %v7525_v61, %v6971_v19  ;;  %v6247_v25 = vpop.f32.mrb[63].mxu1  ;;  %v7002_v61 = vld [vmem:[#allocation3 + $0x13] ss:$0 sm:$0xff] }
0x11cc   : > { %v6978_v21 = vmul.f32 -1.442695, %v6245_v43  ;;  %v6248_v10 = vadd.f32 %v6971_v19, %v6247_v25 }
0x11cd   : > { %8465 = vpow2.f32 %v6980_v16  ;;  %v6981_v45 = vmul.f32 -1.442695, %v6256_v57 }
0x11ce   : > { %8467 = vpow2.f32 %v6978_v21  ;;  %v6979_v23 = vmul.f32 -1.442695, %v6248_v10 }
0x11cf   : > { %8469 = vpow2.f32 %v6981_v45 }
0x11d0   : > { %8471 = vpow2.f32 %v6979_v23 }
0x11d7   : > { %v8466_v48 = vpop.eup %8465 }
0x11d8   : > { %v8468_v1 = vpop.eup %8467  ;;  %v6301_v22 = vadd.f32 1.0, %v8466_v48 }
0x11d9   : > { %v8470_v55 = vpop.eup %8469  ;;  %v6299_v56 = vadd.f32 1.0, %v8468_v1 }
0x11da   : > { %v8472_v13 = vpop.eup %8471  ;;  %8473 = vrcp.f32 %v6301_v22  ;;  %v6302_v0 = vadd.f32 1.0, %v8470_v55 }
0x11db   : > { %8475 = vrcp.f32 %v6299_v56  ;;  %v6300_v12 = vadd.f32 1.0, %v8472_v13 }
0x11dc   : > { %8477 = vrcp.f32 %v6302_v0 }
0x11dd   : > { %8479 = vrcp.f32 %v6300_v12 }
0x11e1   : > { %v7528_v53 = vpop.f32.mrb[64].mxu1 }
0x11e2   : > { %v6269_v36 = vadd.f32 %v7528_v53, %v6971_v19  ;;  %v6260_v51 = vpop.f32.mrb[65].mxu1 }
0x11e3   : > { %v6261_v30 = vadd.f32 %v6971_v19, %v6260_v51  ;;  %v7529_v29 = vpop.f32.mrb[66].mxu1 }
0x11e4   : > { %v8474_v3 = vpop.eup %8473  ;;  %v6984_v14 = vmul.f32 -1.442695, %v6269_v36  ;;  %v6272_v37 = vadd.f32 %v7529_v29, %v6971_v19  ;;  %v6263_v6 = vpop.f32.mrb[67].mxu1 }
0x11e5   : > { %v8476_v49 = vpop.eup %8475  ;;  %v6982_v62 = vmul.f32 -1.442695, %v6261_v30  ;;  %v6264_v50 = vadd.f32 %v6971_v19, %v6263_v6  ;;  %v6325_v27 = vmul.f32 %v8474_v3, %v6253_v39 }
0x11e6   : > { %v8478_v24 = vpop.eup %8477  ;;  %8481 = vpow2.f32 %v6984_v14  ;;  %v6985_v54 = vmul.f32 -1.442695, %v6272_v37  ;;  %v6323_v40 = vmul.f32 %v8476_v49, %v6245_v43 }
0x11e7   : > { %v8480_v63 = vpop.eup %8479  ;;  %v6326_v17 = vmul.f32 %v8478_v24, %v6256_v57  ;;  %8483 = vpow2.f32 %v6982_v62  ;;  %v6983_v58 = vmul.f32 -1.442695, %v6264_v50 }
0x11e8   : > { %v6324_v5 = vmul.f32 %v8480_v63, %v6248_v10  ;;  %8485 = vpow2.f32 %v6985_v54 }
0x11e9   : > { %v6332_v2 = vpack.c.bf16 %v6326_v17, %v6325_v27  ;;  %8487 = vpow2.f32 %v6983_v58 }
0x11ea   : > { %v6331_v52 = vpack.c.bf16 %v6324_v5, %v6323_v40 }
0x11ec   : > { %7546 = vmatprep.mubr.bf16.mxu0 %v6331_v52 }
0x11ed   : > { %7547 = vmatmul.mubr.bf16.vlgmr.msra.gmra.mrb[56].mxu0 %v6332_v2 }
0x11f0   : > { %v8482_v46 = vpop.eup %8481 }
0x11f1   : > { %v8484_v35 = vpop.eup %8483  ;;  %v6305_v28 = vadd.f32 1.0, %v8482_v46 }
0x11f2   : > { %v8486_v47 = vpop.eup %8485  ;;  %v6303_v15 = vadd.f32 1.0, %v8484_v35 }
0x11f3   : > { %v8488_v38 = vpop.eup %8487  ;;  %8489 = vrcp.f32 %v6305_v28  ;;  %v6306_v26 = vadd.f32 1.0, %v8486_v47 }
0x11f4   : > { %8491 = vrcp.f32 %v6303_v15  ;;  %v6304_v60 = vadd.f32 1.0, %v8488_v38 }
0x11f5   : > { %8493 = vrcp.f32 %v6306_v26 }
0x11f6   : > { %8495 = vrcp.f32 %v6304_v60 }
0x11fd   : > { %v8490_v42 = vpop.eup %8489 }
0x11fe   : > { %v8492_v8 = vpop.eup %8491  ;;  %v6329_v33 = vmul.f32 %v8490_v42, %v6269_v36 }
0x11ff   : > { %v8494_v32 = vpop.eup %8493  ;;  %v6327_v11 = vmul.f32 %v8492_v8, %v6261_v30 }
0x1200   : > { %v8496_v34 = vpop.eup %8495  ;;  %v6330_v19 = vmul.f32 %v8494_v32, %v6272_v37 }
0x1201   : > { %v6328_v39 = vmul.f32 %v8496_v34, %v6264_v50 }
0x1202   : > { %v6334_v9 = vpack.c.bf16 %v6330_v19, %v6329_v33 }
0x1203   : > { %v6333_v43 = vpack.c.bf16 %v6328_v39, %v6327_v11 }
0x1205   : > { %7550 = vmatprep.mubr.bf16.mxu0 %v6333_v43 }
0x1206   : > { %7551 = vmatmul.mubr.bf16.gmra.mrb[60].mxu0 %v6334_v9 }
0x12c0   : > { %v7548_v16 = vpop.f32.mrb[56].mxu0 }
0x12c1   : > { %v6448_v57 = vadd.f32 %v7548_v16, %v7002_v61  ;;  %v6439_v25 = vpop.f32.mrb[57].mxu0 }
0x12c2   : > { %v6440_v21 = vadd.f32 %v7002_v61, %v6439_v25  ;;  %v7549_v10 = vpop.f32.mrb[58].mxu0 }
0x12c3   : > { %v6472_v45 = vmul.f32 0.5, %v6448_v57  ;;  %v6451_v23 = vadd.f32 %v7549_v10, %v7002_v61  ;;  %v6442_v48 = vpop.f32.mrb[59].mxu0 }
0x12c4   : > { %v6470_v1 = vmul.f32 0.5, %v6440_v21  ;;  %v6443_v22 = vadd.f32 %v7002_v61, %v6442_v48 }
0x12c5   : > { %v6480_v55 = vadd.f32 %v6472_v45, %v10711_v18  ;;  %v6473_v56 = vmul.f32 0.5, %v6451_v23 }
0x12c6   : > { %v6471_v13 = vmul.f32 0.5, %v6443_v22  ;;  %v6478_v0 = vadd.f32 %v6470_v1, %v10708_v41 }
0x12c7   : > { %v6481_v12 = vadd.f32 %v6473_v56, %v10721_v4  ;;  %v6494_v53 = vsel %vm407_vm0, %v6480_v55, 0.0 }
0x12c8   : > { %6495 = vadd.xlane.f32.xlu1 %v6494_v53  ;;  %v6479_v36 = vadd.f32 %v6471_v13, %v10714_v20  ;;  %v6488_v3 = vsel %vm407_vm0, %v6478_v0, 0.0 }
0x12c9   : > { %v6497_v51 = vsel %vm407_vm0, %v6481_v12, 0.0 }
0x12ca   : > { %6498 = vadd.xlane.f32.xlu0 %v6497_v51  ;;  %v6491_v30 = vsel %vm407_vm0, %v6479_v36, 0.0 }
0x12cc   : > { %6489 = vadd.xlane.f32.xlu1 %v6488_v3 }
0x12ce   : > { %6492 = vadd.xlane.f32.xlu0 %v6491_v30 }
0x12d9   : > { %v7552_v18 = vpop.f32.mrb[60].mxu0 }
0x12da   : > { %v6464_v29 = vadd.f32 %v7552_v18, %v7002_v61  ;;  %v6455_v49 = vpop.f32.mrb[61].mxu0 }
0x12db   : > { %v6456_v41 = vadd.f32 %v7002_v61, %v6455_v49  ;;  %v7553_v14 = vpop.f32.mrb[62].mxu0 }
0x12dc   : > { %v6467_v4 = vadd.f32 %v7553_v14, %v7002_v61  ;;  %v6458_v37 = vpop.f32.mrb[63].mxu0  ;;  %v6476_v6 = vmul.f32 0.5, %v6464_v29 }
0x12dd   : > { %v6474_v24 = vmul.f32 0.5, %v6456_v41  ;;  %v6459_v62 = vadd.f32 %v7002_v61, %v6458_v37 }
0x12de   : > { %v6477_v50 = vmul.f32 0.5, %v6467_v4  ;;  %v6484_v27 = vadd.f32 %v6476_v6, %v10731_v31 }
0x12df   : > { %v6482_v20 = vadd.f32 %v6474_v24, %v10728_v7  ;;  %v6475_v63 = vmul.f32 0.5, %v6459_v62  ;;  %v7011_v62 = vld [vmem:[#allocation3 + $0x14] ss:$0 sm:$0xff] }
0x12e0   : > { %v6485_v40 = vadd.f32 %v6477_v50, %v10739_v59  ;;  %v6506_v58 = vsel %vm407_vm0, %v6484_v27, 0.0 }
0x12e1   : > { %v6483_v17 = vadd.f32 %v6475_v63, %v10734_v44  ;;  %v6500_v54 = vsel %vm407_vm0, %v6482_v20, 0.0  ;;  %v7012_v63 = vld [vmem:[#allocation3 + $0x15] ss:$0 sm:$0xff] }
0x12e2   : > { %6501 = vadd.xlane.f32.xlu1 %v6500_v54  ;;  %v6509_v2 = vsel %vm407_vm0, %v6485_v40, 0.0 }
0x12e3   : > { %v6503_v5 = vsel %vm407_vm0, %v6483_v17, 0.0 }
0x12e4   : > { %6504 = vadd.xlane.f32.xlu0 %v6503_v5 }
0x12e6   : > { %6507 = vadd.xlane.f32.xlu1 %v6506_v58 }
0x12e8   : > { %6510 = vadd.xlane.f32.xlu0 %v6509_v2 }
0x1355   : > { %v6496_v7 = vpop.xlane.xlu1 %6495 }
0x1356   : > { %v6514_v52 = vmul.f32 0.03125, %v6496_v7 }
0x1357   : > { %v6499_v46 = vpop.xlane.xlu0 %6498 }
0x1358   : > { %v10856_v31 = vsub.f32 %v6480_v55, %v6514_v52  ;;  %v6515_v44 = vmul.f32 0.03125, %v6499_v46 }
0x1359   : > { %v6490_v35 = vpop.xlane.xlu1 %6489 }
0x135a   : > { %v10858_v28 = vsub.f32 %v6481_v12, %v6515_v44  ;;  %v6512_v47 = vmul.f32 0.03125, %v6490_v35  ;;  %v6530_v59 = vmul.f32 %v10856_v31, %v10856_v31 }
0x135b   : > { %v6493_v15 = vpop.xlane.xlu0 %6492 }
0x135c   : > { %v10862_v38 = vsub.f32 %v6478_v0, %v6512_v47  ;;  %v6513_v26 = vmul.f32 0.03125, %v6493_v15  ;;  %v6542_v60 = vsel %vm407_vm0, %v6530_v59, 0.0  ;;  %v6531_v42 = vmul.f32 %v10858_v28, %v10858_v28 }
0x135d   : > { %6543 = vadd.xlane.f32.xlu1 %v6542_v60 }
0x135e   : > { %v10867_v8 = vsub.f32 %v6479_v36, %v6513_v26  ;;  %v6545_v32 = vsel %vm407_vm0, %v6531_v42, 0.0  ;;  %v6528_v34 = vmul.f32 %v10862_v38, %v10862_v38 }
0x135f   : > { %6546 = vadd.xlane.f32.xlu0 %v6545_v32 }
0x1360   : > { %v6536_v33 = vsel %vm407_vm0, %v6528_v34, 0.0  ;;  %v6529_v19 = vmul.f32 %v10867_v8, %v10867_v8 }
0x1361   : > { %6537 = vadd.xlane.f32.xlu1 %v6536_v33 }
0x1362   : > { %v6539_v11 = vsel %vm407_vm0, %v6529_v19, 0.0 }
0x1363   : > { %6540 = vadd.xlane.f32.xlu0 %v6539_v11 }
0x136f   : > { %v6502_v39 = vpop.xlane.xlu1 %6501 }
0x1370   : > { %v6516_v9 = vmul.f32 0.03125, %v6502_v39 }
0x1371   : > { %v6505_v43 = vpop.xlane.xlu0 %6504 }
0x1372   : > { %v10876_v61 = vsub.f32 %v6482_v20, %v6516_v9  ;;  %v6517_v16 = vmul.f32 0.03125, %v6505_v43 }
0x1373   : > { %v6508_v57 = vpop.xlane.xlu1 %6507 }
0x1374   : > { %v10878_v25 = vsub.f32 %v6483_v17, %v6517_v16  ;;  %v6518_v21 = vmul.f32 0.03125, %v6508_v57  ;;  %v6532_v10 = vmul.f32 %v10876_v61, %v10876_v61 }
0x1375   : > { %v6511_v45 = vpop.xlane.xlu0 %6510 }
0x1376   : > { %v10882_v23 = vsub.f32 %v6484_v27, %v6518_v21  ;;  %v6519_v48 = vmul.f32 0.03125, %v6511_v45  ;;  %v6548_v1 = vsel %vm407_vm0, %v6532_v10, 0.0  ;;  %v6533_v22 = vmul.f32 %v10878_v25, %v10878_v25 }
0x1377   : > { %6549 = vadd.xlane.f32.xlu1 %v6548_v1 }
0x1378   : > { %v10887_v55 = vsub.f32 %v6485_v40, %v6519_v48  ;;  %v6551_v56 = vsel %vm407_vm0, %v6533_v22, 0.0  ;;  %v6534_v13 = vmul.f32 %v10882_v23, %v10882_v23 }
0x1379   : > { %6552 = vadd.xlane.f32.xlu0 %v6551_v56 }
0x137a   : > { %v6554_v0 = vsel %vm407_vm0, %v6534_v13, 0.0  ;;  %v6535_v12 = vmul.f32 %v10887_v55, %v10887_v55 }
0x137b   : > { %6555 = vadd.xlane.f32.xlu1 %v6554_v0 }
0x137c   : > { %v6557_v53 = vsel %vm407_vm0, %v6535_v12, 0.0 }
0x137d   : > { %6558 = vadd.xlane.f32.xlu0 %v6557_v53 }
0x13ea   : > { %v6544_v36 = vpop.xlane.xlu1 %6543 }
0x13eb   : > { %v6562_v51 = vmul.f32 0.03125, %v6544_v36 }
0x13ec   : > { %v6547_v3 = vpop.xlane.xlu0 %6546 }
0x13ed   : > { %v6570_v30 = vadd.f32 1e-05, %v6562_v51  ;;  %v6563_v18 = vmul.f32 0.03125, %v6547_v3 }
0x13ee   : > { %v6538_v29 = vpop.xlane.xlu1 %6537 }
0x13ef   : > { %8497 = vrsqrt.f32 %v6570_v30  ;;  %v6571_v49 = vadd.f32 1e-05, %v6563_v18  ;;  %v6560_v41 = vmul.f32 0.03125, %v6538_v29 }
0x13f0   : > { %v6541_v14 = vpop.xlane.xlu0 %6540 }
0x13f1   : > { %8499 = vrsqrt.f32 %v6571_v49  ;;  %v6568_v4 = vadd.f32 1e-05, %v6560_v41  ;;  %v6561_v37 = vmul.f32 0.03125, %v6541_v14 }
0x13f3   : > { %8501 = vrsqrt.f32 %v6568_v4  ;;  %v6569_v6 = vadd.f32 1e-05, %v6561_v37 }
0x13f5   : > { %8503 = vrsqrt.f32 %v6569_v6 }
0x13f9   : > { %v8498_v24 = vpop.eup %8497 }
0x13fa   : > { %v6586_v20 = vmul.f32 %v8498_v24, %v10856_v31 }
0x13fb   : > { %v8500_v50 = vpop.eup %8499 }
0x13fc   : > { %v6598_v27 = vmul.f32 %v7011_v62, %v6586_v20  ;;  %v6587_v17 = vmul.f32 %v8500_v50, %v10858_v28 }
0x13fd   : > { %v8502_v54 = vpop.eup %8501 }
0x13fe   : > { %v6610_v40 = vadd.f32 %v7012_v63, %v6598_v27  ;;  %v6599_v5 = vmul.f32 %v7011_v62, %v6587_v17  ;;  %v6584_v58 = vmul.f32 %v8502_v54, %v10862_v38 }
0x13ff   : > { %v8504_v2 = vpop.eup %8503 }
0x1400   : > { %6618 = vst.msk [vmem:[%s10902_s11 + $0x10] sm:$0xff] %vm407_vm0, %v6610_v40  ;;  %v6611_v7 = vadd.f32 %v7012_v63, %v6599_v5  ;;  %v6596_v52 = vmul.f32 %v7011_v62, %v6584_v58  ;;  %v6585_v46 = vmul.f32 %v8504_v2, %v10867_v8 }
0x1402   : > { %6619 = vst.msk [vmem:[%s10902_s11 + $0x18] sm:$0xff] %vm407_vm0, %v6611_v7  ;;  %v6608_v31 = vadd.f32 %v7012_v63, %v6596_v52  ;;  %v6597_v44 = vmul.f32 %v7011_v62, %v6585_v46 }
0x1404   : > { %6616 = vst.msk [vmem:[%s10902_s11] sm:$0xff] %vm407_vm0, %v6608_v31  ;;  %v6609_v35 = vadd.f32 %v7012_v63, %v6597_v44  ;;  %v6550_v28 = vpop.xlane.xlu1 %6549 }
0x1405   : > { %v6564_v47 = vmul.f32 0.03125, %v6550_v28 }
0x1406   : > { %6617 = vst.msk [vmem:[%s10902_s11 + $0x8] sm:$0xff] %vm407_vm0, %v6609_v35  ;;  %v6553_v59 = vpop.xlane.xlu0 %6552 }
0x1407   : > { %v6572_v15 = vadd.f32 1e-05, %v6564_v47  ;;  %v6565_v38 = vmul.f32 0.03125, %v6553_v59 }
0x1408   : > { %v6556_v26 = vpop.xlane.xlu1 %6555 }
0x1409   : > { %8505 = vrsqrt.f32 %v6572_v15  ;;  %v6573_v60 = vadd.f32 1e-05, %v6565_v38  ;;  %v6566_v42 = vmul.f32 0.03125, %v6556_v26 }
0x140a   : > { %v6559_v32 = vpop.xlane.xlu0 %6558 }
0x140b   : > { %8507 = vrsqrt.f32 %v6573_v60  ;;  %v6574_v8 = vadd.f32 1e-05, %v6566_v42  ;;  %v6567_v34 = vmul.f32 0.03125, %v6559_v32 }
0x140d   : > { %8509 = vrsqrt.f32 %v6574_v8  ;;  %v6575_v33 = vadd.f32 1e-05, %v6567_v34 }
0x140f   : > { %8511 = vrsqrt.f32 %v6575_v33 }
0x1413   : > { %v8506_v19 = vpop.eup %8505 }
0x1414   : > { %v6588_v11 = vmul.f32 %v8506_v19, %v10876_v61 }
0x1415   : > { %v8508_v39 = vpop.eup %8507 }
0x1416   : > { %v6600_v9 = vmul.f32 %v7011_v62, %v6588_v11  ;;  %v6589_v43 = vmul.f32 %v8508_v39, %v10878_v25 }
0x1417   : > { %v8510_v16 = vpop.eup %8509 }
0x1418   : > { %v6612_v57 = vadd.f32 %v7012_v63, %v6600_v9  ;;  %v6601_v21 = vmul.f32 %v7011_v62, %v6589_v43  ;;  %v6590_v10 = vmul.f32 %v8510_v16, %v10882_v23 }
0x1419   : > { %v8512_v45 = vpop.eup %8511 }
0x141a   : > { %6620 = vst.msk [vmem:[%s10902_s11 + $0x20] sm:$0xff] %vm407_vm0, %v6612_v57  ;;  %v6613_v48 = vadd.f32 %v7012_v63, %v6601_v21  ;;  %v6602_v1 = vmul.f32 %v7011_v62, %v6590_v10  ;;  %v6591_v61 = vmul.f32 %v8512_v45, %v10887_v55 }
0x141c   : > { %6621 = vst.msk [vmem:[%s10902_s11 + $0x28] sm:$0xff] %vm407_vm0, %v6613_v48  ;;  %v6614_v25 = vadd.f32 %v7012_v63, %v6602_v1  ;;  %v6603_v22 = vmul.f32 %v7011_v62, %v6591_v61 }
0x141e   : > { %6622 = vst.msk [vmem:[%s10902_s11 + $0x30] sm:$0xff] %vm407_vm0, %v6614_v25  ;;  %v6615_v23 = vadd.f32 %v7012_v63, %v6603_v22 }
0x1420   : > { %6623 = vst.msk [vmem:[%s10902_s11 + $0x38] sm:$0xff] %vm407_vm0, %v6615_v23 }
0x1421   : > { %8642 = shalt.err (!%p8639_p0)
}
0x1422   : > { %s8643_s27 = scalar_lea.hbm %s10926_s17, 1024  ;;  %s8647_s26 = scalar_lea.hbm %s10987_s9, 2048 }
0x1423   : > { %p8644_p6 = scmp.ne.s32.totalorder %s10926_s17, %s8643_s27  ;;  %p8648_p13 = scmp.lt.u32.totalorder %s10926_s17, %s10987_s9 }
0x1424   : > { %p8649_p12 = scmp.lt.u32.totalorder %s8647_s26, %s8643_s27  ;;  %p8651_p2 = scmp.lt.u32.totalorder %s8643_s27, %s10926_s17 }
0x1425   : > { %p8645_p9 = pnand %p8644_p6, %p11143_p3 }
0x1426   : > { %p8650_p1 = por %p8649_p12, %p8648_p13 }
0x1427   : > { %p8646_p10 = pneg %p8645_p9 }
0x1428   : > { %p8652_p4 = por %p8651_p2, %p8650_p1 }
0x142a   : > { %p8653_p7 = pnand %p8652_p4, %p8646_p10 }
0x142c   : > { %8656 = shalt.err (!%p8653_p7)
}
0x142d   : > { %s8724_s11 = smov 128  }
0x142e   : > { %7730 = dma.vmem_to_hbm [thread:$0]  (%p11143_p3), %s10930_s14, 1024, %s10926_s17, %s10936_s13, %s8724_s11, %s8724_s11, %s8719_s15  }
0x142f PF: > { %s11144_s6 = sld [smem:[#allocation19_spill]]  ;;  %p7757_p8 = scmp.ge.s32.totalorder %s8703_s12, 2 }
0x1430   : > { %s6654_s21 = sand.u32 1, %s8691_s30  }
0x1431   : > { %s6655_s24 = scalar_lea.sflag [#allocation5], %s6654_s21 }
0x1435   : > { %p11145_p11 = scmp.ne.s32.totalorder %s11144_s6, 0 }
0x1437   : > { %p7746_p5 = pnand %p7757_p8, %p11145_p11 }
0x1439   : > { %8686 = dma.done.wait (!%p7746_p5), %s6655_s24, 1024  }
0x143a   : > { %8688 = vsyncadd (!%p7746_p5), %s6655_s24, 4294966272  ;;  %s11146_s12 = sld [smem:[#allocation17_spill]]  ;;  %s11147_s25 = sld [smem:[#allocation16_spill]] }
0x143b   : > { %s11148_s11 = sld [smem:[#allocation18_spill]]  ;;  %s11149_s30 = smov %s8695_s10 }
0x1440   : > { %p22_p0 = scmp.ge.s32.totalorder %s11146_s12, 4   ;;  %s11150_s10 = smov %s11147_s25 }
0x1442   :  { %24 = sbr.rel (!%p22_p0) target bundleno = 8 (0x8), region = 111 }
0x1449   :  { %6660 = vsyncpa [#allocation4], 1 }
0x144a   :  { %6662 = vsyncpa [#allocation4 + $0x1], 1 }
0x144b   :  { %6663 = vsyncpa [#allocation7], 1 }
0x144c   :  { %6664 = vsyncpa [#allocation10], 1 }
0x144d   :  { %6665 = vsyncpa [#allocation5], 1 }
0x144e   :  { %6667 = vsyncpa [#allocation5 + $0x1], 1 }

</bundles_post_ra>
